<compile_context>
chip_gen: v6e
topology: v6e:2x2x1
jax: 0.10.0
libtpu: 0.0.40
codegen_flags: <defaults>
</compile_context>

<pallas_src>
import numpy as np
import jax
import jax.numpy as jnp
from jax import lax
from jax.experimental import pallas as pl
from jax.experimental.pallas import tpu as pltpu

# ---------------------------------------------------------------------------
# Config
# ---------------------------------------------------------------------------
B = 2
BPG = 2                 # batch elements folded into lanes per grid step
C_IN = 16
C_OUT = 32
H = W = 16
HO, WO = H // 2, W // 2
HW_IN = H * W           # 256
HW_OUT = HO * WO        # 64
BN_EPS = 1e-5

assert B % BPG == 0


# ---------------------------------------------------------------------------
# Host-side constant matrices (shift / select, applied on the MXU in-kernel)
# ---------------------------------------------------------------------------
def _conv3x3_select(h_in, w_in, stride):
    """S[t, p_in, p_out] = 1 where input position feeds output position for
    tap t = kh*3 + kw of a 3x3 conv, padding=1, given stride.  Zero padding
    and the stride-2 downselect are encoded directly."""
    h_out, w_out = h_in // stride, w_in // stride
    mats = np.zeros((9, h_in * w_in, h_out * w_out), np.float32)
    for kh in range(3):
        for kw in range(3):
            t = kh * 3 + kw
            dh, dw = kh - 1, kw - 1
            for ho in range(h_out):
                hi = ho * stride + dh
                if not (0 <= hi < h_in):
                    continue
                for wo in range(w_out):
                    wi = wo * stride + dw
                    if 0 <= wi < w_in:
                        mats[t, hi * w_in + wi, ho * w_out + wo] = 1.0
    return mats


def _maxpool2_select(h_in, w_in):
    """Four 0/1 matrices selecting the (i, j) corner of each 2x2 window."""
    h_out, w_out = h_in // 2, w_in // 2
    mats = np.zeros((4, h_in * w_in, h_out * w_out), np.float32)
    for t, (i, j) in enumerate(((0, 0), (0, 1), (1, 0), (1, 1))):
        for ho in range(h_out):
            for wo in range(w_out):
                mats[t, (2 * ho + i) * w_in + (2 * wo + j),
                     ho * w_out + wo] = 1.0
    return mats


def _block_diag(mats, n):
    """(T, P, Q) -> (T, n*P, n*Q) block-diagonal over the trailing dims, so
    the same per-image select applies to each batch element's lane slab."""
    t, p, q = mats.shape
    out = np.zeros((t, n * p, n * q), mats.dtype)
    for i in range(n):
        out[:, i * p:(i + 1) * p, i * q:(i + 1) * q] = mats
    return out


# Built once (module scope); 0/1 values are exact in bf16.
_POOL_SEL = jnp.asarray(_block_diag(_maxpool2_select(H, W), BPG), jnp.bfloat16)
_S2_SEL = jnp.asarray(_block_diag(_conv3x3_select(H, W, 2), BPG), jnp.bfloat16)
_S1_SEL = jnp.asarray(_block_diag(_conv3x3_select(HO, WO, 1), BPG), jnp.bfloat16)


# ---------------------------------------------------------------------------
# Pallas kernel: whole Tree forward, (C, BPG*HW) layout, one grid step / group
# ---------------------------------------------------------------------------
def tree_kernel(x_ref,
                pool_sel_ref, s2_sel_ref, s1_sel_ref,
                w_proj_ref, sh_p_ref,
                w11_ref, sh11_ref, w12_ref, sh12_ref,
                w21_ref, sh21_ref, w22_ref, sh22_ref,
                w_root_ref, sh_r_ref,
                o_ref, col_ref):
    bf16 = jnp.bfloat16

    def mm(a, b):
        return jnp.dot(a, b, preferred_element_type=jnp.float32)

    def relu(v):
        return jnp.maximum(v, 0.0)

    def conv3x3(inp_bf16, sel_ref, w_ref, sh_ref, c_in):
        # im2col: 9 shift-select matmuls fill the scratch (tap t at sublane
        # offset t*c_in); the select picks exact bf16 values so the cast back
        # to bf16 is lossless.  Then ONE weight matmul (K = 9*c_in).
        for t in range(9):
            col_ref[pl.ds(t * c_in, c_in), :] = mm(
                inp_bf16, sel_ref[t]).astype(bf16)
        return mm(w_ref[...], col_ref[pl.ds(0, 9 * c_in), :]) + sh_ref[...]

    x = x_ref[...]                                   # (C_IN, BPG*HW_IN) bf16

    # ---- downsample: 2x2/2 maxpool via 4 select matmuls + elementwise max --
    bottom = mm(x, pool_sel_ref[0])
    for t in range(1, 4):
        bottom = jnp.maximum(bottom, mm(x, pool_sel_ref[t]))
    bottom_b = bottom.astype(bf16)                   # exact (pure selection)

    # ---- project: 1x1 conv (BN scale folded into weight) + shift ----------
    residual = mm(w_proj_ref[...], bottom_b) + sh_p_ref[...]

    # ---- tree1 = BasicBlock(C_IN, C_OUT, stride=2), residual = project ----
    y = relu(conv3x3(x, s2_sel_ref, w11_ref, sh11_ref, C_IN))
    y = conv3x3(y.astype(bf16), s1_sel_ref, w12_ref, sh12_ref, C_OUT)
    x1 = relu(y + residual)

    # ---- tree2 = BasicBlock(C_OUT, C_OUT, stride=1), residual = x1 --------
    x1_b = x1.astype(bf16)
    y = relu(conv3x3(x1_b, s1_sel_ref, w21_ref, sh21_ref, C_OUT))
    y = conv3x3(y.astype(bf16), s1_sel_ref, w22_ref, sh22_ref, C_OUT)
    x2 = relu(y + x1)

    # ---- root: 1x1 conv on cat([x2, x1]) as one matmul via the scratch ----
    col_ref[pl.ds(0, C_OUT), :] = x2.astype(bf16)
    col_ref[pl.ds(C_OUT, C_OUT), :] = x1_b
    r = mm(w_root_ref[...], col_ref[pl.ds(0, 2 * C_OUT), :]) + sh_r_ref[...]
    o_ref[...] = relu(r)


# ---------------------------------------------------------------------------
# Wrapper: NCHW in/out, batch folded into lanes, grid over batch groups
# ---------------------------------------------------------------------------
def _fold_bn(bnp):
    sc = bnp['gamma'] / jnp.sqrt(bnp['var'] + BN_EPS)
    sh = bnp['beta'] - bnp['mean'] * sc
    return sc, sh.reshape(-1, 1)


def _conv_w_flat(w4, sc):
    # (C_out, C_in, 3, 3), BN scale folded -> (C_out, 9*C_in) bf16.
    # Column index = (kh*3 + kw)*C_in + c_in, matching the im2col scratch.
    co, ci = w4.shape[0], w4.shape[1]
    wf = (w4 * sc.reshape(-1, 1, 1, 1)).transpose(0, 2, 3, 1).reshape(co, 9 * ci)
    return wf.astype(jnp.bfloat16)


def _conv1x1_w(w4, sc):
    return (w4[:, :, 0, 0] * sc[:, None]).astype(jnp.bfloat16)


@jax.jit
def tree_forward(x_nchw, params):
    b, c, h, w = x_nchw.shape
    assert (c, h, w) == (C_IN, H, W) and b % BPG == 0

    # (B, C, H, W) -> (C, B*HW): channels on sublanes, batch*spatial on lanes.
    x_flat = jnp.transpose(x_nchw.reshape(b, c, h * w), (1, 0, 2))
    x_flat = x_flat.reshape(c, b * h * w).astype(jnp.bfloat16)

    sc_p, sh_p = _fold_bn(params['bn_p'])
    sc11, sh11 = _fold_bn(params['bn11'])
    sc12, sh12 = _fold_bn(params['bn12'])
    sc21, sh21 = _fold_bn(params['bn21'])
    sc22, sh22 = _fold_bn(params['bn22'])
    sc_r, sh_r = _fold_bn(params['bn_r'])

    operands = [
        x_flat,
        _POOL_SEL, _S2_SEL, _S1_SEL,
        _conv1x1_w(params['w_proj'], sc_p), sh_p,
        _conv_w_flat(params['w11'], sc11), sh11,
        _conv_w_flat(params['w12'], sc12), sh12,
        _conv_w_flat(params['w21'], sc21), sh21,
        _conv_w_flat(params['w22'], sc22), sh22,
        _conv1x1_w(params['w_root'], sc_r), sh_r,
    ]

    n_steps = b // BPG
    in_specs = [pl.BlockSpec((C_IN, BPG * HW_IN), lambda i: (0, i))]
    for p in operands[1:]:
        in_specs.append(
            pl.BlockSpec(p.shape, lambda i, _nd=p.ndim: (0,) * _nd))

    out = pl.pallas_call(
        tree_kernel,
        out_shape=jax.ShapeDtypeStruct((C_OUT, b * HW_OUT), jnp.float32),
        grid=(n_steps,),
        in_specs=in_specs,
        out_specs=pl.BlockSpec((C_OUT, BPG * HW_OUT), lambda i: (0, i)),
        scratch_shapes=[pltpu.VMEM((9 * C_OUT, BPG * HW_OUT), jnp.bfloat16)],
        compiler_params=pltpu.CompilerParams(
            dimension_semantics=("parallel",)),
    )(*operands)

    # (C_OUT, B*HW_OUT) -> (B, C_OUT, HO, WO)
    out = jnp.transpose(out.reshape(C_OUT, b, HW_OUT), (1, 0, 2))
    return out.reshape(b, C_OUT, HO, WO)


# ---------------------------------------------------------------------------
# Deterministic parameter init
# ---------------------------------------------------------------------------
def init_params(key):
    ks = iter(jax.random.split(key, 32))

    def conv_w(co, ci, k):
        return 0.1 * jax.random.normal(next(ks), (co, ci, k, k), jnp.float32)

    def bn_p(c):
        return dict(
            gamma=1.0 + 0.1 * jax.random.normal(next(ks), (c,), jnp.float32),
            beta=0.1 * jax.random.normal(next(ks), (c,), jnp.float32),
            mean=0.1 * jax.random.normal(next(ks), (c,), jnp.float32),
            var=0.5 + jax.random.uniform(next(ks), (c,), jnp.float32),
        )

    p = {}
    p['w11'] = conv_w(C_OUT, C_IN, 3);         p['bn11'] = bn_p(C_OUT)
    p['w12'] = conv_w(C_OUT, C_OUT, 3);        p['bn12'] = bn_p(C_OUT)
    p['w21'] = conv_w(C_OUT, C_OUT, 3);        p['bn21'] = bn_p(C_OUT)
    p['w22'] = conv_w(C_OUT, C_OUT, 3);        p['bn22'] = bn_p(C_OUT)
    p['w_proj'] = conv_w(C_OUT, C_IN, 1);      p['bn_p'] = bn_p(C_OUT)
    p['w_root'] = conv_w(C_OUT, 2 * C_OUT, 1); p['bn_r'] = bn_p(C_OUT)
    return p


# ---------------------------------------------------------------------------
# Pure-JAX reference (mirrors the PyTorch forward, NCHW, eval-mode BN, f32)
# ---------------------------------------------------------------------------
def reference(x, p):
    def bn(x4, bnp):
        sc = bnp['gamma'] / jnp.sqrt(bnp['var'] + BN_EPS)
        sh = bnp['beta'] - bnp['mean'] * sc
        return x4 * sc.reshape(1, -1, 1, 1) + sh.reshape(1, -1, 1, 1)

    def conv(x4, w4, stride, pad):
        return lax.conv_general_dilated(
            x4, w4, (stride, stride), ((pad, pad), (pad, pad)),
            dimension_numbers=('NCHW', 'OIHW', 'NCHW'))

    def relu(t):
        return jnp.maximum(t, 0.0)

    bottom = lax.reduce_window(x, -jnp.inf, lax.max,
                               (1, 1, 2, 2), (1, 1, 2, 2), 'VALID')
    residual = bn(conv(bottom, p['w_proj'], 1, 0), p['bn_p'])

    y = relu(bn(conv(x, p['w11'], 2, 1), p['bn11']))
    y = bn(conv(y, p['w12'], 1, 1), p['bn12'])
    x1 = relu(y + residual)

    y = relu(bn(conv(x1, p['w21'], 1, 1), p['bn21']))
    y = bn(conv(y, p['w22'], 1, 1), p['bn22'])
    x2 = relu(y + x1)

    r = bn(conv(jnp.concatenate([x2, x1], axis=1), p['w_root'], 1, 0),
           p['bn_r'])
    return relu(r)


if __name__ == "__main__":
    key = jax.random.PRNGKey(0)
    kx, kp = jax.random.split(key)
    x = jax.random.normal(kx, (B, C_IN, H, W), jnp.float32)
    params = init_params(kp)

    out = jax.block_until_ready(tree_forward(x, params))
    ref = jax.block_until_ready(reference(x, params))

    assert out.shape == (B, C_OUT, HO, WO)
    # bf16 MXU operands vs. f32 reference -> tolerance relaxed accordingly.
    max_err = jnp.max(jnp.abs(out - ref))
    if not jnp.allclose(out, ref, atol=5e-2, rtol=5e-2):
        raise AssertionError(
            f"kernel/reference mismatch, max abs err {max_err}")
    print("KERNEL_OK")
</pallas_src>

<mosaic_0001>
module attributes {stable_mosaic.version = 11 : i64} {
  func.func @tree_kernel(%arg0: i32, %arg1: memref<16x512xbf16, #tpu.memory_space<vmem>>, %arg2: memref<4x512x128xbf16, #tpu.memory_space<vmem>>, %arg3: memref<9x512x128xbf16, #tpu.memory_space<vmem>>, %arg4: memref<9x128x128xbf16, #tpu.memory_space<vmem>>, %arg5: memref<32x16xbf16, #tpu.memory_space<vmem>>, %arg6: memref<32x1xf32, #tpu.memory_space<vmem>>, %arg7: memref<32x144xbf16, #tpu.memory_space<vmem>>, %arg8: memref<32x1xf32, #tpu.memory_space<vmem>>, %arg9: memref<32x288xbf16, #tpu.memory_space<vmem>>, %arg10: memref<32x1xf32, #tpu.memory_space<vmem>>, %arg11: memref<32x288xbf16, #tpu.memory_space<vmem>>, %arg12: memref<32x1xf32, #tpu.memory_space<vmem>>, %arg13: memref<32x288xbf16, #tpu.memory_space<vmem>>, %arg14: memref<32x1xf32, #tpu.memory_space<vmem>>, %arg15: memref<32x64xbf16, #tpu.memory_space<vmem>>, %arg16: memref<32x1xf32, #tpu.memory_space<vmem>>, %arg17: memref<32x128xf32, #tpu.memory_space<vmem>>, %arg18: memref<288x128xbf16, #tpu.memory_space<vmem>>) attributes {dimension_semantics = [#tpu.dimension_semantics<parallel>], iteration_bounds = array<i64: 1>, scalar_prefetch = 0 : i64, scratch_operands = 1 : i64, tpu.core_type = #tpu.core_type<tc>, window_params = [{transform_indices = @transform_0, window_bounds = array<i64: 16, 512>}, {pipeline_mode = #tpu.pipeline_mode<synchronous>, transform_indices = @transform_1, window_bounds = array<i64: 4, 512, 128>}, {pipeline_mode = #tpu.pipeline_mode<synchronous>, transform_indices = @transform_2, window_bounds = array<i64: 9, 512, 128>}, {pipeline_mode = #tpu.pipeline_mode<synchronous>, transform_indices = @transform_3, window_bounds = array<i64: 9, 128, 128>}, {pipeline_mode = #tpu.pipeline_mode<synchronous>, transform_indices = @transform_4, window_bounds = array<i64: 32, 16>}, {pipeline_mode = #tpu.pipeline_mode<synchronous>, transform_indices = @transform_5, window_bounds = array<i64: 32, 1>}, {pipeline_mode = #tpu.pipeline_mode<synchronous>, transform_indices = @transform_6, window_bounds = array<i64: 32, 144>}, {pipeline_mode = #tpu.pipeline_mode<synchronous>, transform_indices = @transform_7, window_bounds = array<i64: 32, 1>}, {pipeline_mode = #tpu.pipeline_mode<synchronous>, transform_indices = @transform_8, window_bounds = array<i64: 32, 288>}, {pipeline_mode = #tpu.pipeline_mode<synchronous>, transform_indices = @transform_9, window_bounds = array<i64: 32, 1>}, {pipeline_mode = #tpu.pipeline_mode<synchronous>, transform_indices = @transform_10, window_bounds = array<i64: 32, 288>}, {pipeline_mode = #tpu.pipeline_mode<synchronous>, transform_indices = @transform_11, window_bounds = array<i64: 32, 1>}, {pipeline_mode = #tpu.pipeline_mode<synchronous>, transform_indices = @transform_12, window_bounds = array<i64: 32, 288>}, {pipeline_mode = #tpu.pipeline_mode<synchronous>, transform_indices = @transform_13, window_bounds = array<i64: 32, 1>}, {pipeline_mode = #tpu.pipeline_mode<synchronous>, transform_indices = @transform_14, window_bounds = array<i64: 32, 64>}, {pipeline_mode = #tpu.pipeline_mode<synchronous>, transform_indices = @transform_15, window_bounds = array<i64: 32, 1>}, {transform_indices = @transform_16, window_bounds = array<i64: 32, 128>}]} {
    %c0 = arith.constant 0 : index
    %c0_0 = arith.constant 0 : index
    %0 = vector.load %arg1[%c0, %c0_0] : memref<16x512xbf16, #tpu.memory_space<vmem>>, vector<16x512xbf16>
    %c0_1 = arith.constant 0 : index
    %c0_2 = arith.constant 0 : index
    %c0_3 = arith.constant 0 : index
    %1 = vector.load %arg2[%c0_1, %c0_2, %c0_3] : memref<4x512x128xbf16, #tpu.memory_space<vmem>>, vector<1x512x128xbf16>
    %2 = vector.shape_cast %1 : vector<1x512x128xbf16> to vector<512x128xbf16>
    %cst = arith.constant dense<0.000000e+00> : vector<16x128xf32>
    %3 = tpu.matmul %0, %2, %cst {dimension_numbers = #tpu.dot_dimension_numbers<[1], [0], [0], [1], [0, 0, 1, 1], [], []>} : vector<16x512xbf16>, vector<512x128xbf16>, vector<16x128xf32> -> vector<16x128xf32>
    %c1 = arith.constant 1 : index
    %c0_4 = arith.constant 0 : index
    %c0_5 = arith.constant 0 : index
    %4 = vector.load %arg2[%c1, %c0_4, %c0_5] : memref<4x512x128xbf16, #tpu.memory_space<vmem>>, vector<1x512x128xbf16>
    %5 = vector.shape_cast %4 : vector<1x512x128xbf16> to vector<512x128xbf16>
    %cst_6 = arith.constant dense<0.000000e+00> : vector<16x128xf32>
    %6 = tpu.matmul %0, %5, %cst_6 {dimension_numbers = #tpu.dot_dimension_numbers<[1], [0], [0], [1], [0, 0, 1, 1], [], []>} : vector<16x512xbf16>, vector<512x128xbf16>, vector<16x128xf32> -> vector<16x128xf32>
    %7 = arith.maximumf %3, %6 : vector<16x128xf32>
    %c2 = arith.constant 2 : index
    %c0_7 = arith.constant 0 : index
    %c0_8 = arith.constant 0 : index
    %8 = vector.load %arg2[%c2, %c0_7, %c0_8] : memref<4x512x128xbf16, #tpu.memory_space<vmem>>, vector<1x512x128xbf16>
    %9 = vector.shape_cast %8 : vector<1x512x128xbf16> to vector<512x128xbf16>
    %cst_9 = arith.constant dense<0.000000e+00> : vector<16x128xf32>
    %10 = tpu.matmul %0, %9, %cst_9 {dimension_numbers = #tpu.dot_dimension_numbers<[1], [0], [0], [1], [0, 0, 1, 1], [], []>} : vector<16x512xbf16>, vector<512x128xbf16>, vector<16x128xf32> -> vector<16x128xf32>
    %11 = arith.maximumf %7, %10 : vector<16x128xf32>
    %c3 = arith.constant 3 : index
    %c0_10 = arith.constant 0 : index
    %c0_11 = arith.constant 0 : index
    %12 = vector.load %arg2[%c3, %c0_10, %c0_11] : memref<4x512x128xbf16, #tpu.memory_space<vmem>>, vector<1x512x128xbf16>
    %13 = vector.shape_cast %12 : vector<1x512x128xbf16> to vector<512x128xbf16>
    %cst_12 = arith.constant dense<0.000000e+00> : vector<16x128xf32>
    %14 = tpu.matmul %0, %13, %cst_12 {dimension_numbers = #tpu.dot_dimension_numbers<[1], [0], [0], [1], [0, 0, 1, 1], [], []>} : vector<16x512xbf16>, vector<512x128xbf16>, vector<16x128xf32> -> vector<16x128xf32>
    %15 = arith.maximumf %11, %14 : vector<16x128xf32>
    %16 = arith.truncf %15 : vector<16x128xf32> to vector<16x128xbf16>
    %c0_13 = arith.constant 0 : index
    %c0_14 = arith.constant 0 : index
    %17 = vector.load %arg5[%c0_13, %c0_14] : memref<32x16xbf16, #tpu.memory_space<vmem>>, vector<32x16xbf16>
    %cst_15 = arith.constant dense<0.000000e+00> : vector<32x128xf32>
    %18 = tpu.matmul %17, %16, %cst_15 {dimension_numbers = #tpu.dot_dimension_numbers<[1], [0], [0], [1], [0, 0, 1, 1], [], []>} : vector<32x16xbf16>, vector<16x128xbf16>, vector<32x128xf32> -> vector<32x128xf32>
    %c0_16 = arith.constant 0 : index
    %c0_17 = arith.constant 0 : index
    %19 = vector.load %arg6[%c0_16, %c0_17] : memref<32x1xf32, #tpu.memory_space<vmem>>, vector<32x1xf32>
    %20 = vector.broadcast %19 : vector<32x1xf32> to vector<32x128xf32>
    %21 = arith.addf %18, %20 : vector<32x128xf32>
    %c0_18 = arith.constant 0 : index
    %c0_19 = arith.constant 0 : index
    %c0_20 = arith.constant 0 : index
    %22 = vector.load %arg3[%c0_18, %c0_19, %c0_20] : memref<9x512x128xbf16, #tpu.memory_space<vmem>>, vector<1x512x128xbf16>
    %23 = vector.shape_cast %22 : vector<1x512x128xbf16> to vector<512x128xbf16>
    %cst_21 = arith.constant dense<0.000000e+00> : vector<16x128xf32>
    %24 = tpu.matmul %0, %23, %cst_21 {dimension_numbers = #tpu.dot_dimension_numbers<[1], [0], [0], [1], [0, 0, 1, 1], [], []>} : vector<16x512xbf16>, vector<512x128xbf16>, vector<16x128xf32> -> vector<16x128xf32>
    %25 = arith.truncf %24 : vector<16x128xf32> to vector<16x128xbf16>
    %c0_22 = arith.constant 0 : index
    %c0_23 = arith.constant 0 : index
    %26 = vector.load %arg18[%c0_22, %c0_23] : memref<288x128xbf16, #tpu.memory_space<vmem>>, vector<16x128xbf16>
    tpu.vector_store %arg18[%c0_22, %c0_23], %25 {strides = array<i32>} : memref<288x128xbf16, #tpu.memory_space<vmem>>, vector<16x128xbf16>,
    %c1_24 = arith.constant 1 : index
    %c0_25 = arith.constant 0 : index
    %c0_26 = arith.constant 0 : index
    %27 = vector.load %arg3[%c1_24, %c0_25, %c0_26] : memref<9x512x128xbf16, #tpu.memory_space<vmem>>, vector<1x512x128xbf16>
    %28 = vector.shape_cast %27 : vector<1x512x128xbf16> to vector<512x128xbf16>
    %cst_27 = arith.constant dense<0.000000e+00> : vector<16x128xf32>
    %29 = tpu.matmul %0, %28, %cst_27 {dimension_numbers = #tpu.dot_dimension_numbers<[1], [0], [0], [1], [0, 0, 1, 1], [], []>} : vector<16x512xbf16>, vector<512x128xbf16>, vector<16x128xf32> -> vector<16x128xf32>
    %30 = arith.truncf %29 : vector<16x128xf32> to vector<16x128xbf16>
    %c16 = arith.constant 16 : index
    %c0_28 = arith.constant 0 : index
    %31 = vector.load %arg18[%c16, %c0_28] : memref<288x128xbf16, #tpu.memory_space<vmem>>, vector<16x128xbf16>
    tpu.vector_store %arg18[%c16, %c0_28], %30 {strides = array<i32>} : memref<288x128xbf16, #tpu.memory_space<vmem>>, vector<16x128xbf16>,
    %c2_29 = arith.constant 2 : index
    %c0_30 = arith.constant 0 : index
    %c0_31 = arith.constant 0 : index
    %32 = vector.load %arg3[%c2_29, %c0_30, %c0_31] : memref<9x512x128xbf16, #tpu.memory_space<vmem>>, vector<1x512x128xbf16>
    %33 = vector.shape_cast %32 : vector<1x512x128xbf16> to vector<512x128xbf16>
    %cst_32 = arith.constant dense<0.000000e+00> : vector<16x128xf32>
    %34 = tpu.matmul %0, %33, %cst_32 {dimension_numbers = #tpu.dot_dimension_numbers<[1], [0], [0], [1], [0, 0, 1, 1], [], []>} : vector<16x512xbf16>, vector<512x128xbf16>, vector<16x128xf32> -> vector<16x128xf32>
    %35 = arith.truncf %34 : vector<16x128xf32> to vector<16x128xbf16>
    %c32 = arith.constant 32 : index
    %c0_33 = arith.constant 0 : index
    %36 = vector.load %arg18[%c32, %c0_33] : memref<288x128xbf16, #tpu.memory_space<vmem>>, vector<16x128xbf16>
    tpu.vector_store %arg18[%c32, %c0_33], %35 {strides = array<i32>} : memref<288x128xbf16, #tpu.memory_space<vmem>>, vector<16x128xbf16>,
    %c3_34 = arith.constant 3 : index
    %c0_35 = arith.constant 0 : index
    %c0_36 = arith.constant 0 : index
    %37 = vector.load %arg3[%c3_34, %c0_35, %c0_36] : memref<9x512x128xbf16, #tpu.memory_space<vmem>>, vector<1x512x128xbf16>
    %38 = vector.shape_cast %37 : vector<1x512x128xbf16> to vector<512x128xbf16>
    %cst_37 = arith.constant dense<0.000000e+00> : vector<16x128xf32>
    %39 = tpu.matmul %0, %38, %cst_37 {dimension_numbers = #tpu.dot_dimension_numbers<[1], [0], [0], [1], [0, 0, 1, 1], [], []>} : vector<16x512xbf16>, vector<512x128xbf16>, vector<16x128xf32> -> vector<16x128xf32>
    %40 = arith.truncf %39 : vector<16x128xf32> to vector<16x128xbf16>
    %c48 = arith.constant 48 : index
    %c0_38 = arith.constant 0 : index
    %41 = vector.load %arg18[%c48, %c0_38] : memref<288x128xbf16, #tpu.memory_space<vmem>>, vector<16x128xbf16>
    tpu.vector_store %arg18[%c48, %c0_38], %40 {strides = array<i32>} : memref<288x128xbf16, #tpu.memory_space<vmem>>, vector<16x128xbf16>,
    %c4 = arith.constant 4 : index
    %c0_39 = arith.constant 0 : index
    %c0_40 = arith.constant 0 : index
    %42 = vector.load %arg3[%c4, %c0_39, %c0_40] : memref<9x512x128xbf16, #tpu.memory_space<vmem>>, vector<1x512x128xbf16>
    %43 = vector.shape_cast %42 : vector<1x512x128xbf16> to vector<512x128xbf16>
    %cst_41 = arith.constant dense<0.000000e+00> : vector<16x128xf32>
    %44 = tpu.matmul %0, %43, %cst_41 {dimension_numbers = #tpu.dot_dimension_numbers<[1], [0], [0], [1], [0, 0, 1, 1], [], []>} : vector<16x512xbf16>, vector<512x128xbf16>, vector<16x128xf32> -> vector<16x128xf32>
    %45 = arith.truncf %44 : vector<16x128xf32> to vector<16x128xbf16>
    %c64 = arith.constant 64 : index
    %c0_42 = arith.constant 0 : index
    %46 = vector.load %arg18[%c64, %c0_42] : memref<288x128xbf16, #tpu.memory_space<vmem>>, vector<16x128xbf16>
    tpu.vector_store %arg18[%c64, %c0_42], %45 {strides = array<i32>} : memref<288x128xbf16, #tpu.memory_space<vmem>>, vector<16x128xbf16>,
    %c5 = arith.constant 5 : index
    %c0_43 = arith.constant 0 : index
    %c0_44 = arith.constant 0 : index
    %47 = vector.load %arg3[%c5, %c0_43, %c0_44] : memref<9x512x128xbf16, #tpu.memory_space<vmem>>, vector<1x512x128xbf16>
    %48 = vector.shape_cast %47 : vector<1x512x128xbf16> to vector<512x128xbf16>
    %cst_45 = arith.constant dense<0.000000e+00> : vector<16x128xf32>
    %49 = tpu.matmul %0, %48, %cst_45 {dimension_numbers = #tpu.dot_dimension_numbers<[1], [0], [0], [1], [0, 0, 1, 1], [], []>} : vector<16x512xbf16>, vector<512x128xbf16>, vector<16x128xf32> -> vector<16x128xf32>
    %50 = arith.truncf %49 : vector<16x128xf32> to vector<16x128xbf16>
    %c80 = arith.constant 80 : index
    %c0_46 = arith.constant 0 : index
    %51 = vector.load %arg18[%c80, %c0_46] : memref<288x128xbf16, #tpu.memory_space<vmem>>, vector<16x128xbf16>
    tpu.vector_store %arg18[%c80, %c0_46], %50 {strides = array<i32>} : memref<288x128xbf16, #tpu.memory_space<vmem>>, vector<16x128xbf16>,
    %c6 = arith.constant 6 : index
    %c0_47 = arith.constant 0 : index
    %c0_48 = arith.constant 0 : index
    %52 = vector.load %arg3[%c6, %c0_47, %c0_48] : memref<9x512x128xbf16, #tpu.memory_space<vmem>>, vector<1x512x128xbf16>
    %53 = vector.shape_cast %52 : vector<1x512x128xbf16> to vector<512x128xbf16>
    %cst_49 = arith.constant dense<0.000000e+00> : vector<16x128xf32>
    %54 = tpu.matmul %0, %53, %cst_49 {dimension_numbers = #tpu.dot_dimension_numbers<[1], [0], [0], [1], [0, 0, 1, 1], [], []>} : vector<16x512xbf16>, vector<512x128xbf16>, vector<16x128xf32> -> vector<16x128xf32>
    %55 = arith.truncf %54 : vector<16x128xf32> to vector<16x128xbf16>
    %c96 = arith.constant 96 : index
    %c0_50 = arith.constant 0 : index
    %56 = vector.load %arg18[%c96, %c0_50] : memref<288x128xbf16, #tpu.memory_space<vmem>>, vector<16x128xbf16>
    tpu.vector_store %arg18[%c96, %c0_50], %55 {strides = array<i32>} : memref<288x128xbf16, #tpu.memory_space<vmem>>, vector<16x128xbf16>,
    %c7 = arith.constant 7 : index
    %c0_51 = arith.constant 0 : index
    %c0_52 = arith.constant 0 : index
    %57 = vector.load %arg3[%c7, %c0_51, %c0_52] : memref<9x512x128xbf16, #tpu.memory_space<vmem>>, vector<1x512x128xbf16>
    %58 = vector.shape_cast %57 : vector<1x512x128xbf16> to vector<512x128xbf16>
    %cst_53 = arith.constant dense<0.000000e+00> : vector<16x128xf32>
    %59 = tpu.matmul %0, %58, %cst_53 {dimension_numbers = #tpu.dot_dimension_numbers<[1], [0], [0], [1], [0, 0, 1, 1], [], []>} : vector<16x512xbf16>, vector<512x128xbf16>, vector<16x128xf32> -> vector<16x128xf32>
    %60 = arith.truncf %59 : vector<16x128xf32> to vector<16x128xbf16>
    %c112 = arith.constant 112 : index
    %c0_54 = arith.constant 0 : index
    %61 = vector.load %arg18[%c112, %c0_54] : memref<288x128xbf16, #tpu.memory_space<vmem>>, vector<16x128xbf16>
    tpu.vector_store %arg18[%c112, %c0_54], %60 {strides = array<i32>} : memref<288x128xbf16, #tpu.memory_space<vmem>>, vector<16x128xbf16>,
    %c8 = arith.constant 8 : index
    %c0_55 = arith.constant 0 : index
    %c0_56 = arith.constant 0 : index
    %62 = vector.load %arg3[%c8, %c0_55, %c0_56] : memref<9x512x128xbf16, #tpu.memory_space<vmem>>, vector<1x512x128xbf16>
    %63 = vector.shape_cast %62 : vector<1x512x128xbf16> to vector<512x128xbf16>
    %cst_57 = arith.constant dense<0.000000e+00> : vector<16x128xf32>
    %64 = tpu.matmul %0, %63, %cst_57 {dimension_numbers = #tpu.dot_dimension_numbers<[1], [0], [0], [1], [0, 0, 1, 1], [], []>} : vector<16x512xbf16>, vector<512x128xbf16>, vector<16x128xf32> -> vector<16x128xf32>
    %65 = arith.truncf %64 : vector<16x128xf32> to vector<16x128xbf16>
    %c128 = arith.constant 128 : index
    %c0_58 = arith.constant 0 : index
    %66 = vector.load %arg18[%c128, %c0_58] : memref<288x128xbf16, #tpu.memory_space<vmem>>, vector<16x128xbf16>
    tpu.vector_store %arg18[%c128, %c0_58], %65 {strides = array<i32>} : memref<288x128xbf16, #tpu.memory_space<vmem>>, vector<16x128xbf16>,
    %c0_59 = arith.constant 0 : index
    %c0_60 = arith.constant 0 : index
    %67 = vector.load %arg7[%c0_59, %c0_60] : memref<32x144xbf16, #tpu.memory_space<vmem>>, vector<32x144xbf16>
    %c0_61 = arith.constant 0 : index
    %c0_62 = arith.constant 0 : index
    %68 = vector.load %arg18[%c0_61, %c0_62] : memref<288x128xbf16, #tpu.memory_space<vmem>>, vector<144x128xbf16>
    %cst_63 = arith.constant dense<0.000000e+00> : vector<32x128xf32>
    %69 = tpu.matmul %67, %68, %cst_63 {dimension_numbers = #tpu.dot_dimension_numbers<[1], [0], [0], [1], [0, 0, 1, 1], [], []>} : vector<32x144xbf16>, vector<144x128xbf16>, vector<32x128xf32> -> vector<32x128xf32>
    %c0_64 = arith.constant 0 : index
    %c0_65 = arith.constant 0 : index
    %70 = vector.load %arg8[%c0_64, %c0_65] : memref<32x1xf32, #tpu.memory_space<vmem>>, vector<32x1xf32>
    %71 = vector.broadcast %70 : vector<32x1xf32> to vector<32x128xf32>
    %72 = arith.addf %69, %71 : vector<32x128xf32>
    %cst_66 = arith.constant 0.000000e+00 : f32
    %73 = vector.broadcast %cst_66 : f32 to vector<32x128xf32>
    %74 = arith.maximumf %72, %73 : vector<32x128xf32>
    %75 = arith.truncf %74 : vector<32x128xf32> to vector<32x128xbf16>
    %c0_67 = arith.constant 0 : index
    %c0_68 = arith.constant 0 : index
    %c0_69 = arith.constant 0 : index
    %76 = vector.load %arg4[%c0_67, %c0_68, %c0_69] : memref<9x128x128xbf16, #tpu.memory_space<vmem>>, vector<1x128x128xbf16>
    %77 = vector.shape_cast %76 : vector<1x128x128xbf16> to vector<128x128xbf16>
    %cst_70 = arith.constant dense<0.000000e+00> : vector<32x128xf32>
    %78 = tpu.matmul %75, %77, %cst_70 {dimension_numbers = #tpu.dot_dimension_numbers<[1], [0], [0], [1], [0, 0, 1, 1], [], []>} : vector<32x128xbf16>, vector<128x128xbf16>, vector<32x128xf32> -> vector<32x128xf32>
    %79 = arith.truncf %78 : vector<32x128xf32> to vector<32x128xbf16>
    %c0_71 = arith.constant 0 : index
    %c0_72 = arith.constant 0 : index
    %80 = vector.load %arg18[%c0_71, %c0_72] : memref<288x128xbf16, #tpu.memory_space<vmem>>, vector<32x128xbf16>
    tpu.vector_store %arg18[%c0_71, %c0_72], %79 {strides = array<i32>} : memref<288x128xbf16, #tpu.memory_space<vmem>>, vector<32x128xbf16>,
    %c1_73 = arith.constant 1 : index
    %c0_74 = arith.constant 0 : index
    %c0_75 = arith.constant 0 : index
    %81 = vector.load %arg4[%c1_73, %c0_74, %c0_75] : memref<9x128x128xbf16, #tpu.memory_space<vmem>>, vector<1x128x128xbf16>
    %82 = vector.shape_cast %81 : vector<1x128x128xbf16> to vector<128x128xbf16>
    %cst_76 = arith.constant dense<0.000000e+00> : vector<32x128xf32>
    %83 = tpu.matmul %75, %82, %cst_76 {dimension_numbers = #tpu.dot_dimension_numbers<[1], [0], [0], [1], [0, 0, 1, 1], [], []>} : vector<32x128xbf16>, vector<128x128xbf16>, vector<32x128xf32> -> vector<32x128xf32>
    %84 = arith.truncf %83 : vector<32x128xf32> to vector<32x128xbf16>
    %c32_77 = arith.constant 32 : index
    %c0_78 = arith.constant 0 : index
    %85 = vector.load %arg18[%c32_77, %c0_78] : memref<288x128xbf16, #tpu.memory_space<vmem>>, vector<32x128xbf16>
    tpu.vector_store %arg18[%c32_77, %c0_78], %84 {strides = array<i32>} : memref<288x128xbf16, #tpu.memory_space<vmem>>, vector<32x128xbf16>,
    %c2_79 = arith.constant 2 : index
    %c0_80 = arith.constant 0 : index
    %c0_81 = arith.constant 0 : index
    %86 = vector.load %arg4[%c2_79, %c0_80, %c0_81] : memref<9x128x128xbf16, #tpu.memory_space<vmem>>, vector<1x128x128xbf16>
    %87 = vector.shape_cast %86 : vector<1x128x128xbf16> to vector<128x128xbf16>
    %cst_82 = arith.constant dense<0.000000e+00> : vector<32x128xf32>
    %88 = tpu.matmul %75, %87, %cst_82 {dimension_numbers = #tpu.dot_dimension_numbers<[1], [0], [0], [1], [0, 0, 1, 1], [], []>} : vector<32x128xbf16>, vector<128x128xbf16>, vector<32x128xf32> -> vector<32x128xf32>
    %89 = arith.truncf %88 : vector<32x128xf32> to vector<32x128xbf16>
    %c64_83 = arith.constant 64 : index
    %c0_84 = arith.constant 0 : index
    %90 = vector.load %arg18[%c64_83, %c0_84] : memref<288x128xbf16, #tpu.memory_space<vmem>>, vector<32x128xbf16>
    tpu.vector_store %arg18[%c64_83, %c0_84], %89 {strides = array<i32>} : memref<288x128xbf16, #tpu.memory_space<vmem>>, vector<32x128xbf16>,
    %c3_85 = arith.constant 3 : index
    %c0_86 = arith.constant 0 : index
    %c0_87 = arith.constant 0 : index
    %91 = vector.load %arg4[%c3_85, %c0_86, %c0_87] : memref<9x128x128xbf16, #tpu.memory_space<vmem>>, vector<1x128x128xbf16>
    %92 = vector.shape_cast %91 : vector<1x128x128xbf16> to vector<128x128xbf16>
    %cst_88 = arith.constant dense<0.000000e+00> : vector<32x128xf32>
    %93 = tpu.matmul %75, %92, %cst_88 {dimension_numbers = #tpu.dot_dimension_numbers<[1], [0], [0], [1], [0, 0, 1, 1], [], []>} : vector<32x128xbf16>, vector<128x128xbf16>, vector<32x128xf32> -> vector<32x128xf32>
    %94 = arith.truncf %93 : vector<32x128xf32> to vector<32x128xbf16>
    %c96_89 = arith.constant 96 : index
    %c0_90 = arith.constant 0 : index
    %95 = vector.load %arg18[%c96_89, %c0_90] : memref<288x128xbf16, #tpu.memory_space<vmem>>, vector<32x128xbf16>
    tpu.vector_store %arg18[%c96_89, %c0_90], %94 {strides = array<i32>} : memref<288x128xbf16, #tpu.memory_space<vmem>>, vector<32x128xbf16>,
    %c4_91 = arith.constant 4 : index
    %c0_92 = arith.constant 0 : index
    %c0_93 = arith.constant 0 : index
    %96 = vector.load %arg4[%c4_91, %c0_92, %c0_93] : memref<9x128x128xbf16, #tpu.memory_space<vmem>>, vector<1x128x128xbf16>
    %97 = vector.shape_cast %96 : vector<1x128x128xbf16> to vector<128x128xbf16>
    %cst_94 = arith.constant dense<0.000000e+00> : vector<32x128xf32>
    %98 = tpu.matmul %75, %97, %cst_94 {dimension_numbers = #tpu.dot_dimension_numbers<[1], [0], [0], [1], [0, 0, 1, 1], [], []>} : vector<32x128xbf16>, vector<128x128xbf16>, vector<32x128xf32> -> vector<32x128xf32>
    %99 = arith.truncf %98 : vector<32x128xf32> to vector<32x128xbf16>
    %c128_95 = arith.constant 128 : index
    %c0_96 = arith.constant 0 : index
    %100 = vector.load %arg18[%c128_95, %c0_96] : memref<288x128xbf16, #tpu.memory_space<vmem>>, vector<32x128xbf16>
    tpu.vector_store %arg18[%c128_95, %c0_96], %99 {strides = array<i32>} : memref<288x128xbf16, #tpu.memory_space<vmem>>, vector<32x128xbf16>,
    %c5_97 = arith.constant 5 : index
    %c0_98 = arith.constant 0 : index
    %c0_99 = arith.constant 0 : index
    %101 = vector.load %arg4[%c5_97, %c0_98, %c0_99] : memref<9x128x128xbf16, #tpu.memory_space<vmem>>, vector<1x128x128xbf16>
    %102 = vector.shape_cast %101 : vector<1x128x128xbf16> to vector<128x128xbf16>
    %cst_100 = arith.constant dense<0.000000e+00> : vector<32x128xf32>
    %103 = tpu.matmul %75, %102, %cst_100 {dimension_numbers = #tpu.dot_dimension_numbers<[1], [0], [0], [1], [0, 0, 1, 1], [], []>} : vector<32x128xbf16>, vector<128x128xbf16>, vector<32x128xf32> -> vector<32x128xf32>
    %104 = arith.truncf %103 : vector<32x128xf32> to vector<32x128xbf16>
    %c160 = arith.constant 160 : index
    %c0_101 = arith.constant 0 : index
    %105 = vector.load %arg18[%c160, %c0_101] : memref<288x128xbf16, #tpu.memory_space<vmem>>, vector<32x128xbf16>
    tpu.vector_store %arg18[%c160, %c0_101], %104 {strides = array<i32>} : memref<288x128xbf16, #tpu.memory_space<vmem>>, vector<32x128xbf16>,
    %c6_102 = arith.constant 6 : index
    %c0_103 = arith.constant 0 : index
    %c0_104 = arith.constant 0 : index
    %106 = vector.load %arg4[%c6_102, %c0_103, %c0_104] : memref<9x128x128xbf16, #tpu.memory_space<vmem>>, vector<1x128x128xbf16>
    %107 = vector.shape_cast %106 : vector<1x128x128xbf16> to vector<128x128xbf16>
    %cst_105 = arith.constant dense<0.000000e+00> : vector<32x128xf32>
    %108 = tpu.matmul %75, %107, %cst_105 {dimension_numbers = #tpu.dot_dimension_numbers<[1], [0], [0], [1], [0, 0, 1, 1], [], []>} : vector<32x128xbf16>, vector<128x128xbf16>, vector<32x128xf32> -> vector<32x128xf32>
    %109 = arith.truncf %108 : vector<32x128xf32> to vector<32x128xbf16>
    %c192 = arith.constant 192 : index
    %c0_106 = arith.constant 0 : index
    %110 = vector.load %arg18[%c192, %c0_106] : memref<288x128xbf16, #tpu.memory_space<vmem>>, vector<32x128xbf16>
    tpu.vector_store %arg18[%c192, %c0_106], %109 {strides = array<i32>} : memref<288x128xbf16, #tpu.memory_space<vmem>>, vector<32x128xbf16>,
    %c7_107 = arith.constant 7 : index
    %c0_108 = arith.constant 0 : index
    %c0_109 = arith.constant 0 : index
    %111 = vector.load %arg4[%c7_107, %c0_108, %c0_109] : memref<9x128x128xbf16, #tpu.memory_space<vmem>>, vector<1x128x128xbf16>
    %112 = vector.shape_cast %111 : vector<1x128x128xbf16> to vector<128x128xbf16>
    %cst_110 = arith.constant dense<0.000000e+00> : vector<32x128xf32>
    %113 = tpu.matmul %75, %112, %cst_110 {dimension_numbers = #tpu.dot_dimension_numbers<[1], [0], [0], [1], [0, 0, 1, 1], [], []>} : vector<32x128xbf16>, vector<128x128xbf16>, vector<32x128xf32> -> vector<32x128xf32>
    %114 = arith.truncf %113 : vector<32x128xf32> to vector<32x128xbf16>
    %c224 = arith.constant 224 : index
    %c0_111 = arith.constant 0 : index
    %115 = vector.load %arg18[%c224, %c0_111] : memref<288x128xbf16, #tpu.memory_space<vmem>>, vector<32x128xbf16>
    tpu.vector_store %arg18[%c224, %c0_111], %114 {strides = array<i32>} : memref<288x128xbf16, #tpu.memory_space<vmem>>, vector<32x128xbf16>,
    %c8_112 = arith.constant 8 : index
    %c0_113 = arith.constant 0 : index
    %c0_114 = arith.constant 0 : index
    %116 = vector.load %arg4[%c8_112, %c0_113, %c0_114] : memref<9x128x128xbf16, #tpu.memory_space<vmem>>, vector<1x128x128xbf16>
    %117 = vector.shape_cast %116 : vector<1x128x128xbf16> to vector<128x128xbf16>
    %cst_115 = arith.constant dense<0.000000e+00> : vector<32x128xf32>
    %118 = tpu.matmul %75, %117, %cst_115 {dimension_numbers = #tpu.dot_dimension_numbers<[1], [0], [0], [1], [0, 0, 1, 1], [], []>} : vector<32x128xbf16>, vector<128x128xbf16>, vector<32x128xf32> -> vector<32x128xf32>
    %119 = arith.truncf %118 : vector<32x128xf32> to vector<32x128xbf16>
    %c256 = arith.constant 256 : index
    %c0_116 = arith.constant 0 : index
    %120 = vector.load %arg18[%c256, %c0_116] : memref<288x128xbf16, #tpu.memory_space<vmem>>, vector<32x128xbf16>
    tpu.vector_store %arg18[%c256, %c0_116], %119 {strides = array<i32>} : memref<288x128xbf16, #tpu.memory_space<vmem>>, vector<32x128xbf16>,
    %c0_117 = arith.constant 0 : index
    %c0_118 = arith.constant 0 : index
    %121 = vector.load %arg9[%c0_117, %c0_118] : memref<32x288xbf16, #tpu.memory_space<vmem>>, vector<32x288xbf16>
    %c0_119 = arith.constant 0 : index
    %c0_120 = arith.constant 0 : index
    %122 = vector.load %arg18[%c0_119, %c0_120] : memref<288x128xbf16, #tpu.memory_space<vmem>>, vector<288x128xbf16>
    %cst_121 = arith.constant dense<0.000000e+00> : vector<32x128xf32>
    %123 = tpu.matmul %121, %122, %cst_121 {dimension_numbers = #tpu.dot_dimension_numbers<[1], [0], [0], [1], [0, 0, 1, 1], [], []>} : vector<32x288xbf16>, vector<288x128xbf16>, vector<32x128xf32> -> vector<32x128xf32>
    %c0_122 = arith.constant 0 : index
    %c0_123 = arith.constant 0 : index
    %124 = vector.load %arg10[%c0_122, %c0_123] : memref<32x1xf32, #tpu.memory_space<vmem>>, vector<32x1xf32>
    %125 = vector.broadcast %124 : vector<32x1xf32> to vector<32x128xf32>
    %126 = arith.addf %123, %125 : vector<32x128xf32>
    %127 = arith.addf %126, %21 : vector<32x128xf32>
    %cst_124 = arith.constant 0.000000e+00 : f32
    %128 = vector.broadcast %cst_124 : f32 to vector<32x128xf32>
    %129 = arith.maximumf %127, %128 : vector<32x128xf32>
    %130 = arith.truncf %129 : vector<32x128xf32> to vector<32x128xbf16>
    %c0_125 = arith.constant 0 : index
    %c0_126 = arith.constant 0 : index
    %c0_127 = arith.constant 0 : index
    %131 = vector.load %arg4[%c0_125, %c0_126, %c0_127] : memref<9x128x128xbf16, #tpu.memory_space<vmem>>, vector<1x128x128xbf16>
    %132 = vector.shape_cast %131 : vector<1x128x128xbf16> to vector<128x128xbf16>
    %cst_128 = arith.constant dense<0.000000e+00> : vector<32x128xf32>
    %133 = tpu.matmul %130, %132, %cst_128 {dimension_numbers = #tpu.dot_dimension_numbers<[1], [0], [0], [1], [0, 0, 1, 1], [], []>} : vector<32x128xbf16>, vector<128x128xbf16>, vector<32x128xf32> -> vector<32x128xf32>
    %134 = arith.truncf %133 : vector<32x128xf32> to vector<32x128xbf16>
    %c0_129 = arith.constant 0 : index
    %c0_130 = arith.constant 0 : index
    %135 = vector.load %arg18[%c0_129, %c0_130] : memref<288x128xbf16, #tpu.memory_space<vmem>>, vector<32x128xbf16>
    tpu.vector_store %arg18[%c0_129, %c0_130], %134 {strides = array<i32>} : memref<288x128xbf16, #tpu.memory_space<vmem>>, vector<32x128xbf16>,
    %c1_131 = arith.constant 1 : index
    %c0_132 = arith.constant 0 : index
    %c0_133 = arith.constant 0 : index
    %136 = vector.load %arg4[%c1_131, %c0_132, %c0_133] : memref<9x128x128xbf16, #tpu.memory_space<vmem>>, vector<1x128x128xbf16>
    %137 = vector.shape_cast %136 : vector<1x128x128xbf16> to vector<128x128xbf16>
    %cst_134 = arith.constant dense<0.000000e+00> : vector<32x128xf32>
    %138 = tpu.matmul %130, %137, %cst_134 {dimension_numbers = #tpu.dot_dimension_numbers<[1], [0], [0], [1], [0, 0, 1, 1], [], []>} : vector<32x128xbf16>, vector<128x128xbf16>, vector<32x128xf32> -> vector<32x128xf32>
    %139 = arith.truncf %138 : vector<32x128xf32> to vector<32x128xbf16>
    %c32_135 = arith.constant 32 : index
    %c0_136 = arith.constant 0 : index
    %140 = vector.load %arg18[%c32_135, %c0_136] : memref<288x128xbf16, #tpu.memory_space<vmem>>, vector<32x128xbf16>
    tpu.vector_store %arg18[%c32_135, %c0_136], %139 {strides = array<i32>} : memref<288x128xbf16, #tpu.memory_space<vmem>>, vector<32x128xbf16>,
    %c2_137 = arith.constant 2 : index
    %c0_138 = arith.constant 0 : index
    %c0_139 = arith.constant 0 : index
    %141 = vector.load %arg4[%c2_137, %c0_138, %c0_139] : memref<9x128x128xbf16, #tpu.memory_space<vmem>>, vector<1x128x128xbf16>
    %142 = vector.shape_cast %141 : vector<1x128x128xbf16> to vector<128x128xbf16>
    %cst_140 = arith.constant dense<0.000000e+00> : vector<32x128xf32>
    %143 = tpu.matmul %130, %142, %cst_140 {dimension_numbers = #tpu.dot_dimension_numbers<[1], [0], [0], [1], [0, 0, 1, 1], [], []>} : vector<32x128xbf16>, vector<128x128xbf16>, vector<32x128xf32> -> vector<32x128xf32>
    %144 = arith.truncf %143 : vector<32x128xf32> to vector<32x128xbf16>
    %c64_141 = arith.constant 64 : index
    %c0_142 = arith.constant 0 : index
    %145 = vector.load %arg18[%c64_141, %c0_142] : memref<288x128xbf16, #tpu.memory_space<vmem>>, vector<32x128xbf16>
    tpu.vector_store %arg18[%c64_141, %c0_142], %144 {strides = array<i32>} : memref<288x128xbf16, #tpu.memory_space<vmem>>, vector<32x128xbf16>,
    %c3_143 = arith.constant 3 : index
    %c0_144 = arith.constant 0 : index
    %c0_145 = arith.constant 0 : index
    %146 = vector.load %arg4[%c3_143, %c0_144, %c0_145] : memref<9x128x128xbf16, #tpu.memory_space<vmem>>, vector<1x128x128xbf16>
    %147 = vector.shape_cast %146 : vector<1x128x128xbf16> to vector<128x128xbf16>
    %cst_146 = arith.constant dense<0.000000e+00> : vector<32x128xf32>
    %148 = tpu.matmul %130, %147, %cst_146 {dimension_numbers = #tpu.dot_dimension_numbers<[1], [0], [0], [1], [0, 0, 1, 1], [], []>} : vector<32x128xbf16>, vector<128x128xbf16>, vector<32x128xf32> -> vector<32x128xf32>
    %149 = arith.truncf %148 : vector<32x128xf32> to vector<32x128xbf16>
    %c96_147 = arith.constant 96 : index
    %c0_148 = arith.constant 0 : index
    %150 = vector.load %arg18[%c96_147, %c0_148] : memref<288x128xbf16, #tpu.memory_space<vmem>>, vector<32x128xbf16>
    tpu.vector_store %arg18[%c96_147, %c0_148], %149 {strides = array<i32>} : memref<288x128xbf16, #tpu.memory_space<vmem>>, vector<32x128xbf16>,
    %c4_149 = arith.constant 4 : index
    %c0_150 = arith.constant 0 : index
    %c0_151 = arith.constant 0 : index
    %151 = vector.load %arg4[%c4_149, %c0_150, %c0_151] : memref<9x128x128xbf16, #tpu.memory_space<vmem>>, vector<1x128x128xbf16>
    %152 = vector.shape_cast %151 : vector<1x128x128xbf16> to vector<128x128xbf16>
    %cst_152 = arith.constant dense<0.000000e+00> : vector<32x128xf32>
    %153 = tpu.matmul %130, %152, %cst_152 {dimension_numbers = #tpu.dot_dimension_numbers<[1], [0], [0], [1], [0, 0, 1, 1], [], []>} : vector<32x128xbf16>, vector<128x128xbf16>, vector<32x128xf32> -> vector<32x128xf32>
    %154 = arith.truncf %153 : vector<32x128xf32> to vector<32x128xbf16>
    %c128_153 = arith.constant 128 : index
    %c0_154 = arith.constant 0 : index
    %155 = vector.load %arg18[%c128_153, %c0_154] : memref<288x128xbf16, #tpu.memory_space<vmem>>, vector<32x128xbf16>
    tpu.vector_store %arg18[%c128_153, %c0_154], %154 {strides = array<i32>} : memref<288x128xbf16, #tpu.memory_space<vmem>>, vector<32x128xbf16>,
    %c5_155 = arith.constant 5 : index
    %c0_156 = arith.constant 0 : index
    %c0_157 = arith.constant 0 : index
    %156 = vector.load %arg4[%c5_155, %c0_156, %c0_157] : memref<9x128x128xbf16, #tpu.memory_space<vmem>>, vector<1x128x128xbf16>
    %157 = vector.shape_cast %156 : vector<1x128x128xbf16> to vector<128x128xbf16>
    %cst_158 = arith.constant dense<0.000000e+00> : vector<32x128xf32>
    %158 = tpu.matmul %130, %157, %cst_158 {dimension_numbers = #tpu.dot_dimension_numbers<[1], [0], [0], [1], [0, 0, 1, 1], [], []>} : vector<32x128xbf16>, vector<128x128xbf16>, vector<32x128xf32> -> vector<32x128xf32>
    %159 = arith.truncf %158 : vector<32x128xf32> to vector<32x128xbf16>
    %c160_159 = arith.constant 160 : index
    %c0_160 = arith.constant 0 : index
    %160 = vector.load %arg18[%c160_159, %c0_160] : memref<288x128xbf16, #tpu.memory_space<vmem>>, vector<32x128xbf16>
    tpu.vector_store %arg18[%c160_159, %c0_160], %159 {strides = array<i32>} : memref<288x128xbf16, #tpu.memory_space<vmem>>, vector<32x128xbf16>,
    %c6_161 = arith.constant 6 : index
    %c0_162 = arith.constant 0 : index
    %c0_163 = arith.constant 0 : index
    %161 = vector.load %arg4[%c6_161, %c0_162, %c0_163] : memref<9x128x128xbf16, #tpu.memory_space<vmem>>, vector<1x128x128xbf16>
    %162 = vector.shape_cast %161 : vector<1x128x128xbf16> to vector<128x128xbf16>
    %cst_164 = arith.constant dense<0.000000e+00> : vector<32x128xf32>
    %163 = tpu.matmul %130, %162, %cst_164 {dimension_numbers = #tpu.dot_dimension_numbers<[1], [0], [0], [1], [0, 0, 1, 1], [], []>} : vector<32x128xbf16>, vector<128x128xbf16>, vector<32x128xf32> -> vector<32x128xf32>
    %164 = arith.truncf %163 : vector<32x128xf32> to vector<32x128xbf16>
    %c192_165 = arith.constant 192 : index
    %c0_166 = arith.constant 0 : index
    %165 = vector.load %arg18[%c192_165, %c0_166] : memref<288x128xbf16, #tpu.memory_space<vmem>>, vector<32x128xbf16>
    tpu.vector_store %arg18[%c192_165, %c0_166], %164 {strides = array<i32>} : memref<288x128xbf16, #tpu.memory_space<vmem>>, vector<32x128xbf16>,
    %c7_167 = arith.constant 7 : index
    %c0_168 = arith.constant 0 : index
    %c0_169 = arith.constant 0 : index
    %166 = vector.load %arg4[%c7_167, %c0_168, %c0_169] : memref<9x128x128xbf16, #tpu.memory_space<vmem>>, vector<1x128x128xbf16>
    %167 = vector.shape_cast %166 : vector<1x128x128xbf16> to vector<128x128xbf16>
    %cst_170 = arith.constant dense<0.000000e+00> : vector<32x128xf32>
    %168 = tpu.matmul %130, %167, %cst_170 {dimension_numbers = #tpu.dot_dimension_numbers<[1], [0], [0], [1], [0, 0, 1, 1], [], []>} : vector<32x128xbf16>, vector<128x128xbf16>, vector<32x128xf32> -> vector<32x128xf32>
    %169 = arith.truncf %168 : vector<32x128xf32> to vector<32x128xbf16>
    %c224_171 = arith.constant 224 : index
    %c0_172 = arith.constant 0 : index
    %170 = vector.load %arg18[%c224_171, %c0_172] : memref<288x128xbf16, #tpu.memory_space<vmem>>, vector<32x128xbf16>
    tpu.vector_store %arg18[%c224_171, %c0_172], %169 {strides = array<i32>} : memref<288x128xbf16, #tpu.memory_space<vmem>>, vector<32x128xbf16>,
    %c8_173 = arith.constant 8 : index
    %c0_174 = arith.constant 0 : index
    %c0_175 = arith.constant 0 : index
    %171 = vector.load %arg4[%c8_173, %c0_174, %c0_175] : memref<9x128x128xbf16, #tpu.memory_space<vmem>>, vector<1x128x128xbf16>
    %172 = vector.shape_cast %171 : vector<1x128x128xbf16> to vector<128x128xbf16>
    %cst_176 = arith.constant dense<0.000000e+00> : vector<32x128xf32>
    %173 = tpu.matmul %130, %172, %cst_176 {dimension_numbers = #tpu.dot_dimension_numbers<[1], [0], [0], [1], [0, 0, 1, 1], [], []>} : vector<32x128xbf16>, vector<128x128xbf16>, vector<32x128xf32> -> vector<32x128xf32>
    %174 = arith.truncf %173 : vector<32x128xf32> to vector<32x128xbf16>
    %c256_177 = arith.constant 256 : index
    %c0_178 = arith.constant 0 : index
    %175 = vector.load %arg18[%c256_177, %c0_178] : memref<288x128xbf16, #tpu.memory_space<vmem>>, vector<32x128xbf16>
    tpu.vector_store %arg18[%c256_177, %c0_178], %174 {strides = array<i32>} : memref<288x128xbf16, #tpu.memory_space<vmem>>, vector<32x128xbf16>,
    %c0_179 = arith.constant 0 : index
    %c0_180 = arith.constant 0 : index
    %176 = vector.load %arg11[%c0_179, %c0_180] : memref<32x288xbf16, #tpu.memory_space<vmem>>, vector<32x288xbf16>
    %c0_181 = arith.constant 0 : index
    %c0_182 = arith.constant 0 : index
    %177 = vector.load %arg18[%c0_181, %c0_182] : memref<288x128xbf16, #tpu.memory_space<vmem>>, vector<288x128xbf16>
    %cst_183 = arith.constant dense<0.000000e+00> : vector<32x128xf32>
    %178 = tpu.matmul %176, %177, %cst_183 {dimension_numbers = #tpu.dot_dimension_numbers<[1], [0], [0], [1], [0, 0, 1, 1], [], []>} : vector<32x288xbf16>, vector<288x128xbf16>, vector<32x128xf32> -> vector<32x128xf32>
    %c0_184 = arith.constant 0 : index
    %c0_185 = arith.constant 0 : index
    %179 = vector.load %arg12[%c0_184, %c0_185] : memref<32x1xf32, #tpu.memory_space<vmem>>, vector<32x1xf32>
    %180 = vector.broadcast %179 : vector<32x1xf32> to vector<32x128xf32>
    %181 = arith.addf %178, %180 : vector<32x128xf32>
    %cst_186 = arith.constant 0.000000e+00 : f32
    %182 = vector.broadcast %cst_186 : f32 to vector<32x128xf32>
    %183 = arith.maximumf %181, %182 : vector<32x128xf32>
    %184 = arith.truncf %183 : vector<32x128xf32> to vector<32x128xbf16>
    %c0_187 = arith.constant 0 : index
    %c0_188 = arith.constant 0 : index
    %c0_189 = arith.constant 0 : index
    %185 = vector.load %arg4[%c0_187, %c0_188, %c0_189] : memref<9x128x128xbf16, #tpu.memory_space<vmem>>, vector<1x128x128xbf16>
    %186 = vector.shape_cast %185 : vector<1x128x128xbf16> to vector<128x128xbf16>
    %cst_190 = arith.constant dense<0.000000e+00> : vector<32x128xf32>
    %187 = tpu.matmul %184, %186, %cst_190 {dimension_numbers = #tpu.dot_dimension_numbers<[1], [0], [0], [1], [0, 0, 1, 1], [], []>} : vector<32x128xbf16>, vector<128x128xbf16>, vector<32x128xf32> -> vector<32x128xf32>
    %188 = arith.truncf %187 : vector<32x128xf32> to vector<32x128xbf16>
    %c0_191 = arith.constant 0 : index
    %c0_192 = arith.constant 0 : index
    %189 = vector.load %arg18[%c0_191, %c0_192] : memref<288x128xbf16, #tpu.memory_space<vmem>>, vector<32x128xbf16>
    tpu.vector_store %arg18[%c0_191, %c0_192], %188 {strides = array<i32>} : memref<288x128xbf16, #tpu.memory_space<vmem>>, vector<32x128xbf16>,
    %c1_193 = arith.constant 1 : index
    %c0_194 = arith.constant 0 : index
    %c0_195 = arith.constant 0 : index
    %190 = vector.load %arg4[%c1_193, %c0_194, %c0_195] : memref<9x128x128xbf16, #tpu.memory_space<vmem>>, vector<1x128x128xbf16>
    %191 = vector.shape_cast %190 : vector<1x128x128xbf16> to vector<128x128xbf16>
    %cst_196 = arith.constant dense<0.000000e+00> : vector<32x128xf32>
    %192 = tpu.matmul %184, %191, %cst_196 {dimension_numbers = #tpu.dot_dimension_numbers<[1], [0], [0], [1], [0, 0, 1, 1], [], []>} : vector<32x128xbf16>, vector<128x128xbf16>, vector<32x128xf32> -> vector<32x128xf32>
    %193 = arith.truncf %192 : vector<32x128xf32> to vector<32x128xbf16>
    %c32_197 = arith.constant 32 : index
    %c0_198 = arith.constant 0 : index
    %194 = vector.load %arg18[%c32_197, %c0_198] : memref<288x128xbf16, #tpu.memory_space<vmem>>, vector<32x128xbf16>
    tpu.vector_store %arg18[%c32_197, %c0_198], %193 {strides = array<i32>} : memref<288x128xbf16, #tpu.memory_space<vmem>>, vector<32x128xbf16>,
    %c2_199 = arith.constant 2 : index
    %c0_200 = arith.constant 0 : index
    %c0_201 = arith.constant 0 : index
    %195 = vector.load %arg4[%c2_199, %c0_200, %c0_201] : memref<9x128x128xbf16, #tpu.memory_space<vmem>>, vector<1x128x128xbf16>
    %196 = vector.shape_cast %195 : vector<1x128x128xbf16> to vector<128x128xbf16>
    %cst_202 = arith.constant dense<0.000000e+00> : vector<32x128xf32>
    %197 = tpu.matmul %184, %196, %cst_202 {dimension_numbers = #tpu.dot_dimension_numbers<[1], [0], [0], [1], [0, 0, 1, 1], [], []>} : vector<32x128xbf16>, vector<128x128xbf16>, vector<32x128xf32> -> vector<32x128xf32>
    %198 = arith.truncf %197 : vector<32x128xf32> to vector<32x128xbf16>
    %c64_203 = arith.constant 64 : index
    %c0_204 = arith.constant 0 : index
    %199 = vector.load %arg18[%c64_203, %c0_204] : memref<288x128xbf16, #tpu.memory_space<vmem>>, vector<32x128xbf16>
    tpu.vector_store %arg18[%c64_203, %c0_204], %198 {strides = array<i32>} : memref<288x128xbf16, #tpu.memory_space<vmem>>, vector<32x128xbf16>,
    %c3_205 = arith.constant 3 : index
    %c0_206 = arith.constant 0 : index
    %c0_207 = arith.constant 0 : index
    %200 = vector.load %arg4[%c3_205, %c0_206, %c0_207] : memref<9x128x128xbf16, #tpu.memory_space<vmem>>, vector<1x128x128xbf16>
    %201 = vector.shape_cast %200 : vector<1x128x128xbf16> to vector<128x128xbf16>
    %cst_208 = arith.constant dense<0.000000e+00> : vector<32x128xf32>
    %202 = tpu.matmul %184, %201, %cst_208 {dimension_numbers = #tpu.dot_dimension_numbers<[1], [0], [0], [1], [0, 0, 1, 1], [], []>} : vector<32x128xbf16>, vector<128x128xbf16>, vector<32x128xf32> -> vector<32x128xf32>
    %203 = arith.truncf %202 : vector<32x128xf32> to vector<32x128xbf16>
    %c96_209 = arith.constant 96 : index
    %c0_210 = arith.constant 0 : index
    %204 = vector.load %arg18[%c96_209, %c0_210] : memref<288x128xbf16, #tpu.memory_space<vmem>>, vector<32x128xbf16>
    tpu.vector_store %arg18[%c96_209, %c0_210], %203 {strides = array<i32>} : memref<288x128xbf16, #tpu.memory_space<vmem>>, vector<32x128xbf16>,
    %c4_211 = arith.constant 4 : index
    %c0_212 = arith.constant 0 : index
    %c0_213 = arith.constant 0 : index
    %205 = vector.load %arg4[%c4_211, %c0_212, %c0_213] : memref<9x128x128xbf16, #tpu.memory_space<vmem>>, vector<1x128x128xbf16>
    %206 = vector.shape_cast %205 : vector<1x128x128xbf16> to vector<128x128xbf16>
    %cst_214 = arith.constant dense<0.000000e+00> : vector<32x128xf32>
    %207 = tpu.matmul %184, %206, %cst_214 {dimension_numbers = #tpu.dot_dimension_numbers<[1], [0], [0], [1], [0, 0, 1, 1], [], []>} : vector<32x128xbf16>, vector<128x128xbf16>, vector<32x128xf32> -> vector<32x128xf32>
    %208 = arith.truncf %207 : vector<32x128xf32> to vector<32x128xbf16>
    %c128_215 = arith.constant 128 : index
    %c0_216 = arith.constant 0 : index
    %209 = vector.load %arg18[%c128_215, %c0_216] : memref<288x128xbf16, #tpu.memory_space<vmem>>, vector<32x128xbf16>
    tpu.vector_store %arg18[%c128_215, %c0_216], %208 {strides = array<i32>} : memref<288x128xbf16, #tpu.memory_space<vmem>>, vector<32x128xbf16>,
    %c5_217 = arith.constant 5 : index
    %c0_218 = arith.constant 0 : index
    %c0_219 = arith.constant 0 : index
    %210 = vector.load %arg4[%c5_217, %c0_218, %c0_219] : memref<9x128x128xbf16, #tpu.memory_space<vmem>>, vector<1x128x128xbf16>
    %211 = vector.shape_cast %210 : vector<1x128x128xbf16> to vector<128x128xbf16>
    %cst_220 = arith.constant dense<0.000000e+00> : vector<32x128xf32>
    %212 = tpu.matmul %184, %211, %cst_220 {dimension_numbers = #tpu.dot_dimension_numbers<[1], [0], [0], [1], [0, 0, 1, 1], [], []>} : vector<32x128xbf16>, vector<128x128xbf16>, vector<32x128xf32> -> vector<32x128xf32>
    %213 = arith.truncf %212 : vector<32x128xf32> to vector<32x128xbf16>
    %c160_221 = arith.constant 160 : index
    %c0_222 = arith.constant 0 : index
    %214 = vector.load %arg18[%c160_221, %c0_222] : memref<288x128xbf16, #tpu.memory_space<vmem>>, vector<32x128xbf16>
    tpu.vector_store %arg18[%c160_221, %c0_222], %213 {strides = array<i32>} : memref<288x128xbf16, #tpu.memory_space<vmem>>, vector<32x128xbf16>,
    %c6_223 = arith.constant 6 : index
    %c0_224 = arith.constant 0 : index
    %c0_225 = arith.constant 0 : index
    %215 = vector.load %arg4[%c6_223, %c0_224, %c0_225] : memref<9x128x128xbf16, #tpu.memory_space<vmem>>, vector<1x128x128xbf16>
    %216 = vector.shape_cast %215 : vector<1x128x128xbf16> to vector<128x128xbf16>
    %cst_226 = arith.constant dense<0.000000e+00> : vector<32x128xf32>
    %217 = tpu.matmul %184, %216, %cst_226 {dimension_numbers = #tpu.dot_dimension_numbers<[1], [0], [0], [1], [0, 0, 1, 1], [], []>} : vector<32x128xbf16>, vector<128x128xbf16>, vector<32x128xf32> -> vector<32x128xf32>
    %218 = arith.truncf %217 : vector<32x128xf32> to vector<32x128xbf16>
    %c192_227 = arith.constant 192 : index
    %c0_228 = arith.constant 0 : index
    %219 = vector.load %arg18[%c192_227, %c0_228] : memref<288x128xbf16, #tpu.memory_space<vmem>>, vector<32x128xbf16>
    tpu.vector_store %arg18[%c192_227, %c0_228], %218 {strides = array<i32>} : memref<288x128xbf16, #tpu.memory_space<vmem>>, vector<32x128xbf16>,
    %c7_229 = arith.constant 7 : index
    %c0_230 = arith.constant 0 : index
    %c0_231 = arith.constant 0 : index
    %220 = vector.load %arg4[%c7_229, %c0_230, %c0_231] : memref<9x128x128xbf16, #tpu.memory_space<vmem>>, vector<1x128x128xbf16>
    %221 = vector.shape_cast %220 : vector<1x128x128xbf16> to vector<128x128xbf16>
    %cst_232 = arith.constant dense<0.000000e+00> : vector<32x128xf32>
    %222 = tpu.matmul %184, %221, %cst_232 {dimension_numbers = #tpu.dot_dimension_numbers<[1], [0], [0], [1], [0, 0, 1, 1], [], []>} : vector<32x128xbf16>, vector<128x128xbf16>, vector<32x128xf32> -> vector<32x128xf32>
    %223 = arith.truncf %222 : vector<32x128xf32> to vector<32x128xbf16>
    %c224_233 = arith.constant 224 : index
    %c0_234 = arith.constant 0 : index
    %224 = vector.load %arg18[%c224_233, %c0_234] : memref<288x128xbf16, #tpu.memory_space<vmem>>, vector<32x128xbf16>
    tpu.vector_store %arg18[%c224_233, %c0_234], %223 {strides = array<i32>} : memref<288x128xbf16, #tpu.memory_space<vmem>>, vector<32x128xbf16>,
    %c8_235 = arith.constant 8 : index
    %c0_236 = arith.constant 0 : index
    %c0_237 = arith.constant 0 : index
    %225 = vector.load %arg4[%c8_235, %c0_236, %c0_237] : memref<9x128x128xbf16, #tpu.memory_space<vmem>>, vector<1x128x128xbf16>
    %226 = vector.shape_cast %225 : vector<1x128x128xbf16> to vector<128x128xbf16>
    %cst_238 = arith.constant dense<0.000000e+00> : vector<32x128xf32>
    %227 = tpu.matmul %184, %226, %cst_238 {dimension_numbers = #tpu.dot_dimension_numbers<[1], [0], [0], [1], [0, 0, 1, 1], [], []>} : vector<32x128xbf16>, vector<128x128xbf16>, vector<32x128xf32> -> vector<32x128xf32>
    %228 = arith.truncf %227 : vector<32x128xf32> to vector<32x128xbf16>
    %c256_239 = arith.constant 256 : index
    %c0_240 = arith.constant 0 : index
    %229 = vector.load %arg18[%c256_239, %c0_240] : memref<288x128xbf16, #tpu.memory_space<vmem>>, vector<32x128xbf16>
    tpu.vector_store %arg18[%c256_239, %c0_240], %228 {strides = array<i32>} : memref<288x128xbf16, #tpu.memory_space<vmem>>, vector<32x128xbf16>,
    %c0_241 = arith.constant 0 : index
    %c0_242 = arith.constant 0 : index
    %230 = vector.load %arg13[%c0_241, %c0_242] : memref<32x288xbf16, #tpu.memory_space<vmem>>, vector<32x288xbf16>
    %c0_243 = arith.constant 0 : index
    %c0_244 = arith.constant 0 : index
    %231 = vector.load %arg18[%c0_243, %c0_244] : memref<288x128xbf16, #tpu.memory_space<vmem>>, vector<288x128xbf16>
    %cst_245 = arith.constant dense<0.000000e+00> : vector<32x128xf32>
    %232 = tpu.matmul %230, %231, %cst_245 {dimension_numbers = #tpu.dot_dimension_numbers<[1], [0], [0], [1], [0, 0, 1, 1], [], []>} : vector<32x288xbf16>, vector<288x128xbf16>, vector<32x128xf32> -> vector<32x128xf32>
    %c0_246 = arith.constant 0 : index
    %c0_247 = arith.constant 0 : index
    %233 = vector.load %arg14[%c0_246, %c0_247] : memref<32x1xf32, #tpu.memory_space<vmem>>, vector<32x1xf32>
    %234 = vector.broadcast %233 : vector<32x1xf32> to vector<32x128xf32>
    %235 = arith.addf %232, %234 : vector<32x128xf32>
    %236 = arith.addf %235, %129 : vector<32x128xf32>
    %cst_248 = arith.constant 0.000000e+00 : f32
    %237 = vector.broadcast %cst_248 : f32 to vector<32x128xf32>
    %238 = arith.maximumf %236, %237 : vector<32x128xf32>
    %239 = arith.truncf %238 : vector<32x128xf32> to vector<32x128xbf16>
    %c0_249 = arith.constant 0 : index
    %c0_250 = arith.constant 0 : index
    %240 = vector.load %arg18[%c0_249, %c0_250] : memref<288x128xbf16, #tpu.memory_space<vmem>>, vector<32x128xbf16>
    tpu.vector_store %arg18[%c0_249, %c0_250], %239 {strides = array<i32>} : memref<288x128xbf16, #tpu.memory_space<vmem>>, vector<32x128xbf16>,
    %c32_251 = arith.constant 32 : index
    %c0_252 = arith.constant 0 : index
    %241 = vector.load %arg18[%c32_251, %c0_252] : memref<288x128xbf16, #tpu.memory_space<vmem>>, vector<32x128xbf16>
    tpu.vector_store %arg18[%c32_251, %c0_252], %130 {strides = array<i32>} : memref<288x128xbf16, #tpu.memory_space<vmem>>, vector<32x128xbf16>,
    %c0_253 = arith.constant 0 : index
    %c0_254 = arith.constant 0 : index
    %242 = vector.load %arg15[%c0_253, %c0_254] : memref<32x64xbf16, #tpu.memory_space<vmem>>, vector<32x64xbf16>
    %c0_255 = arith.constant 0 : index
    %c0_256 = arith.constant 0 : index
    %243 = vector.load %arg18[%c0_255, %c0_256] : memref<288x128xbf16, #tpu.memory_space<vmem>>, vector<64x128xbf16>
    %cst_257 = arith.constant dense<0.000000e+00> : vector<32x128xf32>
    %244 = tpu.matmul %242, %243, %cst_257 {dimension_numbers = #tpu.dot_dimension_numbers<[1], [0], [0], [1], [0, 0, 1, 1], [], []>} : vector<32x64xbf16>, vector<64x128xbf16>, vector<32x128xf32> -> vector<32x128xf32>
    %c0_258 = arith.constant 0 : index
    %c0_259 = arith.constant 0 : index
    %245 = vector.load %arg16[%c0_258, %c0_259] : memref<32x1xf32, #tpu.memory_space<vmem>>, vector<32x1xf32>
    %246 = vector.broadcast %245 : vector<32x1xf32> to vector<32x128xf32>
    %247 = arith.addf %244, %246 : vector<32x128xf32>
    %cst_260 = arith.constant 0.000000e+00 : f32
    %248 = vector.broadcast %cst_260 : f32 to vector<32x128xf32>
    %249 = arith.maximumf %247, %248 : vector<32x128xf32>
    %c0_261 = arith.constant 0 : index
    %c0_262 = arith.constant 0 : index
    %250 = vector.load %arg17[%c0_261, %c0_262] : memref<32x128xf32, #tpu.memory_space<vmem>>, vector<32x128xf32>
    tpu.vector_store %arg17[%c0_261, %c0_262], %249 {strides = array<i32>} : memref<32x128xf32, #tpu.memory_space<vmem>>, vector<32x128xf32>,
    return
  }
  func.func @transform_0(%arg0: i32) -> (i32, i32) {
    %c0_i32 = arith.constant 0 : i32
    %c0_i32_0 = arith.constant 0 : i32
    return %c0_i32, %arg0 : i32, i32
  }
  func.func @transform_1(%arg0: i32) -> (i32, i32, i32) {
    %c0_i32 = arith.constant 0 : i32
    %c0_i32_0 = arith.constant 0 : i32
    %c0_i32_1 = arith.constant 0 : i32
    %c0_i32_2 = arith.constant 0 : i32
    return %c0_i32, %c0_i32_0, %c0_i32_1 : i32, i32, i32
  }
  func.func @transform_2(%arg0: i32) -> (i32, i32, i32) {
    %c0_i32 = arith.constant 0 : i32
    %c0_i32_0 = arith.constant 0 : i32
    %c0_i32_1 = arith.constant 0 : i32
    %c0_i32_2 = arith.constant 0 : i32
    return %c0_i32, %c0_i32_0, %c0_i32_1 : i32, i32, i32
  }
  func.func @transform_3(%arg0: i32) -> (i32, i32, i32) {
    %c0_i32 = arith.constant 0 : i32
    %c0_i32_0 = arith.constant 0 : i32
    %c0_i32_1 = arith.constant 0 : i32
    %c0_i32_2 = arith.constant 0 : i32
    return %c0_i32, %c0_i32_0, %c0_i32_1 : i32, i32, i32
  }
  func.func @transform_4(%arg0: i32) -> (i32, i32) {
    %c0_i32 = arith.constant 0 : i32
    %c0_i32_0 = arith.constant 0 : i32
    %c0_i32_1 = arith.constant 0 : i32
    return %c0_i32, %c0_i32_0 : i32, i32
  }
  func.func @transform_5(%arg0: i32) -> (i32, i32) {
    %c0_i32 = arith.constant 0 : i32
    %c0_i32_0 = arith.constant 0 : i32
    %c0_i32_1 = arith.constant 0 : i32
    return %c0_i32, %c0_i32_0 : i32, i32
  }
  func.func @transform_6(%arg0: i32) -> (i32, i32) {
    %c0_i32 = arith.constant 0 : i32
    %c0_i32_0 = arith.constant 0 : i32
    %c0_i32_1 = arith.constant 0 : i32
    return %c0_i32, %c0_i32_0 : i32, i32
  }
  func.func @transform_7(%arg0: i32) -> (i32, i32) {
    %c0_i32 = arith.constant 0 : i32
    %c0_i32_0 = arith.constant 0 : i32
    %c0_i32_1 = arith.constant 0 : i32
    return %c0_i32, %c0_i32_0 : i32, i32
  }
  func.func @transform_8(%arg0: i32) -> (i32, i32) {
    %c0_i32 = arith.constant 0 : i32
    %c0_i32_0 = arith.constant 0 : i32
    %c0_i32_1 = arith.constant 0 : i32
    return %c0_i32, %c0_i32_0 : i32, i32
  }
  func.func @transform_9(%arg0: i32) -> (i32, i32) {
    %c0_i32 = arith.constant 0 : i32
    %c0_i32_0 = arith.constant 0 : i32
    %c0_i32_1 = arith.constant 0 : i32
    return %c0_i32, %c0_i32_0 : i32, i32
  }
  func.func @transform_10(%arg0: i32) -> (i32, i32) {
    %c0_i32 = arith.constant 0 : i32
    %c0_i32_0 = arith.constant 0 : i32
    %c0_i32_1 = arith.constant 0 : i32
    return %c0_i32, %c0_i32_0 : i32, i32
  }
  func.func @transform_11(%arg0: i32) -> (i32, i32) {
    %c0_i32 = arith.constant 0 : i32
    %c0_i32_0 = arith.constant 0 : i32
    %c0_i32_1 = arith.constant 0 : i32
    return %c0_i32, %c0_i32_0 : i32, i32
  }
  func.func @transform_12(%arg0: i32) -> (i32, i32) {
    %c0_i32 = arith.constant 0 : i32
    %c0_i32_0 = arith.constant 0 : i32
    %c0_i32_1 = arith.constant 0 : i32
    return %c0_i32, %c0_i32_0 : i32, i32
  }
  func.func @transform_13(%arg0: i32) -> (i32, i32) {
    %c0_i32 = arith.constant 0 : i32
    %c0_i32_0 = arith.constant 0 : i32
    %c0_i32_1 = arith.constant 0 : i32
    return %c0_i32, %c0_i32_0 : i32, i32
  }
  func.func @transform_14(%arg0: i32) -> (i32, i32) {
    %c0_i32 = arith.constant 0 : i32
    %c0_i32_0 = arith.constant 0 : i32
    %c0_i32_1 = arith.constant 0 : i32
    return %c0_i32, %c0_i32_0 : i32, i32
  }
  func.func @transform_15(%arg0: i32) -> (i32, i32) {
    %c0_i32 = arith.constant 0 : i32
    %c0_i32_0 = arith.constant 0 : i32
    %c0_i32_1 = arith.constant 0 : i32
    return %c0_i32, %c0_i32_0 : i32, i32
  }
  func.func @transform_16(%arg0: i32) -> (i32, i32) {
    %c0_i32 = arith.constant 0 : i32
    %c0_i32_0 = arith.constant 0 : i32
    return %c0_i32, %arg0 : i32, i32
  }
}

</mosaic_0001>

<bundles_post_ra>
// kernel: tree_forward.1
= control target key start
LH: loop header
LB: loop body
LE: loop exit
PB: predicated region body
PF: predicated region fallthrough
CT: control target
= control target key end

     0   :  { %vm1478_vm0 = vcmask 130048   ;;  %vm6264_vm1 = vcmask 261120   ;;  %vm9515_vm2 = vcmask 523264   ;;  %s16770_s1 = inlined_call_operand.vmem [shape: bf16[4,512,128], index: 1, kind: input, shape index: {}]   ;;  %s16771_s0 = inlined_call_operand.vmem [shape: bf16[16,512], index: 0, kind: input, shape index: {}]   ;;  %s16772_s2 = inlined_call_operand.vmem [shape: bf16[9,512,128], index: 2, kind: input, shape index: {}]   ;;  %s16773_s4 = inlined_call_operand.vmem [shape: bf16[32,16], index: 4, kind: input, shape index: {}]   ;;  %s16774_s7 = inlined_call_operand.vmem [shape: f32[32,1], index: 7, kind: input, shape index: {}]   ;;  %s16775_s9 = inlined_call_operand.vmem [shape: f32[32,1], index: 9, kind: input, shape index: {}]   ;;  %s16776_s5 = inlined_call_operand.vmem [shape: f32[32,1], index: 5, kind: input, shape index: {}]   ;;  %s16777_s6 = inlined_call_operand.vmem [shape: bf16[32,144], index: 6, kind: input, shape index: {}]   ;;  %s16778_s11 = inlined_call_operand.vmem [shape: f32[32,1], index: 11, kind: input, shape index: {}]   ;;  %s16779_s13 = inlined_call_operand.vmem [shape: f32[32,1], index: 13, kind: input, shape index: {}]   ;;  %s16780_s3 = inlined_call_operand.vmem [shape: bf16[9,128,128], index: 3, kind: input, shape index: {}]   ;;  %s16781_s15 = inlined_call_operand.vmem [shape: f32[32,1], index: 15, kind: input, shape index: {}]   ;;  %s16782_s8 = inlined_call_operand.vmem [shape: bf16[32,288], index: 8, kind: input, shape index: {}]   ;;  %s16783_s10 = inlined_call_operand.vmem [shape: bf16[32,288], index: 10, kind: input, shape index: {}]   ;;  %s16784_s12 = inlined_call_operand.vmem [shape: bf16[32,288], index: 12, kind: input, shape index: {}]   ;;  %s16785_s14 = inlined_call_operand.vmem [shape: bf16[32,64], index: 14, kind: input, shape index: {}]   ;;  %s16786_s16 = inlined_call_operand.vmem [shape: f32[32,128], index: 16, kind: output, shape index: {}]  }
   0x1   :  { %16788 = sst [smem:[#allocation3_spill]] %s16770_s1  ;;  %v14542_v32 = vld [vmem:[%s16771_s0 + $0x4] ss:$16 sps:$4 sm:$0xff]   ;;  %v14547_v33 = vld [vmem:[%s16771_s0 + $0xc] ss:$16 sps:$4 sm:$0xff]  }
   0x2   :  { %s16789_s23 = sld [smem:[#allocation3_spill]]  ;;  %366 = vmatprep.mubr.bf16.mxu0 %v14542_v32  ;;  %v14553_v34 = vld [vmem:[%s16771_s0] ss:$16 sps:$4 sm:$0xff]   ;;  %v14558_v35 = vld [vmem:[%s16771_s0 + $0x8] ss:$16 sps:$4 sm:$0xff]   ;;  %407 = vmatprep.mubr.bf16.mxu1 %v14547_v33 }
   0x8   :  { %v13609_v0 = vld [vmem:[%s16789_s23 + $0x78] sm:$0xff]   ;;  %v13613_v4 = vld [vmem:[%s16789_s23 + $0x70] sm:$0xff]   ;;  %v13617_v8 = vld [vmem:[%s16789_s23 + $0x68] sm:$0xff]  }
   0x9   :  { %v13610_v1 = vld [vmem:[%s16789_s23 + $0xf8] sm:$0xff]   ;;  %12077 = vmatprep.subr.bf16.mxu0 %v13609_v0  ;;  %v13614_v5 = vld [vmem:[%s16789_s23 + $0xf0] sm:$0xff]   ;;  %v13618_v9 = vld [vmem:[%s16789_s23 + $0xe8] sm:$0xff]  }
   0xa   :  { %v13611_v2 = vld [vmem:[%s16789_s23 + $0x38] sm:$0xff]   ;;  %12099 = vmatprep.subr.bf16.mxu1 %v13610_v1  ;;  %v13615_v6 = vld [vmem:[%s16789_s23 + $0x30] sm:$0xff]   ;;  %v13619_v10 = vld [vmem:[%s16789_s23 + $0x28] sm:$0xff]  }
   0xb   :  { %v13612_v3 = vld [vmem:[%s16789_s23 + $0xb8] sm:$0xff]   ;;  %12078 = vmatpush3.bf16.msra.mxu0 %v13611_v2  ;;  %v13616_v7 = vld [vmem:[%s16789_s23 + $0xb0] sm:$0xff]   ;;  %v13620_v11 = vld [vmem:[%s16789_s23 + $0xa8] sm:$0xff]  }
   0xc   :  { %12100 = vmatpush3.bf16.msra.mxu1 %v13612_v3  ;;  %12079 = vmatprep.subr.bf16.mxu0 %v13613_v4  ;;  %v13621_v12 = vld [vmem:[%s16789_s23 + $0x60] sm:$0xff]   ;;  %v13625_v16 = vld [vmem:[%s16789_s23 + $0x58] sm:$0xff]   ;;  %v13629_v20 = vld [vmem:[%s16789_s23 + $0x50] sm:$0xff]  }
   0xd   :  { %12101 = vmatprep.subr.bf16.mxu1 %v13614_v5  ;;  %v13622_v13 = vld [vmem:[%s16789_s23 + $0xe0] sm:$0xff]   ;;  %v13626_v17 = vld [vmem:[%s16789_s23 + $0xd8] sm:$0xff]   ;;  %v13630_v21 = vld [vmem:[%s16789_s23 + $0xd0] sm:$0xff]  }
   0xe   :  { %v13623_v14 = vld [vmem:[%s16789_s23 + $0x20] sm:$0xff]   ;;  %v13627_v18 = vld [vmem:[%s16789_s23 + $0x18] sm:$0xff]   ;;  %v13631_v22 = vld [vmem:[%s16789_s23 + $0x10] sm:$0xff]  }
   0xf   :  { %12080 = vmatpush3.bf16.msra.mxu0 %v13615_v6  ;;  %v13624_v15 = vld [vmem:[%s16789_s23 + $0xa0] sm:$0xff]   ;;  %v13628_v19 = vld [vmem:[%s16789_s23 + $0x98] sm:$0xff]   ;;  %v13632_v23 = vld [vmem:[%s16789_s23 + $0x90] sm:$0xff]  }
  0x10   :  { %12102 = vmatpush3.bf16.msra.mxu1 %v13616_v7  ;;  %12081 = vmatprep.subr.bf16.mxu0 %v13617_v8  ;;  %v13633_v24 = vld [vmem:[%s16789_s23 + $0x48] sm:$0xff]   ;;  %v13637_v28 = vld [vmem:[%s16789_s23 + $0x40] sm:$0xff]   ;;  %v13647_v36 = vld [vmem:[%s16789_s23 + $0x178] sm:$0xff]  }
  0x11   :  { %12103 = vmatprep.subr.bf16.mxu1 %v13618_v9  ;;  %v13634_v25 = vld [vmem:[%s16789_s23 + $0xc8] sm:$0xff]   ;;  %v13638_v29 = vld [vmem:[%s16789_s23 + $0xc0] sm:$0xff]   ;;  %v13648_v37 = vld [vmem:[%s16789_s23 + $0x1f8] sm:$0xff]  }
  0x12   :  { %v13635_v26 = vld [vmem:[%s16789_s23 + $0x8] sm:$0xff]   ;;  %v13639_v30 = vld [vmem:[%s16789_s23] sm:$0xff]   ;;  %v13649_v38 = vld [vmem:[%s16789_s23 + $0x138] sm:$0xff]  }
  0x13   :  { %12082 = vmatpush3.bf16.msra.mxu0 %v13619_v10  ;;  %v13636_v27 = vld [vmem:[%s16789_s23 + $0x88] sm:$0xff]   ;;  %v13640_v31 = vld [vmem:[%s16789_s23 + $0x80] sm:$0xff]   ;;  %v13650_v39 = vld [vmem:[%s16789_s23 + $0x1b8] sm:$0xff]  }
  0x14   :  { %12104 = vmatpush3.bf16.msra.mxu1 %v13620_v11  ;;  %12083 = vmatprep.subr.bf16.mxu0 %v13621_v12  ;;  %v13651_v40 = vld [vmem:[%s16789_s23 + $0x170] sm:$0xff]   ;;  %v13655_v44 = vld [vmem:[%s16789_s23 + $0x168] sm:$0xff]   ;;  %v13659_v48 = vld [vmem:[%s16789_s23 + $0x160] sm:$0xff]  }
  0x15   :  { %12105 = vmatprep.subr.bf16.mxu1 %v13622_v13  ;;  %v13652_v41 = vld [vmem:[%s16789_s23 + $0x1f0] sm:$0xff]   ;;  %v13656_v45 = vld [vmem:[%s16789_s23 + $0x1e8] sm:$0xff]   ;;  %v13660_v49 = vld [vmem:[%s16789_s23 + $0x1e0] sm:$0xff]  }
  0x16   :  { %v13653_v42 = vld [vmem:[%s16789_s23 + $0x130] sm:$0xff]   ;;  %v13657_v46 = vld [vmem:[%s16789_s23 + $0x128] sm:$0xff]   ;;  %v13661_v50 = vld [vmem:[%s16789_s23 + $0x120] sm:$0xff]  }
  0x17   :  { %12084 = vmatpush3.bf16.msra.mxu0 %v13623_v14  ;;  %v13654_v43 = vld [vmem:[%s16789_s23 + $0x1b0] sm:$0xff]   ;;  %v13658_v47 = vld [vmem:[%s16789_s23 + $0x1a8] sm:$0xff]   ;;  %v13662_v51 = vld [vmem:[%s16789_s23 + $0x1a0] sm:$0xff]  }
  0x18   :  { %12106 = vmatpush3.bf16.msra.mxu1 %v13624_v15  ;;  %12085 = vmatprep.subr.bf16.mxu0 %v13625_v16  ;;  %v13663_v52 = vld [vmem:[%s16789_s23 + $0x158] sm:$0xff]   ;;  %v13667_v56 = vld [vmem:[%s16789_s23 + $0x150] sm:$0xff]   ;;  %v13671_v60 = vld [vmem:[%s16789_s23 + $0x148] sm:$0xff]  }
  0x19   :  { %12107 = vmatprep.subr.bf16.mxu1 %v13626_v17  ;;  %v13664_v53 = vld [vmem:[%s16789_s23 + $0x1d8] sm:$0xff]   ;;  %v13668_v57 = vld [vmem:[%s16789_s23 + $0x1d0] sm:$0xff]   ;;  %v13672_v61 = vld [vmem:[%s16789_s23 + $0x1c8] sm:$0xff]  }
  0x1a   :  { %v13665_v54 = vld [vmem:[%s16789_s23 + $0x118] sm:$0xff]   ;;  %v13669_v58 = vld [vmem:[%s16789_s23 + $0x110] sm:$0xff]   ;;  %v13673_v62 = vld [vmem:[%s16789_s23 + $0x108] sm:$0xff]  }
  0x1b   :  { %12086 = vmatpush3.bf16.msra.mxu0 %v13627_v18  ;;  %v13666_v55 = vld [vmem:[%s16789_s23 + $0x198] sm:$0xff]   ;;  %v13670_v59 = vld [vmem:[%s16789_s23 + $0x190] sm:$0xff]   ;;  %v13674_v63 = vld [vmem:[%s16789_s23 + $0x188] sm:$0xff]  }
  0x1c   :  { %12108 = vmatpush3.bf16.msra.mxu1 %v13628_v19  ;;  %12087 = vmatprep.subr.bf16.mxu0 %v13629_v20  ;;  %v13675_v0 = vld [vmem:[%s16789_s23 + $0x140] sm:$0xff]   ;;  %v13679_v4 = vld [vmem:[%s16789_s23 + $0x278] sm:$0xff]   ;;  %v13683_v8 = vld [vmem:[%s16789_s23 + $0x270] sm:$0xff]  }
  0x1d   :  { %12109 = vmatprep.subr.bf16.mxu1 %v13630_v21  ;;  %v13676_v1 = vld [vmem:[%s16789_s23 + $0x1c0] sm:$0xff]   ;;  %v13680_v5 = vld [vmem:[%s16789_s23 + $0x2f8] sm:$0xff]   ;;  %v13684_v9 = vld [vmem:[%s16789_s23 + $0x2f0] sm:$0xff]  }
  0x1e   :  { %v13677_v2 = vld [vmem:[%s16789_s23 + $0x100] sm:$0xff]   ;;  %v13681_v6 = vld [vmem:[%s16789_s23 + $0x238] sm:$0xff]   ;;  %v13685_v10 = vld [vmem:[%s16789_s23 + $0x230] sm:$0xff]  }
  0x1f   :  { %12088 = vmatpush3.bf16.msra.mxu0 %v13631_v22  ;;  %v13678_v3 = vld [vmem:[%s16789_s23 + $0x180] sm:$0xff]   ;;  %v13682_v7 = vld [vmem:[%s16789_s23 + $0x2b8] sm:$0xff]   ;;  %v13686_v11 = vld [vmem:[%s16789_s23 + $0x2b0] sm:$0xff]  }
  0x20   :  { %12110 = vmatpush3.bf16.msra.mxu1 %v13632_v23  ;;  %12089 = vmatprep.subr.bf16.mxu0 %v13633_v24  ;;  %v13687_v12 = vld [vmem:[%s16789_s23 + $0x268] sm:$0xff]   ;;  %v13691_v16 = vld [vmem:[%s16789_s23 + $0x260] sm:$0xff]   ;;  %v13695_v20 = vld [vmem:[%s16789_s23 + $0x258] sm:$0xff]  }
  0x21   :  { %12111 = vmatprep.subr.bf16.mxu1 %v13634_v25  ;;  %v13688_v13 = vld [vmem:[%s16789_s23 + $0x2e8] sm:$0xff]   ;;  %v13692_v17 = vld [vmem:[%s16789_s23 + $0x2e0] sm:$0xff]   ;;  %v13696_v21 = vld [vmem:[%s16789_s23 + $0x2d8] sm:$0xff]  }
  0x22   :  { %v13689_v14 = vld [vmem:[%s16789_s23 + $0x228] sm:$0xff]   ;;  %v13693_v18 = vld [vmem:[%s16789_s23 + $0x220] sm:$0xff]   ;;  %v13697_v22 = vld [vmem:[%s16789_s23 + $0x218] sm:$0xff]  }
  0x23   :  { %12090 = vmatpush3.bf16.msra.mxu0 %v13635_v26  ;;  %v13690_v15 = vld [vmem:[%s16789_s23 + $0x2a8] sm:$0xff]   ;;  %v13694_v19 = vld [vmem:[%s16789_s23 + $0x2a0] sm:$0xff]   ;;  %v13698_v23 = vld [vmem:[%s16789_s23 + $0x298] sm:$0xff]  }
  0x24   :  { %12112 = vmatpush3.bf16.msra.mxu1 %v13636_v27  ;;  %12091 = vmatprep.subr.bf16.mxu0 %v13637_v28  ;;  %v13699_v24 = vld [vmem:[%s16789_s23 + $0x250] sm:$0xff]   ;;  %v13703_v28 = vld [vmem:[%s16789_s23 + $0x248] sm:$0xff]  }
  0x25   :  { %12113 = vmatprep.subr.bf16.mxu1 %v13638_v29  ;;  %v13700_v25 = vld [vmem:[%s16789_s23 + $0x2d0] sm:$0xff]   ;;  %v13704_v29 = vld [vmem:[%s16789_s23 + $0x2c8] sm:$0xff]  }
  0x26   :  { %v13701_v26 = vld [vmem:[%s16789_s23 + $0x210] sm:$0xff]  }
  0x27   :  { %12092 = vmatpush3.bf16.msra.mxu0 %v13639_v30  ;;  %v13702_v27 = vld [vmem:[%s16789_s23 + $0x290] sm:$0xff]   ;;  %v13705_v30 = vld [vmem:[%s16789_s23 + $0x208] sm:$0xff]  }
  0x28   :  { %12114 = vmatpush3.bf16.msra.mxu1 %v13640_v31  ;;  %12121 = vmatprep.subr.bf16.mxu0 %v13647_v36  ;;  %v13706_v31 = vld [vmem:[%s16789_s23 + $0x288] sm:$0xff]   ;;  %v13707_v36 = vld [vmem:[%s16789_s23 + $0x240] sm:$0xff]  }
  0x29   :  { %12143 = vmatprep.subr.bf16.mxu1 %v13648_v37  ;;  %v13708_v37 = vld [vmem:[%s16789_s23 + $0x2c0] sm:$0xff]  }
  0x2a   :  { %367 = vmatmul.mubr.bf16.vlgmr.msra.gmra.mxu0 %v14553_v34 }
  0x2b   :  { %408 = vmatmul.mubr.bf16.vlgmr.msra.gmra.mxu1 %v14558_v35  ;;  %705 = vmatprep.mubr.bf16.mxu0 %v14542_v32 }
  0x2c   :  { %746 = vmatprep.mubr.bf16.mxu1 %v14547_v33  ;;  %12122 = vmatpush3.bf16.msra.mxu0 %v13649_v38  ;;  %v13709_v38 = vld [vmem:[%s16789_s23 + $0x200] sm:$0xff]  }
  0x2d   :  { %12144 = vmatpush3.bf16.msra.mxu1 %v13650_v39  ;;  %12123 = vmatprep.subr.bf16.mxu0 %v13651_v40  ;;  %v13710_v39 = vld [vmem:[%s16789_s23 + $0x280] sm:$0xff]   ;;  %v13711_v40 = vld [vmem:[%s16789_s23 + $0x378] sm:$0xff]  }
  0x2e   :  { %12145 = vmatprep.subr.bf16.mxu1 %v13652_v41  ;;  %v13712_v41 = vld [vmem:[%s16789_s23 + $0x3f8] sm:$0xff]  }
  0x30   :  { %12124 = vmatpush3.bf16.msra.mxu0 %v13653_v42  ;;  %v13713_v42 = vld [vmem:[%s16789_s23 + $0x338] sm:$0xff]  }
  0x31   :  { %12146 = vmatpush3.bf16.msra.mxu1 %v13654_v43  ;;  %12125 = vmatprep.subr.bf16.mxu0 %v13655_v44  ;;  %v13714_v43 = vld [vmem:[%s16789_s23 + $0x3b8] sm:$0xff]   ;;  %v13715_v44 = vld [vmem:[%s16789_s23 + $0x370] sm:$0xff]  }
  0x32   :  { %12147 = vmatprep.subr.bf16.mxu1 %v13656_v45  ;;  %v13716_v45 = vld [vmem:[%s16789_s23 + $0x3f0] sm:$0xff]  }
  0x34   :  { %12126 = vmatpush3.bf16.msra.mxu0 %v13657_v46  ;;  %v13717_v46 = vld [vmem:[%s16789_s23 + $0x330] sm:$0xff]  }
  0x35   :  { %12148 = vmatpush3.bf16.msra.mxu1 %v13658_v47  ;;  %12127 = vmatprep.subr.bf16.mxu0 %v13659_v48  ;;  %v13718_v47 = vld [vmem:[%s16789_s23 + $0x3b0] sm:$0xff]   ;;  %v13719_v48 = vld [vmem:[%s16789_s23 + $0x368] sm:$0xff]  }
  0x36   :  { %12149 = vmatprep.subr.bf16.mxu1 %v13660_v49  ;;  %v13720_v49 = vld [vmem:[%s16789_s23 + $0x3e8] sm:$0xff]  }
  0x38   :  { %12128 = vmatpush3.bf16.msra.mxu0 %v13661_v50  ;;  %v13722_v50 = vld [vmem:[%s16789_s23 + $0x3a8] sm:$0xff]  }
  0x39   :  { %12150 = vmatpush3.bf16.msra.mxu1 %v13662_v51  ;;  %12129 = vmatprep.subr.bf16.mxu0 %v13663_v52  ;;  %v13723_v51 = vld [vmem:[%s16789_s23 + $0x360] sm:$0xff]  }
  0x3a   :  { %12151 = vmatprep.subr.bf16.mxu1 %v13664_v53  ;;  %v13724_v52 = vld [vmem:[%s16789_s23 + $0x3e0] sm:$0xff]  }
  0x3b   :  { %v13725_v53 = vld [vmem:[%s16789_s23 + $0x320] sm:$0xff]  }
  0x3c   :  { %12130 = vmatpush3.bf16.msra.mxu0 %v13665_v54  ;;  %v13726_v54 = vld [vmem:[%s16789_s23 + $0x3a0] sm:$0xff]  }
  0x3d   :  { %12152 = vmatpush3.bf16.msra.mxu1 %v13666_v55  ;;  %12131 = vmatprep.subr.bf16.mxu0 %v13667_v56  ;;  %v13727_v55 = vld [vmem:[%s16789_s23 + $0x358] sm:$0xff]  }
  0x3e   :  { %12153 = vmatprep.subr.bf16.mxu1 %v13668_v57  ;;  %v13728_v56 = vld [vmem:[%s16789_s23 + $0x3d8] sm:$0xff]  }
  0x3f   :  { %v13729_v57 = vld [vmem:[%s16789_s23 + $0x318] sm:$0xff]  }
  0x40   :  { %12132 = vmatpush3.bf16.msra.mxu0 %v13669_v58  ;;  %v13730_v58 = vld [vmem:[%s16789_s23 + $0x398] sm:$0xff]  }
  0x41   :  { %12154 = vmatpush3.bf16.msra.mxu1 %v13670_v59  ;;  %12133 = vmatprep.subr.bf16.mxu0 %v13671_v60  ;;  %v13731_v59 = vld [vmem:[%s16789_s23 + $0x350] sm:$0xff]  }
  0x42   :  { %12155 = vmatprep.subr.bf16.mxu1 %v13672_v61  ;;  %v13732_v60 = vld [vmem:[%s16789_s23 + $0x3d0] sm:$0xff]  }
  0x43   :  { %v13733_v61 = vld [vmem:[%s16789_s23 + $0x310] sm:$0xff]  }
  0x44   :  { %12134 = vmatpush3.bf16.msra.mxu0 %v13673_v62  ;;  %v13734_v62 = vld [vmem:[%s16789_s23 + $0x390] sm:$0xff]  }
  0x45   :  { %12156 = vmatpush3.bf16.msra.mxu1 %v13674_v63  ;;  %12135 = vmatprep.subr.bf16.mxu0 %v13675_v0  ;;  %v13735_v63 = vld [vmem:[%s16789_s23 + $0x348] sm:$0xff]  }
  0x46   :  { %12157 = vmatprep.subr.bf16.mxu1 %v13676_v1  ;;  %v13736_v0 = vld [vmem:[%s16789_s23 + $0x3c8] sm:$0xff]  }
  0x47   :  { %v13737_v1 = vld [vmem:[%s16789_s23 + $0x308] sm:$0xff]  }
  0x48   :  { %12136 = vmatpush3.bf16.msra.mxu0 %v13677_v2  ;;  %v13738_v2 = vld [vmem:[%s16789_s23 + $0x388] sm:$0xff]  }
  0x49   :  { %12158 = vmatpush3.bf16.msra.mxu1 %v13678_v3  ;;  %12165 = vmatprep.subr.bf16.mxu0 %v13679_v4  ;;  %v13739_v3 = vld [vmem:[%s16789_s23 + $0x340] sm:$0xff]  }
  0x4a   :  { %12187 = vmatprep.subr.bf16.mxu1 %v13680_v5  ;;  %v13740_v4 = vld [vmem:[%s16789_s23 + $0x3c0] sm:$0xff]  }
  0x4b   :  { %706 = vmatmul.mubr.bf16.vlgmr.msra.gmra.mxu0 %v14553_v34  ;;  %v13741_v5 = vld [vmem:[%s16789_s23 + $0x300] sm:$0xff]  }
  0x4c   :  { %747 = vmatmul.mubr.bf16.vlgmr.msra.gmra.mxu1 %v14558_v35  ;;  %12166 = vmatpush3.bf16.msra.mxu0 %v13681_v6  ;;  %v13742_v6 = vld [vmem:[%s16789_s23 + $0x380] sm:$0xff]  }
  0x4d   :  { %12188 = vmatpush3.bf16.msra.mxu1 %v13682_v7  ;;  %1046 = vmatprep.mubr.bf16.mxu0 %v14542_v32  ;;  %v13743_v7 = vld [vmem:[%s16772_s2 + $0x78] sm:$0xff]  }
  0x4e   :  { %12167 = vmatprep.subr.bf16.mxu0 %v13683_v8  ;;  %1087 = vmatprep.mubr.bf16.mxu1 %v14547_v33  ;;  %v13745_v8 = vld [vmem:[%s16772_s2 + $0x38] sm:$0xff]  }
  0x4f   :  { %12189 = vmatprep.subr.bf16.mxu1 %v13684_v9  ;;  %v13749_v9 = vld [vmem:[%s16772_s2 + $0x70] sm:$0xff]  }
  0x50   :  { %12168 = vmatpush3.bf16.msra.mxu0 %v13685_v10  ;;  %v13754_v10 = vld [vmem:[%s16772_s2 + $0x28] sm:$0xff]  }
  0x51   :  { %12190 = vmatpush3.bf16.msra.mxu1 %v13686_v11  ;;  %12169 = vmatprep.subr.bf16.mxu0 %v13687_v12  ;;  %v13757_v11 = vld [vmem:[%s16772_s2 + $0x60] sm:$0xff]  }
  0x52   :  { %12191 = vmatprep.subr.bf16.mxu1 %v13688_v13  ;;  %v13758_v12 = vld [vmem:[%s16772_s2 + $0x20] sm:$0xff]   ;;  %v13761_v13 = vld [vmem:[%s16772_s2 + $0x58] sm:$0xff]  }
  0x54   :  { %12170 = vmatpush3.bf16.msra.mxu0 %v13689_v14  ;;  %v13762_v14 = vld [vmem:[%s16772_s2 + $0x18] sm:$0xff]  }
  0x55   :  { %12192 = vmatpush3.bf16.msra.mxu1 %v13690_v15  ;;  %12171 = vmatprep.subr.bf16.mxu0 %v13691_v16  ;;  %v13765_v15 = vld [vmem:[%s16772_s2 + $0x50] sm:$0xff]  }
  0x56   :  { %12193 = vmatprep.subr.bf16.mxu1 %v13692_v17  ;;  %v13766_v16 = vld [vmem:[%s16772_s2 + $0x10] sm:$0xff]   ;;  %v13769_v17 = vld [vmem:[%s16772_s2 + $0x48] sm:$0xff]  }
  0x58   :  { %12172 = vmatpush3.bf16.msra.mxu0 %v13693_v18  ;;  %v13770_v18 = vld [vmem:[%s16772_s2 + $0x8] sm:$0xff]  }
  0x59   :  { %12194 = vmatpush3.bf16.msra.mxu1 %v13694_v19  ;;  %12173 = vmatprep.subr.bf16.mxu0 %v13695_v20  ;;  %v13773_v19 = vld [vmem:[%s16772_s2 + $0x40] sm:$0xff]  }
  0x5a   :  { %12195 = vmatprep.subr.bf16.mxu1 %v13696_v21  ;;  %v13774_v20 = vld [vmem:[%s16772_s2] sm:$0xff]   ;;  %v13777_v21 = vld [vmem:[%s16772_s2 + $0x178] sm:$0xff]  }
  0x5c   :  { %12174 = vmatpush3.bf16.msra.mxu0 %v13697_v22  ;;  %v13778_v22 = vld [vmem:[%s16772_s2 + $0x138] sm:$0xff]  }
  0x5d   :  { %12196 = vmatpush3.bf16.msra.mxu1 %v13698_v23  ;;  %12175 = vmatprep.subr.bf16.mxu0 %v13699_v24  ;;  %v14925_v23 = vld [vmem:[%s16771_s0] ss:$16 sps:$4 sm:$0xff]   ;;  %v14931_v24 = vld [vmem:[%s16771_s0 + $0x4] ss:$16 sps:$4 sm:$0xff]  }
  0x5e   :  { %12197 = vmatprep.subr.bf16.mxu1 %v13700_v25  ;;  %v13781_v25 = vld [vmem:[%s16772_s2 + $0x170] sm:$0xff]  }
  0x60   :  { %12176 = vmatpush3.bf16.msra.mxu0 %v13701_v26  ;;  %v13782_v26 = vld [vmem:[%s16772_s2 + $0x130] sm:$0xff]  }
  0x61   :  { %12198 = vmatpush3.bf16.msra.mxu1 %v13702_v27  ;;  %12177 = vmatprep.subr.bf16.mxu0 %v13703_v28  ;;  %v13785_v27 = vld [vmem:[%s16772_s2 + $0x168] sm:$0xff]  }
  0x62   :  { %12199 = vmatprep.subr.bf16.mxu1 %v13704_v29  ;;  %v13786_v28 = vld [vmem:[%s16772_s2 + $0x128] sm:$0xff]   ;;  %v13789_v29 = vld [vmem:[%s16772_s2 + $0x160] sm:$0xff]  }
  0x64   :  { %12178 = vmatpush3.bf16.msra.mxu0 %v13705_v30  ;;  %v13790_v30 = vld [vmem:[%s16772_s2 + $0x120] sm:$0xff]  }
  0x65   :  { %12200 = vmatpush3.bf16.msra.mxu1 %v13706_v31  ;;  %12179 = vmatprep.subr.bf16.mxu0 %v13707_v36  ;;  %v13793_v31 = vld [vmem:[%s16772_s2 + $0x158] sm:$0xff]  }
  0x66   :  { %12201 = vmatprep.subr.bf16.mxu1 %v13708_v37  ;;  %v13794_v36 = vld [vmem:[%s16772_s2 + $0x118] sm:$0xff]   ;;  %v13797_v37 = vld [vmem:[%s16772_s2 + $0x150] sm:$0xff]  }
  0x68   :  { %12180 = vmatpush3.bf16.msra.mxu0 %v13709_v38  ;;  %v13798_v38 = vld [vmem:[%s16772_s2 + $0x110] sm:$0xff]  }
  0x69   :  { %12202 = vmatpush3.bf16.msra.mxu1 %v13710_v39  ;;  %12209 = vmatprep.subr.bf16.mxu0 %v13711_v40  ;;  %v13801_v39 = vld [vmem:[%s16772_s2 + $0x148] sm:$0xff]   ;;  %v14357_v40 = vmov 0  }
  0x6a   :  { %12231 = vmatprep.subr.bf16.mxu1 %v13712_v41  ;;  %13608 = vset.pattern.permute.xlu1 %v14357_v40  ;;  %v4696_v41 = vld [vmem:[%s16774_s7] sm:$0xff] }
  0x6b   :  { %1047 = vmatmul.mubr.bf16.vlgmr.msra.gmra.mxu0 %v14553_v34  ;;  %13607 = vset.pattern.permute.xlu0 %v14357_v40 }
  0x6c   :  { %1088 = vmatmul.mubr.bf16.vlgmr.msra.gmra.mxu1 %v14558_v35  ;;  %12210 = vmatpush3.bf16.msra.mxu0 %v13713_v42  ;;  %v4698_v42 = vld [vmem:[%s16774_s7 + $0x10] sm:$0xff] }
  0x6d   :  { %12232 = vmatpush3.bf16.msra.mxu1 %v13714_v43  ;;  %1387 = vmatprep.mubr.bf16.mxu0 %v14542_v32  ;;  %v13802_v43 = vld [vmem:[%s16772_s2 + $0x108] sm:$0xff]  }
  0x6e   :  { %12211 = vmatprep.subr.bf16.mxu0 %v13715_v44  ;;  %1428 = vmatprep.mubr.bf16.mxu1 %v14547_v33  ;;  %v13721_v33 = vld [vmem:[%s16789_s23 + $0x328] sm:$0xff]  }
  0x6f   :  { %12233 = vmatprep.subr.bf16.mxu1 %v13716_v45  ;;  %4702 = vperm.xlu0 %13607, %v4696_v41   ;;  %v4697_v44 = vld [vmem:[%s16774_s7 + $0x8] sm:$0xff]  ;;  %v13805_v45 = vld [vmem:[%s16772_s2 + $0x140] sm:$0xff]  }
  0x70   :  { %12212 = vmatpush3.bf16.msra.mxu0 %v13717_v46  ;;  %4712 = vperm.xlu1 %13608, %v4698_v42   ;;  %v4699_v46 = vld [vmem:[%s16774_s7 + $0x18] sm:$0xff]  ;;  %v13854_v42 = vld [vmem:[%s16772_s2 + $0x320] sm:$0xff]  }
  0x71   :  { %12234 = vmatpush3.bf16.msra.mxu1 %v13718_v47  ;;  %12213 = vmatprep.subr.bf16.mxu0 %v13719_v48  ;;  %v13806_v47 = vld [vmem:[%s16772_s2 + $0x100] sm:$0xff]  }
  0x72   :  { %12235 = vmatprep.subr.bf16.mxu1 %v13720_v49  ;;  %v6102_v48 = vld [vmem:[%s16775_s9] sm:$0xff]  ;;  %v6103_v49 = vld [vmem:[%s16775_s9 + $0x8] sm:$0xff] }
  0x73   :  { %4707 = vperm.xlu0 %13607, %v4697_v44  }
  0x74   :  { %12214 = vmatpush3.bf16.msra.mxu0 %v13721_v33  ;;  %4717 = vperm.xlu1 %13608, %v4699_v46   ;;  %v13809_v33 = vld [vmem:[%s16772_s2 + $0x278] sm:$0xff]  }
  0x75   :  { %12236 = vmatpush3.bf16.msra.mxu1 %v13722_v50  ;;  %12215 = vmatprep.subr.bf16.mxu0 %v13723_v51  ;;  %v13810_v50 = vld [vmem:[%s16772_s2 + $0x238] sm:$0xff]  }
  0x76   :  { %12237 = vmatprep.subr.bf16.mxu1 %v13724_v52  ;;  %v6105_v51 = vld [vmem:[%s16775_s9 + $0x18] sm:$0xff]  ;;  %v6104_v52 = vld [vmem:[%s16775_s9 + $0x10] sm:$0xff] }
  0x77   :  { %6108 = vperm.xlu0 %13607, %v6102_v48  }
  0x78   :  { %12216 = vmatpush3.bf16.msra.mxu0 %v13725_v53  ;;  %6113 = vperm.xlu1 %13608, %v6103_v49   ;;  %v13813_v53 = vld [vmem:[%s16772_s2 + $0x270] sm:$0xff]  }
  0x79   :  { %12238 = vmatpush3.bf16.msra.mxu1 %v13726_v54  ;;  %12217 = vmatprep.subr.bf16.mxu0 %v13727_v55  ;;  %v13814_v55 = vld [vmem:[%s16772_s2 + $0x230] sm:$0xff]  }
  0x7a   :  { %12239 = vmatprep.subr.bf16.mxu1 %v13728_v56 }
  0x7b   :  { %6118 = vperm.xlu0 %13607, %v6104_v52  }
  0x7c   :  { %12218 = vmatpush3.bf16.msra.mxu0 %v13729_v57  ;;  %6123 = vperm.xlu1 %13608, %v6105_v51   ;;  %v1445_v57 = vld [vmem:[%s16776_s5 + $0x8] sm:$0xff] }
  0x7d   :  { %12240 = vmatpush3.bf16.msra.mxu1 %v13730_v58  ;;  %12219 = vmatprep.subr.bf16.mxu0 %v13731_v59  ;;  %v1444_v58 = vld [vmem:[%s16776_s5] sm:$0xff] }
  0x7e   :  { %12241 = vmatprep.subr.bf16.mxu1 %v13732_v60  ;;  %v13817_v60 = vld [vmem:[%s16772_s2 + $0x268] sm:$0xff]  }
  0x7f   :  { %1450 = vperm.xlu0 %13607, %v1444_v58  }
  0x80   :  { %12220 = vmatpush3.bf16.msra.mxu0 %v13733_v61  ;;  %1455 = vperm.xlu1 %13608, %v1445_v57  }
  0x81   :  { %12242 = vmatpush3.bf16.msra.mxu1 %v13734_v62  ;;  %12221 = vmatprep.subr.bf16.mxu0 %v13735_v63  ;;  %v13818_v62 = vld [vmem:[%s16772_s2 + $0x228] sm:$0xff]   ;;  %v1447_v63 = vld [vmem:[%s16776_s5 + $0x18] sm:$0xff] }
  0x82   :  { %12243 = vmatprep.subr.bf16.mxu1 %v13736_v0  ;;  %v1446_v0 = vld [vmem:[%s16776_s5 + $0x10] sm:$0xff] }
  0x83   :  { %1460 = vperm.xlu0 %13607, %v1446_v0  }
  0x84   :  { %12222 = vmatpush3.bf16.msra.mxu0 %v13737_v1  ;;  %1465 = vperm.xlu1 %13608, %v1447_v63  }
  0x85   :  { %12244 = vmatpush3.bf16.msra.mxu1 %v13738_v2  ;;  %12223 = vmatprep.subr.bf16.mxu0 %v13739_v3  ;;  %v13821_v2 = vld [vmem:[%s16772_s2 + $0x260] sm:$0xff]  }
  0x86   :  { %12245 = vmatprep.subr.bf16.mxu1 %v13740_v4  ;;  %v13822_v4 = vld [vmem:[%s16772_s2 + $0x220] sm:$0xff]  }
  0x88   :  { %12224 = vmatpush3.bf16.msra.mxu0 %v13741_v5 }
  0x89   :  { %12246 = vmatpush3.bf16.msra.mxu1 %v13742_v6  ;;  %v13825_v6 = vld [vmem:[%s16772_s2 + $0x258] sm:$0xff]  }
  0x8a   :  { %12256 = vmatprep.subr.bf16.mxu1 %v13743_v7 }
  0x8b   :  { %1388 = vmatmul.mubr.bf16.vlgmr.msra.gmra.mxu0 %v14553_v34  ;;  %v13744_v34 = vld [vmem:[%s16773_s4] sm:$0xff]  }
  0x8c   :  { %1429 = vmatmul.mubr.bf16.vlgmr.msra.gmra.mxu1 %v14558_v35  ;;  %13026 = vmatprep.mubr.msk.bf16.mxu0 %vm1478_vm0, %v13744_v34  ;;  %v13753_v35 = vld [vmem:[%s16772_s2 + $0x68] sm:$0xff]  }
  0x8d   :  { %1822 = vmatprep.mubr.bf16.mxu1 %v14542_v32  ;;  %12257 = vmatpush3.bf16.msra.mxu1 %v13745_v8  ;;  %v13750_v32 = vld [vmem:[%s16772_s2 + $0x30] sm:$0xff]   ;;  %v13826_v8 = vld [vmem:[%s16772_s2 + $0x218] sm:$0xff]  }
  0x8e   :  { %12258 = vmatprep.subr.bf16.mxu1 %v13749_v9 }
  0x91   :  { %12259 = vmatpush3.bf16.msra.mxu1 %v13750_v32  ;;  %v13829_v32 = vld [vmem:[%s16772_s2 + $0x250] sm:$0xff]  }
  0x92   :  { %12260 = vmatprep.subr.bf16.mxu1 %v13753_v35  ;;  %v13830_v35 = vld [vmem:[%s16772_s2 + $0x210] sm:$0xff]  }
  0x95   :  { %12261 = vmatpush3.bf16.msra.mxu1 %v13754_v10 }
  0x96   :  { %12262 = vmatprep.subr.bf16.mxu1 %v13757_v11 }
  0x99   :  { %12263 = vmatpush3.bf16.msra.mxu1 %v13758_v12  ;;  %v13833_v12 = vld [vmem:[%s16772_s2 + $0x248] sm:$0xff]  }
  0x9a   :  { %12264 = vmatprep.subr.bf16.mxu1 %v13761_v13  ;;  %v13834_v13 = vld [vmem:[%s16772_s2 + $0x208] sm:$0xff]  }
  0x9d   :  { %12265 = vmatpush3.bf16.msra.mxu1 %v13762_v14 }
  0x9e   :  { %12266 = vmatprep.subr.bf16.mxu1 %v13765_v15 }
  0xa1   :  { %12267 = vmatpush3.bf16.msra.mxu1 %v13766_v16  ;;  %v13837_v16 = vld [vmem:[%s16772_s2 + $0x240] sm:$0xff]  }
  0xa2   :  { %12268 = vmatprep.subr.bf16.mxu1 %v13769_v17  ;;  %v13838_v17 = vld [vmem:[%s16772_s2 + $0x200] sm:$0xff]  }
  0xa5   :  { %12269 = vmatpush3.bf16.msra.mxu1 %v13770_v18 }
  0xa6   :  { %12270 = vmatprep.subr.bf16.mxu1 %v13773_v19 }
  0xa9   :  { %12271 = vmatpush3.bf16.msra.mxu1 %v13774_v20 }
  0xaa   :  { %12300 = vmatprep.subr.bf16.mxu1 %v13777_v21  ;;  %v13841_v21 = vld [vmem:[%s16772_s2 + $0x378] sm:$0xff]  }
  0xac   :  { %1823 = vmatmul.mubr.bf16.vlgmr.msra.gmra.mxu1 %v14925_v23 }
  0xad   :  { %12301 = vmatpush3.bf16.msra.mxu1 %v13778_v22  ;;  %2171 = vmatprep.mubr.bf16.mxu1 %v14931_v24 }
  0xae   :  { %12302 = vmatprep.subr.bf16.mxu1 %v13781_v25  ;;  %v13842_v25 = vld [vmem:[%s16772_s2 + $0x338] sm:$0xff]  }
  0xb1   :  { %12303 = vmatpush3.bf16.msra.mxu1 %v13782_v26 }
  0xb2   :  { %12304 = vmatprep.subr.bf16.mxu1 %v13785_v27  ;;  %v13845_v27 = vld [vmem:[%s16772_s2 + $0x370] sm:$0xff]  }
  0xb5   :  { %12305 = vmatpush3.bf16.msra.mxu1 %v13786_v28 }
  0xb6   :  { %12306 = vmatprep.subr.bf16.mxu1 %v13789_v29  ;;  %v13846_v29 = vld [vmem:[%s16772_s2 + $0x330] sm:$0xff]  }
  0xb9   :  { %12307 = vmatpush3.bf16.msra.mxu1 %v13790_v30 }
  0xba   :  { %12308 = vmatprep.subr.bf16.mxu1 %v13793_v31  ;;  %v13849_v31 = vld [vmem:[%s16772_s2 + $0x368] sm:$0xff]  }
  0xbd   :  { %12309 = vmatpush3.bf16.msra.mxu1 %v13794_v36 }
  0xbe   :  { %12310 = vmatprep.subr.bf16.mxu1 %v13797_v37  ;;  %v13850_v37 = vld [vmem:[%s16772_s2 + $0x328] sm:$0xff]  }
  0xc1   :  { %12311 = vmatpush3.bf16.msra.mxu1 %v13798_v38 }
  0xc2   :  { %12312 = vmatprep.subr.bf16.mxu1 %v13801_v39  ;;  %v13853_v39 = vld [vmem:[%s16772_s2 + $0x360] sm:$0xff]  }
  0xc5   :  { %12313 = vmatpush3.bf16.msra.mxu1 %v13802_v43 }
  0xc6   :  { %12314 = vmatprep.subr.bf16.mxu1 %v13805_v45 }
  0xc9   :  { %12315 = vmatpush3.bf16.msra.mxu1 %v13806_v47 }
  0xca   :  { %12344 = vmatprep.subr.bf16.mxu1 %v13809_v33 }
  0xcc   :  { %2172 = vmatmul.mubr.bf16.vlgmr.msra.gmra.mxu1 %v14925_v23 }
  0xcd   :  { %12345 = vmatpush3.bf16.msra.mxu1 %v13810_v50  ;;  %2520 = vmatprep.mubr.bf16.mxu1 %v14931_v24 }
  0xce   :  { %12346 = vmatprep.subr.bf16.mxu1 %v13813_v53 }
  0xd1   :  { %12347 = vmatpush3.bf16.msra.mxu1 %v13814_v55 }
  0xd2   :  { %12348 = vmatprep.subr.bf16.mxu1 %v13817_v60  ;;  %v13857_v60 = vld [vmem:[%s16772_s2 + $0x358] sm:$0xff]  }
  0xd5   :  { %12349 = vmatpush3.bf16.msra.mxu1 %v13818_v62 }
  0xd6   :  { %12350 = vmatprep.subr.bf16.mxu1 %v13821_v2 }
  0xd9   :  { %12351 = vmatpush3.bf16.msra.mxu1 %v13822_v4 }
  0xda   :  { %12352 = vmatprep.subr.bf16.mxu1 %v13825_v6 }
  0xdd   :  { %12353 = vmatpush3.bf16.msra.mxu1 %v13826_v8 }
  0xde   :  { %12354 = vmatprep.subr.bf16.mxu1 %v13829_v32 }
  0xe1   :  { %12355 = vmatpush3.bf16.msra.mxu1 %v13830_v35 }
  0xe2   :  { %12356 = vmatprep.subr.bf16.mxu1 %v13833_v12 }
  0xe5   :  { %12357 = vmatpush3.bf16.msra.mxu1 %v13834_v13 }
  0xe6   :  { %12358 = vmatprep.subr.bf16.mxu1 %v13837_v16  ;;  %v13866_v16 = vld [vmem:[%s16772_s2 + $0x308] sm:$0xff]  }
  0xe9   :  { %12359 = vmatpush3.bf16.msra.mxu1 %v13838_v17 }
  0xea   :  { %v15013_v54 = vpop.f32.mrf.mxu0  ;;  %12388 = vmatprep.subr.bf16.mxu1 %v13841_v21  ;;  %v13746_v21 = vld [vmem:[%s16773_s4 + $0x8] sm:$0xff]  }
  0xeb   :  { %v15018_v56 = vpop.f32.mrf.mxu1 }
  0xec   :  { %v15026_v59 = vpop.f32.mrf.mxu0  ;;  %2521 = vmatmul.mubr.bf16.vlgmr.msra.gmra.mxu1 %v14925_v23 }
  0xed   :  { %v15031_v61 = vpop.f32.mrf.mxu1  ;;  %12389 = vmatpush3.bf16.msra.mxu1 %v13842_v25  ;;  %2869 = vmatprep.mubr.bf16.mxu1 %v14931_v24  ;;  %v12095_v48 = vadd.f32 %v15026_v59, %v15013_v54  ;;  %v13858_v54 = vld [vmem:[%s16772_s2 + $0x318] sm:$0xff]   ;;  %v13870_v25 = vld [vmem:[%s16772_s2 + $0x300] sm:$0xff]  }
  0xee   :  { %v15042_v1 = vpop.f32.mrf.mxu0  ;;  %12390 = vmatprep.subr.bf16.mxu1 %v13845_v27  ;;  %v12117_v49 = vadd.f32 %v15031_v61, %v15018_v56  ;;  %v13751_v27 = vld [vmem:[%s16772_s2 + $0xf0] sm:$0xff]  }
  0xef   :  { %v15047_v3 = vpop.f32.mrf.mxu1 }
  0xf0   :  { %v12097_v5 = vpop.f32.mrf.mxu0  ;;  %v410_v2 = vadd.f32 %v12117_v49, %v12095_v48  ;;  %v13889_v48 = vld [vmem:[%s16772_s2 + $0x458] sm:$0xff]  }
  0xf1   :  { %v12119_v7 = vpop.f32.mrf.mxu1  ;;  %12391 = vmatpush3.bf16.msra.mxu1 %v13846_v29  ;;  %v12098_v33 = vadd.f32 %v12097_v5, %v15042_v1  ;;  %v13874_v29 = vld [vmem:[%s16772_s2 + $0x438] sm:$0xff]  }
  0xf2   :  { %12392 = vmatprep.subr.bf16.mxu1 %v13849_v31  ;;  %v12120_v50 = vadd.f32 %v12119_v7, %v15047_v3  ;;  %v13861_v7 = vld [vmem:[%s16772_s2 + $0x350] sm:$0xff]   ;;  %v13755_v31 = vld [vmem:[%s16772_s2 + $0xe8] sm:$0xff]   ;;  %v13890_v49 = vld [vmem:[%s16772_s2 + $0x418] sm:$0xff]  }
  0xf4   :  { %v413_v3 = vadd.f32 %v12120_v50, %v12098_v33  ;;  %v13768_v33 = vld [vmem:[%s16772_s2 + $0x90] sm:$0xff]   ;;  %v13771_v50 = vld [vmem:[%s16772_s2 + $0xc8] sm:$0xff]  }
  0xf5   :  { %12393 = vmatpush3.bf16.msra.mxu1 %v13850_v37  ;;  %v13877_v37 = vld [vmem:[%s16772_s2 + $0x470] sm:$0xff]  }
  0xf6   :  { %12394 = vmatprep.subr.bf16.mxu1 %v13853_v39  ;;  %v13756_v39 = vld [vmem:[%s16772_s2 + $0xa8] sm:$0xff]  }
  0xf9   :  { %12395 = vmatpush3.bf16.msra.mxu1 %v13854_v42  ;;  %v13760_v42 = vld [vmem:[%s16772_s2 + $0xa0] sm:$0xff]  }
  0xfa   :  { %12396 = vmatprep.subr.bf16.mxu1 %v13857_v60  ;;  %v13776_v60 = vld [vmem:[%s16772_s2 + $0x80] sm:$0xff]  }
  0xfd   :  { %12397 = vmatpush3.bf16.msra.mxu1 %v13858_v54  ;;  %v13901_v54 = vld [vmem:[%s16772_s2 + $0x440] sm:$0xff]  }
  0xfe   :  { %12398 = vmatprep.subr.bf16.mxu1 %v13861_v7  ;;  %v15283_v7 = vld [vmem:[%s16771_s0 + $0x4] ss:$16 sps:$4 sm:$0xff]  }
 0x10b   :  { %v12137_v9 = vpop.f32.mrf.mxu0 }
 0x10c   :  { %v12159_v34 = vpop.f32.mrf.mxu1 }
 0x10d   :  { %v12138_v10 = vpop.f32.mrf.mxu0 }
 0x10e   :  { %v12160_v11 = vpop.f32.mrf.mxu1  ;;  %v12139_v43 = vadd.f32 %v12138_v10, %v12137_v9 }
 0x10f   :  { %v12140_v14 = vpop.f32.mrf.mxu0  ;;  %v12161_v44 = vadd.f32 %v12160_v11, %v12159_v34  ;;  %v13862_v34 = vld [vmem:[%s16772_s2 + $0x310] sm:$0xff]  }
 0x110   :  { %v12162_v15 = vpop.f32.mrf.mxu1  ;;  %12399 = vmatpush3.bf16.msra.mxu1 %v13862_v34  ;;  %v13913_v34 = vld [vmem:[%s16772_s2 + $0x568] sm:$0xff]  }
 0x111   :  { %v12141_v18 = vpop.f32.mrf.mxu0  ;;  %v749_v56 = vadd.f32 %v12161_v44, %v12139_v43  ;;  %v13763_v43 = vld [vmem:[%s16772_s2 + $0xd8] sm:$0xff]   ;;  %v13885_v44 = vld [vmem:[%s16772_s2 + $0x460] sm:$0xff]  }
 0x112   :  { %v12163_v19 = vpop.f32.mrf.mxu1  ;;  %v12142_v45 = vadd.f32 %v12141_v18, %v12140_v14 }
 0x113   :  { %v12164_v46 = vadd.f32 %v12163_v19, %v12162_v15  ;;  %v755_v32 = vmax.f32 %v410_v2, %v749_v56  ;;  %v13865_v15 = vld [vmem:[%s16772_s2 + $0x348] sm:$0xff]   ;;  %v13747_v19 = vld [vmem:[%s16772_s2 + $0xf8] sm:$0xff]   ;;  %v13902_v56 = vld [vmem:[%s16772_s2 + $0x400] sm:$0xff]  }
 0x114   :  { %12400 = vmatprep.subr.bf16.mxu1 %v13865_v15  ;;  %v13784_v2 = vld [vmem:[%s16772_s2 + $0x1b0] sm:$0xff]   ;;  %v13921_v15 = vld [vmem:[%s16772_s2 + $0x558] sm:$0xff]  }
 0x115   :  { %v752_v59 = vadd.f32 %v12164_v46, %v12142_v45  ;;  %12401 = vmatpush3.bf16.msra.mxu1 %v13866_v16  ;;  %v13886_v45 = vld [vmem:[%s16772_s2 + $0x420] sm:$0xff]   ;;  %v13764_v46 = vld [vmem:[%s16772_s2 + $0x98] sm:$0xff]  }
 0x116   :  { %v13922_v16 = vld [vmem:[%s16772_s2 + $0x518] sm:$0xff]  }
 0x117   :  { %v756_v35 = vmax.f32 %v413_v3, %v752_v59  ;;  %v13780_v59 = vld [vmem:[%s16772_s2 + $0x1b8] sm:$0xff]   ;;  %v13787_v3 = vld [vmem:[%s16772_s2 + $0x1e8] sm:$0xff]  }
 0x12b   :  { %v12181_v20 = vpop.f32.mrf.mxu0 }
 0x12c   :  { %v12203_v22 = vpop.f32.mrf.mxu1 }
 0x12d   :  { %v12182_v26 = vpop.f32.mrf.mxu0 }
 0x12e   :  { %v12204_v28 = vpop.f32.mrf.mxu1  ;;  %v12183_v52 = vadd.f32 %v12182_v26, %v12181_v20  ;;  %v13748_v26 = vld [vmem:[%s16772_s2 + $0xb8] sm:$0xff]  }
 0x12f   :  { %v12184_v30 = vpop.f32.mrf.mxu0  ;;  %v12205_v53 = vadd.f32 %v12204_v28, %v12203_v22  ;;  %v13869_v22 = vld [vmem:[%s16772_s2 + $0x340] sm:$0xff]   ;;  %v13873_v28 = vld [vmem:[%s16772_s2 + $0x478] sm:$0xff]  }
 0x130   :  { %v12206_v36 = vpop.f32.mrf.mxu1  ;;  %12402 = vmatprep.subr.bf16.mxu1 %v13869_v22  ;;  %v13807_v22 = vld [vmem:[%s16772_s2 + $0x1c0] sm:$0xff]  }
 0x131   :  { %v12185_v38 = vpop.f32.mrf.mxu0  ;;  %v1090_v4 = vadd.f32 %v12205_v53, %v12183_v52  ;;  %12403 = vmatpush3.bf16.msra.mxu1 %v13870_v25  ;;  %v13894_v52 = vld [vmem:[%s16772_s2 + $0x410] sm:$0xff]   ;;  %v13772_v53 = vld [vmem:[%s16772_s2 + $0x88] sm:$0xff]  }
 0x132   :  { %v12207_v41 = vpop.f32.mrf.mxu1  ;;  %v12186_v55 = vadd.f32 %v12185_v38, %v12184_v30  ;;  %v13752_v30 = vld [vmem:[%s16772_s2 + $0xb0] sm:$0xff]   ;;  %12432 = vmatprep.subr.bf16.mxu1 %v13873_v28  ;;  %v13929_v25 = vld [vmem:[%s16772_s2 + $0x548] sm:$0xff]   ;;  %v13811_v28 = vld [vmem:[%s16772_s2 + $0x2f8] sm:$0xff]  }
 0x133   :  { %v12208_v57 = vadd.f32 %v12207_v41, %v12206_v36  ;;  %v1096_v12 = vmax.f32 %v755_v32, %v1090_v4  ;;  %v15160_v36 = vld [vmem:[%s16771_s0 + $0xc] ss:$16 sps:$4 sm:$0xff]   ;;  %v13878_v38 = vld [vmem:[%s16772_s2 + $0x430] sm:$0xff]  }
 0x134   :  { %2870 = vmatmul.mubr.bf16.vlgmr.msra.gmra.mxu1 %v14925_v23  ;;  %v13759_v23 = vld [vmem:[%s16772_s2 + $0xe0] sm:$0xff]   ;;  %v13881_v41 = vld [vmem:[%s16772_s2 + $0x468] sm:$0xff]  }
 0x135   :  { %v1093_v5 = vadd.f32 %v12208_v57, %v12186_v55  ;;  %12433 = vmatpush3.bf16.msra.mxu1 %v13874_v29  ;;  %3218 = vmatprep.mubr.bf16.mxu1 %v14931_v24  ;;  %v13882_v24 = vld [vmem:[%s16772_s2 + $0x428] sm:$0xff]   ;;  %v13775_v55 = vld [vmem:[%s16772_s2 + $0xc0] sm:$0xff]  }
 0x136   :  { %12434 = vmatprep.subr.bf16.mxu1 %v13877_v37  ;;  %v13897_v57 = vld [vmem:[%s16772_s2 + $0x448] sm:$0xff]   ;;  %v15271_v4 = vld [vmem:[%s16771_s0] ss:$16 sps:$4 sm:$0xff]  }
 0x137   :  { %v1097_v13 = vmax.f32 %v756_v35, %v1093_v5  ;;  %v13909_v5 = vld [vmem:[%s16772_s2 + $0x570] sm:$0xff]   ;;  %v13914_v32 = vld [vmem:[%s16772_s2 + $0x528] sm:$0xff]   ;;  %v13792_v35 = vld [vmem:[%s16772_s2 + $0x1a0] sm:$0xff]  }
 0x138   :  { %v13933_v29 = vld [vmem:[%s16772_s2 + $0x540] sm:$0xff]   ;;  %v13815_v37 = vld [vmem:[%s16772_s2 + $0x2f0] sm:$0xff]  }
 0x139   :  { %12435 = vmatpush3.bf16.msra.mxu1 %v13878_v38  ;;  %v13937_v38 = vld [vmem:[%s16772_s2 + $0x678] sm:$0xff]  }
 0x13a   :  { %12436 = vmatprep.subr.bf16.mxu1 %v13881_v41  ;;  %v13819_v41 = vld [vmem:[%s16772_s2 + $0x2e8] sm:$0xff]  }
 0x13d   :  { %12437 = vmatpush3.bf16.msra.mxu1 %v13882_v24  ;;  %v13941_v24 = vld [vmem:[%s16772_s2 + $0x670] sm:$0xff]  }
 0x13e   :  { %12438 = vmatprep.subr.bf16.mxu1 %v13885_v44  ;;  %v13823_v44 = vld [vmem:[%s16772_s2 + $0x2e0] sm:$0xff]  }
 0x141   :  { %12439 = vmatpush3.bf16.msra.mxu1 %v13886_v45  ;;  %v13945_v45 = vld [vmem:[%s16772_s2 + $0x668] sm:$0xff]  }
 0x142   :  { %12440 = vmatprep.subr.bf16.mxu1 %v13889_v48  ;;  %v13827_v48 = vld [vmem:[%s16772_s2 + $0x2d8] sm:$0xff]  }
 0x145   :  { %12441 = vmatpush3.bf16.msra.mxu1 %v13890_v49  ;;  %v13949_v49 = vld [vmem:[%s16772_s2 + $0x660] sm:$0xff]  }
 0x14b   :  { %v12225_v47 = vpop.f32.mrf.mxu0 }
 0x14c   :  { %v12247_v51 = vpop.f32.mrf.mxu1 }
 0x14d   :  { %v12226_v58 = vpop.f32.mrf.mxu0 }
 0x14e   :  { %v12248_v62 = vpop.f32.mrf.mxu1  ;;  %v12227_v61 = vadd.f32 %v12226_v58, %v12225_v47  ;;  %v13767_v47 = vld [vmem:[%s16772_s2 + $0xd0] sm:$0xff]   ;;  %v13898_v58 = vld [vmem:[%s16772_s2 + $0x408] sm:$0xff]  }
 0x14f   :  { %v12249_v63 = vadd.f32 %v12248_v62, %v12247_v51  ;;  %v12228_v0 = vpop.f32.mrf.mxu0  ;;  %v13893_v51 = vld [vmem:[%s16772_s2 + $0x450] sm:$0xff]   ;;  %v13779_v62 = vld [vmem:[%s16772_s2 + $0x1f8] sm:$0xff]  }
 0x150   :  { %v12250_v1 = vpop.f32.mrf.mxu1  ;;  %12442 = vmatprep.subr.bf16.mxu1 %v13893_v51  ;;  %v13831_v51 = vld [vmem:[%s16772_s2 + $0x2d0] sm:$0xff]  }
 0x151   :  { %v12229_v6 = vpop.f32.mrf.mxu0  ;;  %v1431_v10 = vadd.f32 %v12249_v63, %v12227_v61  ;;  %12443 = vmatpush3.bf16.msra.mxu1 %v13894_v52  ;;  %v13783_v61 = vld [vmem:[%s16772_s2 + $0x1f0] sm:$0xff]   ;;  %v13905_v63 = vld [vmem:[%s16772_s2 + $0x578] sm:$0xff]  }
 0x152   :  { %v12230_v8 = vadd.f32 %v12229_v6, %v12228_v0  ;;  %v12251_v9 = vpop.f32.mrf.mxu1  ;;  %12444 = vmatprep.subr.bf16.mxu1 %v13897_v57  ;;  %v13906_v0 = vld [vmem:[%s16772_s2 + $0x538] sm:$0xff]   ;;  %v13910_v6 = vld [vmem:[%s16772_s2 + $0x530] sm:$0xff]   ;;  %v13835_v57 = vld [vmem:[%s16772_s2 + $0x2c8] sm:$0xff]  }
 0x153   :  { %v12252_v11 = vadd.f32 %v12251_v9, %v12250_v1  ;;  %v1437_v17 = vmax.f32 %v1096_v12, %v1431_v10  ;;  %v15258_v1 = vld [vmem:[%s16771_s0 + $0x8] ss:$16 sps:$4 sm:$0xff]   ;;  %v13791_v9 = vld [vmem:[%s16772_s2 + $0x1e0] sm:$0xff]  }
 0x154   :  { %v13795_v10 = vld [vmem:[%s16772_s2 + $0x1d8] sm:$0xff]   ;;  %v13918_v12 = vld [vmem:[%s16772_s2 + $0x520] sm:$0xff]  }
 0x155   :  { %v1434_v14 = vadd.f32 %v12252_v11, %v12230_v8  ;;  %12445 = vmatpush3.bf16.msra.mxu1 %v13898_v58  ;;  %v13788_v8 = vld [vmem:[%s16772_s2 + $0x1a8] sm:$0xff]   ;;  %v13917_v11 = vld [vmem:[%s16772_s2 + $0x560] sm:$0xff]   ;;  %v13953_v52 = vld [vmem:[%s16772_s2 + $0x658] sm:$0xff]  }
 0x156   :  { %12446 = vmatprep.subr.bf16.mxu1 %v13901_v54  ;;  %v13957_v58 = vld [vmem:[%s16772_s2 + $0x650] sm:$0xff]   ;;  %v13839_v54 = vld [vmem:[%s16772_s2 + $0x2c0] sm:$0xff]  }
 0x157   :  { %v1438_v18 = vmax.f32 %v1097_v13, %v1434_v14  ;;  %v13796_v13 = vld [vmem:[%s16772_s2 + $0x198] sm:$0xff]   ;;  %v13799_v14 = vld [vmem:[%s16772_s2 + $0x1d0] sm:$0xff]  }
 0x159   :  { %v1439_v20 = vpack.c.bf16 %v1438_v18, %v1437_v17  ;;  %12447 = vmatpush3.bf16.msra.mxu1 %v13902_v56  ;;  %v13800_v17 = vld [vmem:[%s16772_s2 + $0x190] sm:$0xff]   ;;  %v13803_v18 = vld [vmem:[%s16772_s2 + $0x1c8] sm:$0xff]  }
 0x15a   :  { %12476 = vmatprep.subr.bf16.mxu1 %v13905_v63  ;;  %v13961_v56 = vld [vmem:[%s16772_s2 + $0x648] sm:$0xff]   ;;  %v13843_v63 = vld [vmem:[%s16772_s2 + $0x3f8] sm:$0xff]  }
 0x15b   :  { %13024 = vmatprep.subr.bf16.mxu0 %v1439_v20 }
 0x15c   :  { %13025 = vmatpush3.bf16.msra.mxu0 %v1439_v20  ;;  %3219 = vmatmul.mubr.bf16.vlgmr.msra.gmra.mxu1 %v15271_v4  ;;  %v13926_v20 = vld [vmem:[%s16772_s2 + $0x510] sm:$0xff]  }
 0x15d   :  { %12278 = vmatprep.subr.bf16.mxu0 %v13747_v19  ;;  %12477 = vmatpush3.bf16.msra.mxu1 %v13906_v0  ;;  %v13925_v19 = vld [vmem:[%s16772_s2 + $0x550] sm:$0xff]   ;;  %v13965_v0 = vld [vmem:[%s16772_s2 + $0x640] sm:$0xff]  }
 0x15e   :  { %3567 = vmatprep.mubr.bf16.mxu1 %v15283_v7  ;;  %12478 = vmatprep.subr.bf16.mxu1 %v13909_v5  ;;  %v13847_v5 = vld [vmem:[%s16772_s2 + $0x3f0] sm:$0xff]  }
 0x15f   :  { %13027 = vmatmul.mubr.msk.bf16.vlgmr.msra.gmra.mxu0 %vm1478_vm0, %v13746_v21  ;;  %v13804_v21 = vld [vmem:[%s16772_s2 + $0x188] sm:$0xff]  }
 0x160   :  { %12279 = vmatpush3.bf16.msra.mxu0 %v13748_v26  ;;  %1863 = vmatprep.mubr.bf16.mxu0 %v15160_v36  ;;  %v13930_v26 = vld [vmem:[%s16772_s2 + $0x508] sm:$0xff]  }
 0x161   :  { %12280 = vmatprep.subr.bf16.mxu0 %v13751_v27  ;;  %12479 = vmatpush3.bf16.msra.mxu1 %v13910_v6  ;;  %v13808_v27 = vld [vmem:[%s16772_s2 + $0x180] sm:$0xff]   ;;  %v13969_v6 = vld [vmem:[%s16772_s2 + $0x778] sm:$0xff]  }
 0x162   :  { %12480 = vmatprep.subr.bf16.mxu1 %v13913_v34  ;;  %v13851_v34 = vld [vmem:[%s16772_s2 + $0x3e8] sm:$0xff]  }
 0x164   :  { %12281 = vmatpush3.bf16.msra.mxu0 %v13752_v30  ;;  %v13934_v30 = vld [vmem:[%s16772_s2 + $0x500] sm:$0xff]  }
 0x165   :  { %12282 = vmatprep.subr.bf16.mxu0 %v13755_v31  ;;  %12481 = vmatpush3.bf16.msra.mxu1 %v13914_v32  ;;  %v13812_v31 = vld [vmem:[%s16772_s2 + $0x2b8] sm:$0xff]   ;;  %v13973_v32 = vld [vmem:[%s16772_s2 + $0x770] sm:$0xff]  }
 0x166   :  { %12482 = vmatprep.subr.bf16.mxu1 %v13917_v11  ;;  %v13977_v11 = vld [vmem:[%s16772_s2 + $0x768] sm:$0xff]  }
 0x168   :  { %12283 = vmatpush3.bf16.msra.mxu0 %v13756_v39  ;;  %v13938_v39 = vld [vmem:[%s16772_s2 + $0x638] sm:$0xff]  }
 0x169   :  { %12284 = vmatprep.subr.bf16.mxu0 %v13759_v23  ;;  %12483 = vmatpush3.bf16.msra.mxu1 %v13918_v12  ;;  %v13816_v23 = vld [vmem:[%s16772_s2 + $0x2b0] sm:$0xff]   ;;  %v13978_v12 = vld [vmem:[%s16772_s2 + $0x728] sm:$0xff]  }
 0x16a   :  { %12484 = vmatprep.subr.bf16.mxu1 %v13921_v15  ;;  %v13981_v15 = vld [vmem:[%s16772_s2 + $0x760] sm:$0xff]  }
 0x16c   :  { %12285 = vmatpush3.bf16.msra.mxu0 %v13760_v42  ;;  %v13942_v42 = vld [vmem:[%s16772_s2 + $0x630] sm:$0xff]  }
 0x16d   :  { %12286 = vmatprep.subr.bf16.mxu0 %v13763_v43  ;;  %12485 = vmatpush3.bf16.msra.mxu1 %v13922_v16  ;;  %v13820_v43 = vld [vmem:[%s16772_s2 + $0x2a8] sm:$0xff]   ;;  %v13982_v16 = vld [vmem:[%s16772_s2 + $0x720] sm:$0xff]  }
 0x16e   :  { %12486 = vmatprep.subr.bf16.mxu1 %v13925_v19  ;;  %v13985_v19 = vld [vmem:[%s16772_s2 + $0x758] sm:$0xff]  }
 0x170   :  { %12287 = vmatpush3.bf16.msra.mxu0 %v13764_v46  ;;  %v13946_v46 = vld [vmem:[%s16772_s2 + $0x628] sm:$0xff]  }
 0x171   :  { %12288 = vmatprep.subr.bf16.mxu0 %v13767_v47  ;;  %12487 = vmatpush3.bf16.msra.mxu1 %v13926_v20  ;;  %v13824_v47 = vld [vmem:[%s16772_s2 + $0x2a0] sm:$0xff]   ;;  %v13986_v20 = vld [vmem:[%s16772_s2 + $0x718] sm:$0xff]  }
 0x172   :  { %12488 = vmatprep.subr.bf16.mxu1 %v13929_v25  ;;  %v13989_v25 = vld [vmem:[%s16772_s2 + $0x750] sm:$0xff]  }
 0x174   :  { %12289 = vmatpush3.bf16.msra.mxu0 %v13768_v33  ;;  %v13950_v33 = vld [vmem:[%s16772_s2 + $0x620] sm:$0xff]  }
 0x175   :  { %12290 = vmatprep.subr.bf16.mxu0 %v13771_v50  ;;  %12489 = vmatpush3.bf16.msra.mxu1 %v13930_v26  ;;  %v13828_v50 = vld [vmem:[%s16772_s2 + $0x298] sm:$0xff]   ;;  %v13990_v26 = vld [vmem:[%s16772_s2 + $0x710] sm:$0xff]  }
 0x176   :  { %12490 = vmatprep.subr.bf16.mxu1 %v13933_v29  ;;  %v13993_v29 = vld [vmem:[%s16772_s2 + $0x748] sm:$0xff]  }
 0x178   :  { %12291 = vmatpush3.bf16.msra.mxu0 %v13772_v53  ;;  %v13954_v53 = vld [vmem:[%s16772_s2 + $0x618] sm:$0xff]  }
 0x179   :  { %12292 = vmatprep.subr.bf16.mxu0 %v13775_v55  ;;  %12491 = vmatpush3.bf16.msra.mxu1 %v13934_v30  ;;  %v13832_v55 = vld [vmem:[%s16772_s2 + $0x290] sm:$0xff]   ;;  %v13994_v30 = vld [vmem:[%s16772_s2 + $0x708] sm:$0xff]  }
 0x17a   :  { %12520 = vmatprep.subr.bf16.mxu1 %v13937_v38  ;;  %v13997_v38 = vld [vmem:[%s16772_s2 + $0x740] sm:$0xff]  }
 0x17c   :  { %12293 = vmatpush3.bf16.msra.mxu0 %v13776_v60  ;;  %3568 = vmatmul.mubr.bf16.vlgmr.msra.gmra.mxu1 %v15271_v4  ;;  %v13958_v60 = vld [vmem:[%s16772_s2 + $0x610] sm:$0xff]  }
 0x17d   :  { %12322 = vmatprep.subr.bf16.mxu0 %v13779_v62  ;;  %12521 = vmatpush3.bf16.msra.mxu1 %v13938_v39  ;;  %v13836_v62 = vld [vmem:[%s16772_s2 + $0x288] sm:$0xff]   ;;  %v13998_v39 = vld [vmem:[%s16772_s2 + $0x700] sm:$0xff]  }
 0x17e   :  { %3916 = vmatprep.mubr.bf16.mxu1 %v15283_v7  ;;  %12522 = vmatprep.subr.bf16.mxu1 %v13941_v24  ;;  %v14001_v24 = vld [vmem:[%s16772_s2 + $0x878] sm:$0xff]  }
 0x17f   :  { %1864 = vmatmul.mubr.bf16.vlgmr.msra.gmra.mxu0 %v15258_v1 }
 0x180   :  { %12323 = vmatpush3.bf16.msra.mxu0 %v13780_v59  ;;  %2212 = vmatprep.mubr.bf16.mxu0 %v15160_v36  ;;  %v13962_v59 = vld [vmem:[%s16772_s2 + $0x608] sm:$0xff]  }
 0x181   :  { %12324 = vmatprep.subr.bf16.mxu0 %v13783_v61  ;;  %12523 = vmatpush3.bf16.msra.mxu1 %v13942_v42  ;;  %v13840_v61 = vld [vmem:[%s16772_s2 + $0x280] sm:$0xff]   ;;  %v14002_v42 = vld [vmem:[%s16772_s2 + $0x838] sm:$0xff]  }
 0x182   :  { %12524 = vmatprep.subr.bf16.mxu1 %v13945_v45  ;;  %v15580_v45 = vld [vmem:[%s16771_s0 + $0xc] ss:$16 sps:$4 sm:$0xff]  }
 0x184   :  { %12325 = vmatpush3.bf16.msra.mxu0 %v13784_v2  ;;  %v13966_v2 = vld [vmem:[%s16772_s2 + $0x600] sm:$0xff]  }
 0x185   :  { %12326 = vmatprep.subr.bf16.mxu0 %v13787_v3  ;;  %12525 = vmatpush3.bf16.msra.mxu1 %v13946_v46  ;;  %v13844_v3 = vld [vmem:[%s16772_s2 + $0x3b8] sm:$0xff]   ;;  %v14006_v46 = vld [vmem:[%s16772_s2 + $0x830] sm:$0xff]  }
 0x186   :  { %12526 = vmatprep.subr.bf16.mxu1 %v13949_v49  ;;  %v13888_v49 = vld [vmem:[%s16772_s2 + $0x4a0] sm:$0xff]  }
 0x188   :  { %12327 = vmatpush3.bf16.msra.mxu0 %v13788_v8  ;;  %v13970_v8 = vld [vmem:[%s16772_s2 + $0x738] sm:$0xff]  }
 0x189   :  { %12328 = vmatprep.subr.bf16.mxu0 %v13791_v9  ;;  %12527 = vmatpush3.bf16.msra.mxu1 %v13950_v33  ;;  %v13848_v9 = vld [vmem:[%s16772_s2 + $0x3b0] sm:$0xff]   ;;  %v13891_v33 = vld [vmem:[%s16772_s2 + $0x4d8] sm:$0xff]  }
 0x18a   :  { %12528 = vmatprep.subr.bf16.mxu1 %v13953_v52  ;;  %v13892_v52 = vld [vmem:[%s16772_s2 + $0x498] sm:$0xff]  }
 0x18c   :  { %12329 = vmatpush3.bf16.msra.mxu0 %v13792_v35  ;;  %v13974_v35 = vld [vmem:[%s16772_s2 + $0x730] sm:$0xff]  }
 0x18d   :  { %12330 = vmatprep.subr.bf16.mxu0 %v13795_v10  ;;  %12529 = vmatpush3.bf16.msra.mxu1 %v13954_v53  ;;  %v13852_v10 = vld [vmem:[%s16772_s2 + $0x3a8] sm:$0xff]   ;;  %v13895_v53 = vld [vmem:[%s16772_s2 + $0x4d0] sm:$0xff]  }
 0x18e   :  { %12530 = vmatprep.subr.bf16.mxu1 %v13957_v58  ;;  %v13896_v58 = vld [vmem:[%s16772_s2 + $0x490] sm:$0xff]  }
 0x190   :  { %12331 = vmatpush3.bf16.msra.mxu0 %v13796_v13  ;;  %v13856_v13 = vld [vmem:[%s16772_s2 + $0x3a0] sm:$0xff]  }
 0x191   :  { %12332 = vmatprep.subr.bf16.mxu0 %v13799_v14  ;;  %12531 = vmatpush3.bf16.msra.mxu1 %v13958_v60  ;;  %v13859_v14 = vld [vmem:[%s16772_s2 + $0x3d8] sm:$0xff]   ;;  %v13899_v60 = vld [vmem:[%s16772_s2 + $0x4c8] sm:$0xff]  }
 0x192   :  { %12532 = vmatprep.subr.bf16.mxu1 %v13961_v56  ;;  %v13900_v56 = vld [vmem:[%s16772_s2 + $0x488] sm:$0xff]  }
 0x194   :  { %12333 = vmatpush3.bf16.msra.mxu0 %v13800_v17  ;;  %v13860_v17 = vld [vmem:[%s16772_s2 + $0x398] sm:$0xff]  }
 0x195   :  { %12334 = vmatprep.subr.bf16.mxu0 %v13803_v18  ;;  %12533 = vmatpush3.bf16.msra.mxu1 %v13962_v59  ;;  %v13863_v18 = vld [vmem:[%s16772_s2 + $0x3d0] sm:$0xff]   ;;  %v13903_v59 = vld [vmem:[%s16772_s2 + $0x4c0] sm:$0xff]  }
 0x196   :  { %12534 = vmatprep.subr.bf16.mxu1 %v13965_v0  ;;  %v13904_v0 = vld [vmem:[%s16772_s2 + $0x480] sm:$0xff]  }
 0x198   :  { %12335 = vmatpush3.bf16.msra.mxu0 %v13804_v21  ;;  %v13864_v21 = vld [vmem:[%s16772_s2 + $0x390] sm:$0xff]  }
 0x199   :  { %12336 = vmatprep.subr.bf16.mxu0 %v13807_v22  ;;  %12535 = vmatpush3.bf16.msra.mxu1 %v13966_v2  ;;  %v13867_v22 = vld [vmem:[%s16772_s2 + $0x3c8] sm:$0xff]   ;;  %v13907_v2 = vld [vmem:[%s16772_s2 + $0x5f8] sm:$0xff]  }
 0x19a   :  { %12564 = vmatprep.subr.bf16.mxu1 %v13969_v6  ;;  %v13908_v6 = vld [vmem:[%s16772_s2 + $0x5b8] sm:$0xff]  }
 0x19c   :  { %12337 = vmatpush3.bf16.msra.mxu0 %v13808_v27  ;;  %3917 = vmatmul.mubr.bf16.vlgmr.msra.gmra.mxu1 %v15271_v4  ;;  %v13868_v27 = vld [vmem:[%s16772_s2 + $0x388] sm:$0xff]  }
 0x19d   :  { %12366 = vmatprep.subr.bf16.mxu0 %v13811_v28  ;;  %12565 = vmatpush3.bf16.msra.mxu1 %v13970_v8  ;;  %v13871_v28 = vld [vmem:[%s16772_s2 + $0x3c0] sm:$0xff]   ;;  %v13911_v8 = vld [vmem:[%s16772_s2 + $0x5f0] sm:$0xff]  }
 0x19e   :  { %4265 = vmatprep.mubr.bf16.mxu1 %v15283_v7  ;;  %12566 = vmatprep.subr.bf16.mxu1 %v13973_v32  ;;  %v13915_v32 = vld [vmem:[%s16772_s2 + $0x5e8] sm:$0xff]  }
 0x19f   :  { %2213 = vmatmul.mubr.bf16.vlgmr.msra.gmra.mxu0 %v15258_v1 }
 0x1a0   :  { %12367 = vmatpush3.bf16.msra.mxu0 %v13812_v31  ;;  %2561 = vmatprep.mubr.bf16.mxu0 %v15160_v36  ;;  %v13872_v31 = vld [vmem:[%s16772_s2 + $0x380] sm:$0xff]  }
 0x1a1   :  { %12368 = vmatprep.subr.bf16.mxu0 %v13815_v37  ;;  %12567 = vmatpush3.bf16.msra.mxu1 %v13974_v35  ;;  %v13875_v37 = vld [vmem:[%s16772_s2 + $0x4f8] sm:$0xff]   ;;  %v14356_v35 = vld [vmem:[%s16771_s0] ss:$16 sps:$4 sm:$0xff]  }
 0x1a2   :  { %12568 = vmatprep.subr.bf16.mxu1 %v13977_v11  ;;  %v13920_v11 = vld [vmem:[%s16772_s2 + $0x5a0] sm:$0xff]  }
 0x1a4   :  { %12369 = vmatpush3.bf16.msra.mxu0 %v13816_v23  ;;  %v13876_v23 = vld [vmem:[%s16772_s2 + $0x4b8] sm:$0xff]  }
 0x1a5   :  { %12370 = vmatprep.subr.bf16.mxu0 %v13819_v41  ;;  %12569 = vmatpush3.bf16.msra.mxu1 %v13978_v12  ;;  %v13879_v41 = vld [vmem:[%s16772_s2 + $0x4f0] sm:$0xff]   ;;  %v13923_v12 = vld [vmem:[%s16772_s2 + $0x5d8] sm:$0xff]  }
 0x1a6   :  { %12570 = vmatprep.subr.bf16.mxu1 %v13981_v15  ;;  %v13928_v15 = vld [vmem:[%s16772_s2 + $0x590] sm:$0xff]  }
 0x1a8   :  { %12371 = vmatpush3.bf16.msra.mxu0 %v13820_v43  ;;  %v13880_v43 = vld [vmem:[%s16772_s2 + $0x4b0] sm:$0xff]  }
 0x1a9   :  { %12372 = vmatprep.subr.bf16.mxu0 %v13823_v44  ;;  %12571 = vmatpush3.bf16.msra.mxu1 %v13982_v16  ;;  %v13883_v44 = vld [vmem:[%s16772_s2 + $0x4e8] sm:$0xff]  }
 0x1aa   :  { %12572 = vmatprep.subr.bf16.mxu1 %v13985_v19  ;;  %v13931_v16 = vld [vmem:[%s16772_s2 + $0x5c8] sm:$0xff]   ;;  %v13936_v19 = vld [vmem:[%s16772_s2 + $0x580] sm:$0xff]  }
 0x1ac   :  { %12373 = vmatpush3.bf16.msra.mxu0 %v13824_v47  ;;  %v13884_v47 = vld [vmem:[%s16772_s2 + $0x4a8] sm:$0xff]  }
 0x1ad   :  { %12374 = vmatprep.subr.bf16.mxu0 %v13827_v48  ;;  %12573 = vmatpush3.bf16.msra.mxu1 %v13986_v20  ;;  %v14009_v48 = vld [vmem:[%s16772_s2 + $0x868] sm:$0xff]   ;;  %v13939_v20 = vld [vmem:[%s16772_s2 + $0x6f8] sm:$0xff]  }
 0x1ae   :  { %12574 = vmatprep.subr.bf16.mxu1 %v13989_v25  ;;  %v13944_v25 = vld [vmem:[%s16772_s2 + $0x6b0] sm:$0xff]  }
 0x1b0   :  { %12375 = vmatpush3.bf16.msra.mxu0 %v13828_v50  ;;  %v14013_v50 = vld [vmem:[%s16772_s2 + $0x860] sm:$0xff]  }
 0x1b1   :  { %12376 = vmatprep.subr.bf16.mxu0 %v13831_v51  ;;  %12575 = vmatpush3.bf16.msra.mxu1 %v13990_v26  ;;  %v14014_v51 = vld [vmem:[%s16772_s2 + $0x820] sm:$0xff]   ;;  %v13947_v26 = vld [vmem:[%s16772_s2 + $0x6e8] sm:$0xff]  }
 0x1b2   :  { %12576 = vmatprep.subr.bf16.mxu1 %v13993_v29  ;;  %v13952_v29 = vld [vmem:[%s16772_s2 + $0x6a0] sm:$0xff]  }
 0x1b4   :  { %12377 = vmatpush3.bf16.msra.mxu0 %v13832_v55  ;;  %v14017_v55 = vld [vmem:[%s16772_s2 + $0x858] sm:$0xff]  }
 0x1b5   :  { %12378 = vmatprep.subr.bf16.mxu0 %v13835_v57  ;;  %12577 = vmatpush3.bf16.msra.mxu1 %v13994_v30  ;;  %v14018_v57 = vld [vmem:[%s16772_s2 + $0x818] sm:$0xff]  }
 0x1b6   :  { %12578 = vmatprep.subr.bf16.mxu1 %v13997_v38  ;;  %v13955_v30 = vld [vmem:[%s16772_s2 + $0x6d8] sm:$0xff]   ;;  %v13960_v38 = vld [vmem:[%s16772_s2 + $0x690] sm:$0xff]  }
 0x1b8   :  { %12379 = vmatpush3.bf16.msra.mxu0 %v13836_v62  ;;  %v14021_v62 = vld [vmem:[%s16772_s2 + $0x850] sm:$0xff]  }
 0x1b9   :  { %12380 = vmatprep.subr.bf16.mxu0 %v13839_v54  ;;  %12579 = vmatpush3.bf16.msra.mxu1 %v13998_v39  ;;  %v14022_v54 = vld [vmem:[%s16772_s2 + $0x810] sm:$0xff]  }
 0x1ba   :  { %12608 = vmatprep.subr.bf16.mxu1 %v14001_v24 }
 0x1bc   :  { %12381 = vmatpush3.bf16.msra.mxu0 %v13840_v61  ;;  %4266 = vmatmul.mubr.bf16.vlgmr.msra.gmra.mxu1 %v15271_v4  ;;  %v13887_v4 = vld [vmem:[%s16772_s2 + $0x4e0] sm:$0xff]   ;;  %v14025_v61 = vld [vmem:[%s16772_s2 + $0x848] sm:$0xff]  }
 0x1bd   :  { %12410 = vmatprep.subr.bf16.mxu0 %v13843_v63  ;;  %12609 = vmatpush3.bf16.msra.mxu1 %v14002_v42  ;;  %v14026_v63 = vld [vmem:[%s16772_s2 + $0x808] sm:$0xff]   ;;  %v13967_v42 = vld [vmem:[%s16772_s2 + $0x6c0] sm:$0xff]  }
 0x1be   :  { %4614 = vmatprep.mubr.bf16.mxu1 %v15283_v7  ;;  %v14010_v7 = vld [vmem:[%s16772_s2 + $0x828] sm:$0xff]  }
 0x1bf   :  { %2562 = vmatmul.mubr.bf16.vlgmr.msra.gmra.mxu0 %v15258_v1 }
 0x1c0   :  { %12411 = vmatpush3.bf16.msra.mxu0 %v13844_v3  ;;  %2910 = vmatprep.mubr.bf16.mxu0 %v15160_v36  ;;  %v13855_v36 = vld [vmem:[%s16772_s2 + $0x3e0] sm:$0xff]  }
 0x1c1   :  { %12412 = vmatprep.subr.bf16.mxu0 %v13847_v5  ;;  %v14029_v3 = vld [vmem:[%s16772_s2 + $0x840] sm:$0xff]  }
 0x1c2   :  { %v14030_v5 = vld [vmem:[%s16772_s2 + $0x800] sm:$0xff]  }
 0x1c4   :  { %12413 = vmatpush3.bf16.msra.mxu0 %v13848_v9  ;;  %v15672_v9 = vld [vmem:[%s16771_s0 + $0x8] ss:$16 sps:$4 sm:$0xff]  }
 0x1c5   :  { %12414 = vmatprep.subr.bf16.mxu0 %v13851_v34  ;;  %v13912_v34 = vld [vmem:[%s16772_s2 + $0x5b0] sm:$0xff]  }
 0x1c8   :  { %12415 = vmatpush3.bf16.msra.mxu0 %v13852_v10  ;;  %v13916_v10 = vld [vmem:[%s16772_s2 + $0x5a8] sm:$0xff]  }
 0x1c9   :  { %12416 = vmatprep.subr.bf16.mxu0 %v13855_v36  ;;  %v13919_v36 = vld [vmem:[%s16772_s2 + $0x5e0] sm:$0xff]  }
 0x1cc   :  { %12417 = vmatpush3.bf16.msra.mxu0 %v13856_v13  ;;  %v13924_v13 = vld [vmem:[%s16772_s2 + $0x598] sm:$0xff]  }
 0x1cd   :  { %12418 = vmatprep.subr.bf16.mxu0 %v13859_v14  ;;  %v13927_v14 = vld [vmem:[%s16772_s2 + $0x5d0] sm:$0xff]  }
 0x1d0   :  { %12419 = vmatpush3.bf16.msra.mxu0 %v13860_v17  ;;  %v13932_v17 = vld [vmem:[%s16772_s2 + $0x588] sm:$0xff]  }
 0x1d1   :  { %12420 = vmatprep.subr.bf16.mxu0 %v13863_v18  ;;  %v13935_v18 = vld [vmem:[%s16772_s2 + $0x5c0] sm:$0xff]  }
 0x1d4   :  { %12421 = vmatpush3.bf16.msra.mxu0 %v13864_v21  ;;  %v13940_v21 = vld [vmem:[%s16772_s2 + $0x6b8] sm:$0xff]  }
 0x1d5   :  { %12422 = vmatprep.subr.bf16.mxu0 %v13867_v22  ;;  %v13943_v22 = vld [vmem:[%s16772_s2 + $0x6f0] sm:$0xff]  }
 0x1d8   :  { %12423 = vmatpush3.bf16.msra.mxu0 %v13868_v27  ;;  %v13948_v27 = vld [vmem:[%s16772_s2 + $0x6a8] sm:$0xff]  }
 0x1d9   :  { %12424 = vmatprep.subr.bf16.mxu0 %v13871_v28  ;;  %v13951_v28 = vld [vmem:[%s16772_s2 + $0x6e0] sm:$0xff]  }
 0x1dc   :  { %12425 = vmatpush3.bf16.msra.mxu0 %v13872_v31  ;;  %v13956_v31 = vld [vmem:[%s16772_s2 + $0x698] sm:$0xff]  }
 0x1dd   :  { %12454 = vmatprep.subr.bf16.mxu0 %v13875_v37  ;;  %v13959_v37 = vld [vmem:[%s16772_s2 + $0x6d0] sm:$0xff]  }
 0x1df   :  { %2911 = vmatmul.mubr.bf16.vlgmr.msra.gmra.mxu0 %v15258_v1  ;;  %v14005_v1 = vld [vmem:[%s16772_s2 + $0x870] sm:$0xff]  }
 0x1e0   :  { %12455 = vmatpush3.bf16.msra.mxu0 %v13876_v23  ;;  %3259 = vmatprep.mubr.bf16.mxu0 %v15580_v45  ;;  %v13963_v23 = vld [vmem:[%s16772_s2 + $0x6c8] sm:$0xff]  }
 0x1e1   :  { %12456 = vmatprep.subr.bf16.mxu0 %v13879_v41  ;;  %12610 = vmatprep.subr.bf16.mxu1 %v14005_v1  ;;  %v13964_v41 = vld [vmem:[%s16772_s2 + $0x688] sm:$0xff]  }
 0x1e2   :  { %12611 = vmatpush3.bf16.msra.mxu1 %v14006_v46  ;;  %v13971_v46 = vld [vmem:[%s16772_s2 + $0x7f8] sm:$0xff]  }
 0x1e3   :  { %12612 = vmatprep.subr.bf16.mxu1 %v14009_v48 }
 0x1e4   :  { %12457 = vmatpush3.bf16.msra.mxu0 %v13880_v43  ;;  %v12272_v43 = vpop.f32.mrf.mxu1 }
 0x1e5   :  { %12458 = vmatprep.subr.bf16.mxu0 %v13883_v44  ;;  %v13968_v44 = vld [vmem:[%s16772_s2 + $0x680] sm:$0xff]  }
 0x1e6   :  { %12613 = vmatpush3.bf16.msra.mxu1 %v14010_v7  ;;  %v13975_v7 = vld [vmem:[%s16772_s2 + $0x7f0] sm:$0xff]  }
 0x1e7   :  { %12614 = vmatprep.subr.bf16.mxu1 %v14013_v50  ;;  %v13976_v50 = vld [vmem:[%s16772_s2 + $0x7b0] sm:$0xff]  }
 0x1e8   :  { %12459 = vmatpush3.bf16.msra.mxu0 %v13884_v47  ;;  %v12273_v47 = vpop.f32.mrf.mxu1 }
 0x1e9   :  { %12460 = vmatprep.subr.bf16.mxu0 %v13887_v4  ;;  %v13972_v4 = vld [vmem:[%s16772_s2 + $0x7b8] sm:$0xff]  }
 0x1ea   :  { %12615 = vmatpush3.bf16.msra.mxu1 %v14014_v51 }
 0x1eb   :  { %12616 = vmatprep.subr.bf16.mxu1 %v14017_v55 }
 0x1ec   :  { %12461 = vmatpush3.bf16.msra.mxu0 %v13888_v49 }
 0x1ed   :  { %12462 = vmatprep.subr.bf16.mxu0 %v13891_v33  ;;  %v12275_v33 = vpop.f32.mrf.mxu1 }
 0x1ee   :  { %12617 = vmatpush3.bf16.msra.mxu1 %v14018_v57  ;;  %v12274_v57 = vadd.f32 %v12273_v47, %v12272_v43  ;;  %v14024_v43 = vld [vmem:[%s16772_s2 + $0x890] sm:$0xff]   ;;  %v14031_v47 = vld [vmem:[%s16772_s2 + $0x8c0] sm:$0xff]  }
 0x1ef   :  { %12618 = vmatprep.subr.bf16.mxu1 %v14021_v62  ;;  %v12276_v55 = vpop.f32.mrf.mxu1 }
 0x1f0   :  { %12463 = vmatpush3.bf16.msra.mxu0 %v13892_v52  ;;  %v13979_v52 = vld [vmem:[%s16772_s2 + $0x7e8] sm:$0xff]  }
 0x1f1   :  { %12464 = vmatprep.subr.bf16.mxu0 %v13895_v53 }
 0x1f2   :  { %12619 = vmatpush3.bf16.msra.mxu1 %v14022_v54  ;;  %v13983_v54 = vld [vmem:[%s16772_s2 + $0x7e0] sm:$0xff]  }
 0x1f3   :  { %12620 = vmatprep.subr.bf16.mxu1 %v14025_v61 }
 0x1f4   :  { %12465 = vmatpush3.bf16.msra.mxu0 %v13896_v58 }
 0x1f5   :  { %12466 = vmatprep.subr.bf16.mxu0 %v13899_v60  ;;  %v13980_v60 = vld [vmem:[%s16772_s2 + $0x7a8] sm:$0xff]  }
 0x1f6   :  { %12621 = vmatpush3.bf16.msra.mxu1 %v14026_v63 }
 0x1f7   :  { %12622 = vmatprep.subr.bf16.mxu1 %v14029_v3 }
 0x1f8   :  { %12467 = vmatpush3.bf16.msra.mxu0 %v13900_v56  ;;  %v12277_v56 = vadd.f32 %v12276_v55, %v12275_v33 }
 0x1f9   :  { %12468 = vmatprep.subr.bf16.mxu0 %v13903_v59 }
 0x1fa   :  { %12623 = vmatpush3.bf16.msra.mxu1 %v14030_v5  ;;  %v13988_v5 = vld [vmem:[%s16772_s2 + $0x798] sm:$0xff]  }
 0x1fb   :  { %4798 = vmatprep.subr.bf16.mxu1 %v14357_v40 }
 0x1fc   :  { %12469 = vmatpush3.bf16.msra.mxu0 %v13904_v0  ;;  %v13984_v0 = vld [vmem:[%s16772_s2 + $0x7a0] sm:$0xff]  }
 0x1fd   :  { %12498 = vmatprep.subr.bf16.mxu0 %v13907_v2  ;;  %4615 = vmatmul.mubr.bf16.vlgmr.msra.gmra.mxu1 %v14356_v35  ;;  %v13987_v2 = vld [vmem:[%s16772_s2 + $0x7d8] sm:$0xff]   ;;  %v13999_v35 = vld [vmem:[%s16772_s2 + $0x7c0] sm:$0xff]  }
 0x1ff   :  { %3260 = vmatmul.mubr.bf16.vlgmr.msra.gmra.mxu0 %v15672_v9 }
 0x200   :  { %12499 = vmatpush3.bf16.msra.mxu0 %v13908_v6  ;;  %3608 = vmatprep.mubr.bf16.mxu0 %v15580_v45  ;;  %v13991_v6 = vld [vmem:[%s16772_s2 + $0x7d0] sm:$0xff]  }
 0x201   :  { %12500 = vmatprep.subr.bf16.mxu0 %v13911_v8  ;;  %v13992_v8 = vld [vmem:[%s16772_s2 + $0x790] sm:$0xff]  }
 0x204   :  { %12501 = vmatpush3.bf16.msra.mxu0 %v13912_v34  ;;  %v13995_v34 = vld [vmem:[%s16772_s2 + $0x7c8] sm:$0xff]  }
 0x205   :  { %12502 = vmatprep.subr.bf16.mxu0 %v13915_v32  ;;  %v13996_v32 = vld [vmem:[%s16772_s2 + $0x788] sm:$0xff]  }
 0x208   :  { %12503 = vmatpush3.bf16.msra.mxu0 %v13916_v10  ;;  %v12316_v10 = vpop.f32.mrf.mxu1 }
 0x209   :  { %12504 = vmatprep.subr.bf16.mxu0 %v13919_v36  ;;  %v14000_v36 = vld [vmem:[%s16772_s2 + $0x780] sm:$0xff]  }
 0x20c   :  { %12505 = vmatpush3.bf16.msra.mxu0 %v13920_v11  ;;  %v14003_v11 = vld [vmem:[%s16772_s2 + $0x8f8] sm:$0xff]  }
 0x20d   :  { %12506 = vmatprep.subr.bf16.mxu0 %v13923_v12  ;;  %v12317_v12 = vpop.f32.mrf.mxu1 }
 0x210   :  { %12507 = vmatpush3.bf16.msra.mxu0 %v13924_v13  ;;  %v14004_v13 = vld [vmem:[%s16772_s2 + $0x8b8] sm:$0xff]  }
 0x211   :  { %12508 = vmatprep.subr.bf16.mxu0 %v13927_v14  ;;  %v14007_v14 = vld [vmem:[%s16772_s2 + $0x8f0] sm:$0xff]  }
 0x214   :  { %12509 = vmatpush3.bf16.msra.mxu0 %v13928_v15 }
 0x215   :  { %12510 = vmatprep.subr.bf16.mxu0 %v13931_v16  ;;  %v12319_v16 = vpop.f32.mrf.mxu1 }
 0x218   :  { %12511 = vmatpush3.bf16.msra.mxu0 %v13932_v17  ;;  %v14008_v17 = vld [vmem:[%s16772_s2 + $0x8b0] sm:$0xff]  }
 0x219   :  { %12512 = vmatprep.subr.bf16.mxu0 %v13935_v18 }
 0x21c   :  { %12513 = vmatpush3.bf16.msra.mxu0 %v13936_v19  ;;  %v14011_v19 = vld [vmem:[%s16772_s2 + $0x8e8] sm:$0xff]  }
 0x21d   :  { %12542 = vmatprep.subr.bf16.mxu0 %v13939_v20 }
 0x21f   :  { %3609 = vmatmul.mubr.bf16.vlgmr.msra.gmra.mxu0 %v15672_v9  ;;  %v15757_v39 = vpop.f32.mrf.mxu0 }
 0x220   :  { %12543 = vmatpush3.bf16.msra.mxu0 %v13940_v21  ;;  %3957 = vmatprep.mubr.bf16.mxu0 %v15580_v45  ;;  %v12320_v21 = vpop.f32.mrf.mxu1 }
 0x221   :  { %12544 = vmatprep.subr.bf16.mxu0 %v13943_v22  ;;  %v15765_v24 = vpop.f32.mrf.mxu0  ;;  %v12318_v22 = vadd.f32 %v12317_v12, %v12316_v10 }
 0x223   :  { %v15773_v1 = vpop.f32.mrf.mxu0 }
 0x224   :  { %12545 = vmatpush3.bf16.msra.mxu0 %v13944_v25 }
 0x225   :  { %12546 = vmatprep.subr.bf16.mxu0 %v13947_v26  ;;  %v15781_v48 = vpop.f32.mrf.mxu0  ;;  %v14012_v26 = vld [vmem:[%s16772_s2 + $0x8a8] sm:$0xff]  }
 0x228   :  { %12547 = vmatpush3.bf16.msra.mxu0 %v13948_v27 }
 0x229   :  { %12548 = vmatprep.subr.bf16.mxu0 %v13951_v28  ;;  %v12321_v28 = vadd.f32 %v12320_v21, %v12319_v16 }
 0x22c   :  { %12549 = vmatpush3.bf16.msra.mxu0 %v13952_v29 }
 0x22d   :  { %12550 = vmatprep.subr.bf16.mxu0 %v13955_v30 }
 0x230   :  { %12551 = vmatpush3.bf16.msra.mxu0 %v13956_v31 }
 0x231   :  { %12552 = vmatprep.subr.bf16.mxu0 %v13959_v37  ;;  %v14016_v37 = vld [vmem:[%s16772_s2 + $0x8a0] sm:$0xff]  }
 0x234   :  { %12553 = vmatpush3.bf16.msra.mxu0 %v13960_v38  ;;  %v14019_v38 = vld [vmem:[%s16772_s2 + $0x8d8] sm:$0xff]  }
 0x235   :  { %12554 = vmatprep.subr.bf16.mxu0 %v13963_v23 }
 0x238   :  { %12555 = vmatpush3.bf16.msra.mxu0 %v13964_v41  ;;  %v14020_v41 = vld [vmem:[%s16772_s2 + $0x898] sm:$0xff]  }
 0x239   :  { %12556 = vmatprep.subr.bf16.mxu0 %v13967_v42  ;;  %v14023_v42 = vld [vmem:[%s16772_s2 + $0x8d0] sm:$0xff]  }
 0x23c   :  { %12557 = vmatpush3.bf16.msra.mxu0 %v13968_v44  ;;  %v14027_v44 = vld [vmem:[%s16772_s2 + $0x8c8] sm:$0xff]  }
 0x23d   :  { %12586 = vmatprep.subr.bf16.mxu0 %v13971_v46  ;;  %v14028_v46 = vld [vmem:[%s16772_s2 + $0x888] sm:$0xff]  }
 0x23f   :  { %v12294_v49 = vpop.f32.mrf.mxu0  ;;  %3958 = vmatmul.mubr.bf16.vlgmr.msra.gmra.mxu0 %v15672_v9 }
 0x240   :  { %12587 = vmatpush3.bf16.msra.mxu0 %v13972_v4  ;;  %4306 = vmatprep.mubr.bf16.mxu0 %v15580_v45  ;;  %v12360_v4 = vpop.f32.mrf.mxu1 }
 0x241   :  { %v12295_v51 = vpop.f32.mrf.mxu0  ;;  %12588 = vmatprep.subr.bf16.mxu0 %v13975_v7  ;;  %v14032_v7 = vld [vmem:[%s16772_s2 + $0x880] sm:$0xff]  }
 0x242   :  { %v12296_v58 = vadd.f32 %v12295_v51, %v12294_v49  ;;  %v12361_v49 = vpop.f32.mrf.mxu1 }
 0x243   :  { %v12297_v53 = vpop.f32.mrf.mxu0  ;;  %v12362_v55 = vadd.f32 %v12361_v49, %v12360_v4  ;;  %v9135_v49 = vld [vmem:[%s16779_s13 + $0x10] sm:$0xff] }
 0x244   :  { %12589 = vmatpush3.bf16.msra.mxu0 %v13976_v50  ;;  %v1866_v61 = vadd.f32 %v12296_v58, %v12274_v57  ;;  %v12363_v50 = vpop.f32.mrf.mxu1 }
 0x245   :  { %v12298_v62 = vpop.f32.mrf.mxu0  ;;  %12590 = vmatprep.subr.bf16.mxu0 %v13979_v52 }
 0x246   :  { %v12299_v59 = vadd.f32 %v12298_v62, %v12297_v53  ;;  %v12364_v53 = vpop.f32.mrf.mxu1 }
 0x248   :  { %v1869_v63 = vadd.f32 %v12299_v59, %v12277_v56  ;;  %12591 = vmatpush3.bf16.msra.mxu0 %v13980_v60  ;;  %v12365_v60 = vadd.f32 %v12364_v53, %v12363_v50  ;;  %v14050_v53 = vld [vmem:[%s16780_s3 + $0x30] sm:$0xff]  }
 0x249   :  { %12592 = vmatprep.subr.bf16.mxu0 %v13983_v54 }
 0x24a   :  { %v11683_v3 = vpack.c.bf16 %v1869_v63, %v1866_v61  ;;  %v12404_v61 = vpop.f32.mrf.mxu1 }
 0x24c   :  { %11684 = vst [vmem:[#allocation2] sm:$0xff] %v11683_v3   ;;  %12593 = vmatpush3.bf16.msra.mxu0 %v13984_v0  ;;  %v12405_v63 = vpop.f32.mrf.mxu1 }
 0x24d   :  { %12594 = vmatprep.subr.bf16.mxu0 %v13987_v2 }
 0x24e   :  { %v12407_v2 = vpop.f32.mrf.mxu1 }
 0x250   :  { %12595 = vmatpush3.bf16.msra.mxu0 %v13988_v5 }
 0x251   :  { %12596 = vmatprep.subr.bf16.mxu0 %v13991_v6  ;;  %v12406_v6 = vadd.f32 %v12405_v63, %v12404_v61  ;;  %v9458_v61 = vld [vmem:[%s16781_s15 + $0x8] sm:$0xff]  ;;  %v9459_v63 = vld [vmem:[%s16781_s15 + $0x10] sm:$0xff] }
 0x254   :  { %12597 = vmatpush3.bf16.msra.mxu0 %v13992_v8 }
 0x255   :  { %12598 = vmatprep.subr.bf16.mxu0 %v13995_v34 }
 0x258   :  { %12599 = vmatpush3.bf16.msra.mxu0 %v13996_v32 }
 0x259   :  { %12600 = vmatprep.subr.bf16.mxu0 %v13999_v35 }
 0x25c   :  { %12601 = vmatpush3.bf16.msra.mxu0 %v14000_v36 }
 0x25d   :  { %12630 = vmatprep.subr.bf16.mxu0 %v14003_v11 }
 0x25f   :  { %v12338_v15 = vpop.f32.mrf.mxu0  ;;  %4307 = vmatmul.mubr.bf16.vlgmr.msra.gmra.mxu0 %v15672_v9 }
 0x260   :  { %12631 = vmatpush3.bf16.msra.mxu0 %v14004_v13  ;;  %4655 = vmatprep.mubr.bf16.mxu0 %v15580_v45  ;;  %v14015_v45 = vld [vmem:[%s16772_s2 + $0x8e0] sm:$0xff]  }
 0x261   :  { %v12339_v18 = vpop.f32.mrf.mxu0  ;;  %12632 = vmatprep.subr.bf16.mxu0 %v14007_v14 }
 0x262   :  { %v12340_v25 = vadd.f32 %v12339_v18, %v12338_v15 }
 0x263   :  { %v12341_v20 = vpop.f32.mrf.mxu0 }
 0x264   :  { %12633 = vmatpush3.bf16.msra.mxu0 %v14008_v17  ;;  %v2215_v30 = vadd.f32 %v12340_v25, %v12318_v22 }
 0x265   :  { %v12342_v27 = vpop.f32.mrf.mxu0  ;;  %12634 = vmatprep.subr.bf16.mxu0 %v14011_v19 }
 0x266   :  { %v12343_v29 = vadd.f32 %v12342_v27, %v12341_v20 }
 0x268   :  { %v2218_v31 = vadd.f32 %v12343_v29, %v12321_v28  ;;  %12635 = vmatpush3.bf16.msra.mxu0 %v14012_v26  ;;  %v14042_v28 = vld [vmem:[%s16777_s6 + $0x4] ss:$8 sps:$4 sm:$0xff]  }
 0x269   :  { %12636 = vmatprep.subr.bf16.mxu0 %v14015_v45  ;;  %10742 = vmatprep.mubr.msk.bf16.mxu1 %vm1478_vm0, %v14042_v28 }
 0x26a   :  { %v11688_v23 = vpack.c.bf16 %v2218_v31, %v2215_v30 }
 0x26c   :  { %12015 = vst [vmem:[#allocation2 + $0x8] sm:$0xff] %v11688_v23   ;;  %12637 = vmatpush3.bf16.msra.mxu0 %v14016_v37  ;;  %v7620_v23 = vld [vmem:[%s16778_s11] sm:$0xff] }
 0x26d   :  { %12638 = vmatprep.subr.bf16.mxu0 %v14019_v38  ;;  %7626 = vperm.xlu0 %13607, %v7620_v23  }
 0x270   :  { %12639 = vmatpush3.bf16.msra.mxu0 %v14020_v41  ;;  %v7621_v41 = vld [vmem:[%s16778_s11 + $0x8] sm:$0xff] }
 0x271   :  { %12640 = vmatprep.subr.bf16.mxu0 %v14023_v42  ;;  %7631 = vperm.xlu1 %13608, %v7621_v41  }
 0x274   :  { %12641 = vmatpush3.bf16.msra.mxu0 %v14024_v43 }
 0x275   :  { %12642 = vmatprep.subr.bf16.mxu0 %v14027_v44  ;;  %v7622_v44 = vld [vmem:[%s16778_s11 + $0x10] sm:$0xff] }
 0x276   :  { %7636 = vperm.xlu0 %13607, %v7622_v44  }
 0x278   :  { %12643 = vmatpush3.bf16.msra.mxu0 %v14028_v46  ;;  %v7623_v46 = vld [vmem:[%s16778_s11 + $0x18] sm:$0xff] }
 0x279   :  { %12644 = vmatprep.subr.bf16.mxu0 %v14031_v47  ;;  %7641 = vperm.xlu1 %13608, %v7623_v46  }
 0x27a   :  { %9149 = vperm.xlu0 %13607, %v9135_v49  }
 0x27c   :  { %12645 = vmatpush3.bf16.msra.mxu0 %v14032_v7 }
 0x27f   :  { %v12382_v33 = vpop.f32.mrf.mxu0  ;;  %4656 = vmatmul.mubr.bf16.vlgmr.msra.gmra.mxu0 %v15672_v9  ;;  %v12408_v9 = vpop.f32.mrf.mxu1 }
 0x280   :  { %v12409_v32 = vadd.f32 %v12408_v9, %v12407_v2 }
 0x281   :  { %v12383_v51 = vpop.f32.mrf.mxu0  ;;  %v12448_v12 = vpop.f32.mrf.mxu1 }
 0x282   :  { %v12384_v57 = vadd.f32 %v12383_v51, %v12382_v33  ;;  %v14048_v33 = vld [vmem:[%s16780_s3 + $0x38] sm:$0xff]  }
 0x283   :  { %v12385_v52 = vpop.f32.mrf.mxu0  ;;  %v12449_v13 = vpop.f32.mrf.mxu1  ;;  %13030 = vmatprep.subr.bf16.mxu0 %v14048_v33 }
 0x284   :  { %v2564_v54 = vadd.f32 %v12384_v57, %v12362_v55  ;;  %v12450_v19 = vadd.f32 %v12449_v13, %v12448_v12  ;;  %13031 = vmatpush3.bf16.msra.mxu0 %v14048_v33 }
 0x285   :  { %v12386_v58 = vpop.f32.mrf.mxu0  ;;  %v12451_v15 = vpop.f32.mrf.mxu1  ;;  %13032 = vmatprep.subr.bf16.mxu0 %v14050_v53 }
 0x286   :  { %v12387_v62 = vadd.f32 %v12386_v58, %v12385_v52  ;;  %v9136_v52 = vld [vmem:[%s16779_s13 + $0x18] sm:$0xff]  ;;  %v14052_v58 = vld [vmem:[%s16780_s3 + $0x28] sm:$0xff]  }
 0x287   :  { %v12452_v18 = vpop.f32.mrf.mxu1  ;;  %9154 = vperm.xlu1 %13608, %v9136_v52  }
 0x288   :  { %v2567_v56 = vadd.f32 %v12387_v62, %v12365_v60  ;;  %v12453_v22 = vadd.f32 %v12452_v18, %v12451_v15  ;;  %v9133_v62 = vld [vmem:[%s16779_s13] sm:$0xff]  ;;  %13033 = vmatpush3.bf16.msra.mxu0 %v14050_v53 }
 0x289   :  { %v12492_v29 = vpop.f32.mrf.mxu1  ;;  %13034 = vmatprep.subr.bf16.mxu0 %v14052_v58  ;;  %9139 = vperm.xlu0 %13607, %v9133_v62   ;;  %v14040_v62 = vld [vmem:[#allocation2] sm:$0xff]  }
 0x28a   :  { %v11693_v59 = vpack.c.bf16 %v2567_v56, %v2564_v54  ;;  %v9134_v54 = vld [vmem:[%s16779_s13 + $0x8] sm:$0xff]  ;;  %v14054_v56 = vld [vmem:[%s16780_s3 + $0x20] sm:$0xff]  }
 0x28b   :  { %v12493_v30 = vpop.f32.mrf.mxu1  ;;  %9144 = vperm.xlu1 %13608, %v9134_v54   ;;  %v14049_v54 = vld [vmem:[%s16780_s3 + $0x78] sm:$0xff]  }
 0x28c   :  { %12016 = vst [vmem:[#allocation2 + $0x10] sm:$0xff] %v11693_v59   ;;  %v12494_v47 = vadd.f32 %v12493_v30, %v12492_v29  ;;  %v9457_v59 = vld [vmem:[%s16781_s15] sm:$0xff]  ;;  %13035 = vmatpush3.bf16.msra.mxu0 %v14052_v58  ;;  %v14039_v58 = vld [vmem:[#allocation2 + $0x8] sm:$0xff]  }
 0x28d   :  { %v12495_v37 = vpop.f32.mrf.mxu1  ;;  %13036 = vmatprep.subr.bf16.mxu0 %v14054_v56  ;;  %9463 = vperm.xlu0 %13607, %v9457_v59  }
 0x28f   :  { %v12496_v43 = vpop.f32.mrf.mxu1  ;;  %9468 = vperm.xlu1 %13608, %v9458_v61   ;;  %v14045_v61 = vld [vmem:[%s16777_s6 + $0x14] ss:$8 sps:$4 sm:$0xff]  }
 0x290   :  { %v12497_v50 = vadd.f32 %v12496_v43, %v12495_v37  ;;  %13037 = vmatpush3.bf16.msra.mxu0 %v14054_v56  ;;  %v14044_v56 = vld [vmem:[%s16777_s6] ss:$8 sps:$4 sm:$0xff]  }
 0x291   :  { %9473 = vperm.xlu0 %13607, %v9459_v63   ;;  %v12536_v2 = vpop.f32.mrf.mxu1  ;;  %v14051_v63 = vld [vmem:[%s16780_s3 + $0x70] sm:$0xff]  }
 0x29f   :  { %v12426_v0 = vpop.f32.mrf.mxu0 }
 0x2a1   :  { %v12427_v3 = vpop.f32.mrf.mxu0 }
 0x2a2   :  { %v12428_v8 = vadd.f32 %v12427_v3, %v12426_v0  ;;  %v9460_v0 = vld [vmem:[%s16781_s15 + $0x18] sm:$0xff]  ;;  %v12537_v3 = vpop.f32.mrf.mxu1 }
 0x2a3   :  { %v12429_v5 = vpop.f32.mrf.mxu0  ;;  %9478 = vperm.xlu1 %13608, %v9460_v0   ;;  %v14047_v0 = vld [vmem:[%s16777_s6 + $0x10] ss:$8 sps:$4 sm:$0xff]  }
 0x2a4   :  { %v2913_v10 = vadd.f32 %v12428_v8, %v12406_v6  ;;  %v12539_v9 = vpop.f32.mrf.mxu1 }
 0x2a5   :  { %v12430_v34 = vpop.f32.mrf.mxu0 }
 0x2a6   :  { %v12431_v35 = vadd.f32 %v12430_v34, %v12429_v5  ;;  %v12540_v34 = vpop.f32.mrf.mxu1 }
 0x2a8   :  { %v2916_v36 = vadd.f32 %v12431_v35, %v12409_v32  ;;  %v12538_v32 = vadd.f32 %v12537_v3, %v12536_v2  ;;  %v12580_v15 = vpop.f32.mrf.mxu1  ;;  %v14055_v2 = vld [vmem:[%s16780_s3 + $0x60] sm:$0xff]   ;;  %v14056_v3 = vld [vmem:[%s16780_s3 + $0x18] sm:$0xff]  }
 0x2a9   :  { %13038 = vmatprep.subr.bf16.mxu0 %v14056_v3 }
 0x2aa   :  { %v11698_v11 = vpack.c.bf16 %v2916_v36, %v2913_v10  ;;  %v12541_v36 = vadd.f32 %v12540_v34, %v12539_v9  ;;  %13039 = vmatpush3.bf16.msra.mxu0 %v14056_v3  ;;  %v14058_v9 = vld [vmem:[%s16780_s3 + $0x10] sm:$0xff]   ;;  %v14061_v34 = vld [vmem:[%s16780_s3 + $0x48] sm:$0xff]   ;;  %v14094_v3 = vld [vmem:[%s16780_s3 + $0x100] sm:$0xff]  }
 0x2ab   :  { %13040 = vmatprep.subr.bf16.mxu0 %v14058_v9 }
 0x2ac   :  { %12017 = vst [vmem:[#allocation2 + $0x18] sm:$0xff] %v11698_v11  }
 0x2ae   :  { %13041 = vmatpush3.bf16.msra.mxu0 %v14058_v9  ;;  %v14096_v9 = vld [vmem:[%s16780_s3 + $0x1b8] sm:$0xff]  }
 0x2bf   :  { %v12470_v14 = vpop.f32.mrf.mxu0 }
 0x2c1   :  { %v12471_v16 = vpop.f32.mrf.mxu0 }
 0x2c2   :  { %v12472_v20 = vadd.f32 %v12471_v16, %v12470_v14  ;;  %v12581_v16 = vpop.f32.mrf.mxu1 }
 0x2c3   :  { %v12473_v17 = vpop.f32.mrf.mxu0 }
 0x2c4   :  { %v3262_v26 = vadd.f32 %v12472_v20, %v12450_v19  ;;  %v12583_v18 = vpop.f32.mrf.mxu1 }
 0x2c5   :  { %v12474_v21 = vpop.f32.mrf.mxu0 }
 0x2c6   :  { %v12475_v25 = vadd.f32 %v12474_v21, %v12473_v17  ;;  %v12584_v20 = vpop.f32.mrf.mxu1 }
 0x2c8   :  { %v3265_v27 = vadd.f32 %v12475_v25, %v12453_v22 }
 0x2ca   :  { %v11703_v45 = vpack.c.bf16 %v3265_v27, %v3262_v26  ;;  %v12582_v26 = vadd.f32 %v12581_v16, %v12580_v15  ;;  %v12585_v27 = vadd.f32 %v12584_v20, %v12583_v18  ;;  %v4713_v18 = vpop.permute.xlu1 %4712 }
 0x2cc   :  { %12018 = vst [vmem:[#allocation2 + $0x20] sm:$0xff] %v11703_v45  }
 0x2df   :  { %v12514_v31 = vpop.f32.mrf.mxu0 }
 0x2e1   :  { %v12515_v38 = vpop.f32.mrf.mxu0 }
 0x2e2   :  { %v12516_v4 = vadd.f32 %v12515_v38, %v12514_v31  ;;  %v12624_v38 = vpop.f32.mrf.mxu1 }
 0x2e3   :  { %v12517_v42 = vpop.f32.mrf.mxu0 }
 0x2e4   :  { %v3611_v55 = vadd.f32 %v12516_v4, %v12494_v47  ;;  %v12625_v41 = vpop.f32.mrf.mxu1  ;;  %v14037_v47 = vld [vmem:[#allocation2 + $0x18] sm:$0xff]  }
 0x2e5   :  { %v12518_v7 = vpop.f32.mrf.mxu0 }
 0x2e6   :  { %v12519_v51 = vadd.f32 %v12518_v7, %v12517_v42  ;;  %v14036_v42 = vld [vmem:[#allocation2 + $0x20] sm:$0xff]   ;;  %v12627_v44 = vpop.f32.mrf.mxu1 }
 0x2e8   :  { %v3614_v57 = vadd.f32 %v12519_v51, %v12497_v50  ;;  %v12628_v4 = vpop.f32.mrf.mxu1  ;;  %v14038_v50 = vld [vmem:[#allocation2 + $0x10] sm:$0xff]   ;;  %v12626_v51 = vadd.f32 %v12625_v41, %v12624_v38 }
 0x2e9   :  { %v12629_v52 = vadd.f32 %v12628_v4, %v12627_v44  ;;  %v14067_v41 = vld [vmem:[%s16780_s3 + $0xf0] sm:$0xff]   ;;  %v14070_v44 = vld [vmem:[%s16780_s3 + $0xa0] sm:$0xff]   ;;  %v14073_v4 = vld [vmem:[%s16780_s3 + $0xd8] sm:$0xff]  }
 0x2ea   :  { %v11708_v60 = vpack.c.bf16 %v3614_v57, %v3611_v55 }
 0x2ec   :  { %12019 = vst [vmem:[#allocation2 + $0x28] sm:$0xff] %v11708_v60  }
 0x2f3   :  { %v14035_v23 = vld [vmem:[#allocation2 + $0x28] sm:$0xff]  }
 0x2ff   :  { %v12558_v5 = vpop.f32.mrf.mxu0 }
 0x301   :  { %v12559_v6 = vpop.f32.mrf.mxu0 }
 0x302   :  { %v12560_v35 = vadd.f32 %v12559_v6, %v12558_v5  ;;  %v14057_v5 = vld [vmem:[%s16780_s3 + $0x58] sm:$0xff]   ;;  %v14059_v6 = vld [vmem:[%s16780_s3 + $0x50] sm:$0xff]  }
 0x303   :  { %v12561_v8 = vpop.f32.mrf.mxu0 }
 0x304   :  { %v3960_v12 = vadd.f32 %v12560_v35, %v12538_v32  ;;  %v14062_v32 = vld [vmem:[%s16780_s3] sm:$0xff]  }
 0x305   :  { %v12562_v10 = vpop.f32.mrf.mxu0  ;;  %v14063_v35 = vld [vmem:[%s16780_s3 + $0x40] sm:$0xff]  }
 0x306   :  { %v12563_v11 = vadd.f32 %v12562_v10, %v12561_v8  ;;  %v14060_v8 = vld [vmem:[%s16780_s3 + $0x8] sm:$0xff]   ;;  %v14064_v10 = vld [vmem:[%s16780_s3 + $0xb8] sm:$0xff]  }
 0x307   :  { %13042 = vmatprep.subr.bf16.mxu0 %v14060_v8 }
 0x308   :  { %v3963_v13 = vadd.f32 %v12563_v11, %v12541_v36  ;;  %13043 = vmatpush3.bf16.msra.mxu0 %v14060_v8  ;;  %v14065_v36 = vld [vmem:[%s16780_s3 + $0xf8] sm:$0xff]   ;;  %v4703_v11 = vpop.permute.xlu0 %4702  ;;  %v14098_v8 = vld [vmem:[%s16780_s3 + $0x1b0] sm:$0xff]  }
 0x309   :  { %13044 = vmatprep.subr.bf16.mxu0 %v14062_v32 }
 0x30a   :  { %v11713_v14 = vpack.c.bf16 %v3963_v13, %v3960_v12 }
 0x30c   :  { %12020 = vst [vmem:[#allocation2 + $0x30] sm:$0xff] %v11713_v14   ;;  %13045 = vmatpush3.bf16.msra.mxu0 %v14062_v32  ;;  %v4708_v15 = vpop.permute.xlu0 %4707  ;;  %v14100_v32 = vld [vmem:[%s16780_s3 + $0x1a8] sm:$0xff]  }
 0x30d   :  { %13070 = vmatprep.subr.bf16.mxu0 %v14064_v10 }
 0x313   :  { %v14034_v37 = vld [vmem:[#allocation2 + $0x30] sm:$0xff]  }
 0x31f   :  { %v12602_v17 = vpop.f32.mrf.mxu0 }
 0x321   :  { %v12603_v19 = vpop.f32.mrf.mxu0 }
 0x322   :  { %v12604_v22 = vadd.f32 %v12603_v19, %v12602_v17 }
 0x323   :  { %v12605_v21 = vpop.f32.mrf.mxu0 }
 0x324   :  { %v4309_v28 = vadd.f32 %v12604_v22, %v12582_v26 }
 0x325   :  { %v12606_v25 = vpop.f32.mrf.mxu0 }
 0x326   :  { %v12607_v45 = vadd.f32 %v12606_v25, %v12605_v21 }
 0x328   :  { %v4312_v29 = vadd.f32 %v12607_v45, %v12585_v27  ;;  %v4718_v45 = vpop.permute.xlu1 %4717 }
 0x32a   :  { %v11718_v30 = vpack.c.bf16 %v4312_v29, %v4309_v28 }
 0x32c   :  { %12021 = vst [vmem:[#allocation2 + $0x38] sm:$0xff] %v11718_v30  }
 0x333   :  { %v14033_v31 = vld [vmem:[#allocation2 + $0x38] sm:$0xff]  }
 0x334   :  { %4799 = vmatpush1.bf16.msra.mxu1 %v14033_v31 }
 0x335   :  { %4800 = vmatprep.subr.bf16.mxu1 %v14357_v40 }
 0x338   :  { %4801 = vmatpush1.bf16.msra.mxu1 %v14034_v37 }
 0x339   :  { %4802 = vmatprep.subr.bf16.mxu1 %v14357_v40 }
 0x33c   :  { %4803 = vmatpush1.bf16.msra.mxu1 %v14035_v23  ;;  %v14066_v23 = vld [vmem:[%s16780_s3 + $0xb0] sm:$0xff]  }
 0x33d   :  { %4804 = vmatprep.subr.bf16.mxu1 %v14357_v40 }
 0x33f   :  { %v12646_v43 = vpop.f32.mrf.mxu0 }
 0x340   :  { %4805 = vmatpush1.bf16.msra.mxu1 %v14036_v42  ;;  %v14068_v42 = vld [vmem:[%s16780_s3 + $0xa8] sm:$0xff]  }
 0x341   :  { %v12647_v46 = vpop.f32.mrf.mxu0  ;;  %4806 = vmatprep.subr.bf16.mxu1 %v14357_v40 }
 0x342   :  { %v12648_v49 = vadd.f32 %v12647_v46, %v12646_v43  ;;  %v14069_v43 = vld [vmem:[%s16780_s3 + $0xe8] sm:$0xff]   ;;  %v14071_v46 = vld [vmem:[%s16780_s3 + $0xe0] sm:$0xff]  }
 0x343   :  { %v12649_v7 = vpop.f32.mrf.mxu0 }
 0x344   :  { %4807 = vmatpush1.bf16.msra.mxu1 %v14037_v47  ;;  %v4658_v55 = vadd.f32 %v12648_v49, %v12626_v51  ;;  %v14072_v47 = vld [vmem:[%s16780_s3 + $0x98] sm:$0xff]   ;;  %v14075_v49 = vld [vmem:[%s16780_s3 + $0xd0] sm:$0xff]   ;;  %v14078_v51 = vld [vmem:[%s16780_s3 + $0x80] sm:$0xff]  }
 0x345   :  { %v12650_v33 = vpop.f32.mrf.mxu0  ;;  %4808 = vmatprep.subr.bf16.mxu1 %v14357_v40 }
 0x346   :  { %v12651_v53 = vadd.f32 %v12650_v33, %v12649_v7  ;;  %v14074_v7 = vld [vmem:[%s16780_s3 + $0x90] sm:$0xff]   ;;  %v14076_v33 = vld [vmem:[%s16780_s3 + $0x88] sm:$0xff]  }
 0x348   :  { %v4661_v57 = vadd.f32 %v12651_v53, %v12629_v52  ;;  %4809 = vmatpush1.bf16.msra.mxu1 %v14038_v50  ;;  %v14077_v50 = vld [vmem:[%s16780_s3 + $0xc8] sm:$0xff]   ;;  %v14079_v52 = vld [vmem:[%s16780_s3 + $0xc0] sm:$0xff]   ;;  %v14080_v53 = vld [vmem:[%s16780_s3 + $0x138] sm:$0xff]  }
 0x349   :  { %4810 = vmatprep.subr.bf16.mxu1 %v14357_v40 }
 0x34a   :  { %v11723_v60 = vpack.c.bf16 %v4661_v57, %v4658_v55  ;;  %v14081_v55 = vld [vmem:[%s16780_s3 + $0x178] sm:$0xff]   ;;  %v14082_v57 = vld [vmem:[%s16780_s3 + $0x130] sm:$0xff]  }
 0x34c   :  { %12022 = vst [vmem:[#allocation2 + $0x40] sm:$0xff] %v11723_v60   ;;  %4811 = vmatpush1.bf16.msra.mxu1 %v14039_v58  ;;  %v14083_v58 = vld [vmem:[%s16780_s3 + $0x170] sm:$0xff]   ;;  %v14084_v60 = vld [vmem:[%s16780_s3 + $0x128] sm:$0xff]  }
 0x34d   :  { %4812 = vmatprep.subr.bf16.mxu1 %v14357_v40 }
 0x350   :  { %4813 = vmatpush1.bf16.msra.mxu1 %v14040_v62  ;;  %v14085_v62 = vld [vmem:[%s16780_s3 + $0x168] sm:$0xff]  }
 0x351   :  { %4828 = vmatprep.subr.bf16.mxu1 %v14357_v40  ;;  %v14053_v40 = vld [vmem:[%s16780_s3 + $0x68] sm:$0xff]  }
 0x353   :  { %v14041_v59 = vld [vmem:[#allocation2 + $0x40] sm:$0xff]  }
 0x354   :  { %4829 = vmatpush2.bf16.msra.mxu1 %v14041_v59  ;;  %v14088_v59 = vld [vmem:[%s16780_s3 + $0x118] sm:$0xff]  }
 0x355   :  { %13050 = vmatprep.subr.bf16.mxu1 %v14049_v54 }
 0x357   :  { %4831 = vmatmul.mubr.bf16.vlgmr.msra.gmra.mxu1 %v14044_v56  ;;  %v14087_v56 = vld [vmem:[%s16780_s3 + $0x160] sm:$0xff]  }
 0x358   :  { %10743 = vmatprep.mubr.msk.bf16.mxu1 %vm1478_vm0, %v14045_v61  ;;  %13051 = vmatpush3.bf16.msra.mxu1 %v14049_v54  ;;  %v14086_v54 = vld [vmem:[%s16780_s3 + $0x120] sm:$0xff]   ;;  %v14089_v61 = vld [vmem:[%s16780_s3 + $0x158] sm:$0xff]  }
 0x359   :  { %13052 = vmatprep.subr.bf16.mxu1 %v14051_v63 }
 0x35c   :  { %13053 = vmatpush3.bf16.msra.mxu1 %v14051_v63  ;;  %v14090_v63 = vld [vmem:[%s16780_s3 + $0x110] sm:$0xff]  }
 0x35d   :  { %13054 = vmatprep.subr.bf16.mxu1 %v14053_v40 }
 0x35f   :  { %4839 = vmatmul.mubr.bf16.gmra.mxu1 %v14047_v0  ;;  %v14092_v0 = vld [vmem:[%s16780_s3 + $0x108] sm:$0xff]  }
 0x360   :  { %13055 = vmatpush3.bf16.msra.mxu1 %v14053_v40  ;;  %v14091_v40 = vld [vmem:[%s16780_s3 + $0x150] sm:$0xff]  }
 0x361   :  { %13056 = vmatprep.subr.bf16.mxu1 %v14055_v2 }
 0x364   :  { %13057 = vmatpush3.bf16.msra.mxu1 %v14055_v2  ;;  %v14093_v2 = vld [vmem:[%s16780_s3 + $0x148] sm:$0xff]  }
 0x365   :  { %13058 = vmatprep.subr.bf16.mxu1 %v14057_v5 }
 0x368   :  { %13059 = vmatpush3.bf16.msra.mxu1 %v14057_v5  ;;  %v14095_v5 = vld [vmem:[%s16780_s3 + $0x140] sm:$0xff]  }
 0x369   :  { %13060 = vmatprep.subr.bf16.mxu1 %v14059_v6 }
 0x36c   :  { %13061 = vmatpush3.bf16.msra.mxu1 %v14059_v6  ;;  %v14097_v6 = vld [vmem:[%s16780_s3 + $0x1f8] sm:$0xff]  }
 0x36d   :  { %13062 = vmatprep.subr.bf16.mxu1 %v14061_v34 }
 0x370   :  { %13063 = vmatpush3.bf16.msra.mxu1 %v14061_v34  ;;  %v14099_v34 = vld [vmem:[%s16780_s3 + $0x1f0] sm:$0xff]  }
 0x371   :  { %13064 = vmatprep.subr.bf16.mxu1 %v14063_v35 }
 0x374   :  { %13065 = vmatpush3.bf16.msra.mxu1 %v14063_v35  ;;  %v14101_v35 = vld [vmem:[%s16780_s3 + $0x1e8] sm:$0xff]  }
 0x375   :  { %13090 = vmatprep.subr.bf16.mxu1 %v14065_v36 }
 0x417   :  { %v4832_v12 = vpop.f32.mrf.mxu1 }
 0x418   :  { %v4833_v14 = vadd.f32 %v4832_v12, %v4703_v11  ;;  %v14104_v11 = vld [vmem:[%s16780_s3 + $0x198] sm:$0xff]  }
 0x419   :  { %v4834_v13 = vpop.f32.mrf.mxu1  ;;  %v14105_v12 = vld [vmem:[%s16780_s3 + $0x1d8] sm:$0xff]  }
 0x41a   :  { %v4847_v20 = vmax.f32 %v4833_v14, 0.0  ;;  %v14106_v13 = vld [vmem:[%s16780_s3 + $0x190] sm:$0xff]  }
 0x41b   :  { %v4835_v16 = vpop.f32.mrf.mxu1  ;;  %v14107_v14 = vld [vmem:[%s16780_s3 + $0x1d0] sm:$0xff]  }
 0x41c   :  { %v4836_v17 = vadd.f32 %v4835_v16, %v4708_v15  ;;  %v14108_v15 = vld [vmem:[%s16780_s3 + $0x188] sm:$0xff]  }
 0x41d   :  { %v4837_v19 = vpop.f32.mrf.mxu1  ;;  %v14109_v16 = vld [vmem:[%s16780_s3 + $0x1c8] sm:$0xff]  }
 0x41e   :  { %v4848_v21 = vmax.f32 %v4836_v17, 0.0  ;;  %v14110_v17 = vld [vmem:[%s16780_s3 + $0x180] sm:$0xff]   ;;  %v14112_v19 = vld [vmem:[%s16780_s3 + $0x238] sm:$0xff]  }
 0x41f   :  { %v4840_v22 = vpop.f32.mrf.mxu1 }
 0x420   :  { %v15990_v25 = vpack.c.bf16 %v4848_v21, %v4847_v20  ;;  %v4841_v27 = vadd.f32 %v4840_v22, %v4713_v18  ;;  %v14111_v18 = vld [vmem:[%s16780_s3 + $0x1c0] sm:$0xff]   ;;  %v14113_v20 = vld [vmem:[%s16780_s3 + $0x230] sm:$0xff]   ;;  %v14114_v21 = vld [vmem:[%s16780_s3 + $0x228] sm:$0xff]  }
 0x421   :  { %v4842_v26 = vpop.f32.mrf.mxu1  ;;  %v14115_v22 = vld [vmem:[%s16780_s3 + $0x220] sm:$0xff]  }
 0x422   :  { %13046 = vmatprep.mubr.bf16.mxu0 %v15990_v25  ;;  %13066 = vmatprep.mubr.bf16.mxu1 %v15990_v25  ;;  %v4849_v31 = vmax.f32 %v4841_v27, 0.0  ;;  %v14116_v26 = vld [vmem:[%s16780_s3 + $0x218] sm:$0xff]   ;;  %v14118_v27 = vld [vmem:[%s16780_s3 + $0x208] sm:$0xff]  }
 0x423   :  { %v4843_v28 = vpop.f32.mrf.mxu1 }
 0x424   :  { %v4844_v29 = vadd.f32 %v4843_v28, %v4718_v45  ;;  %v14119_v45 = vld [vmem:[%s16780_s3 + $0x200] sm:$0xff]  }
 0x425   :  { %v4845_v30 = vpop.f32.mrf.mxu1 }
 0x426   :  { %v4850_v37 = vmax.f32 %v4844_v29, 0.0 }
 0x428   :  { %v15994_v38 = vpack.c.bf16 %v4850_v37, %v4849_v31 }
 0x42a   :  { %13047 = vmatmul.mubr.bf16.vlgmr.msra.gmra.mxu0 %v15994_v38  ;;  %13067 = vmatmul.mubr.bf16.vlgmr.msra.gmra.mxu1 %v15994_v38 }
 0x42b   :  { %13071 = vmatpush3.bf16.msra.mxu0 %v14064_v10  ;;  %13091 = vmatpush3.bf16.msra.mxu1 %v14065_v36  ;;  %v14102_v10 = vld [vmem:[%s16780_s3 + $0x1a0] sm:$0xff]  }
 0x42c   :  { %13086 = vmatprep.mubr.bf16.mxu0 %v15990_v25  ;;  %13106 = vmatprep.mubr.bf16.mxu1 %v15990_v25  ;;  %v14103_v36 = vld [vmem:[%s16780_s3 + $0x1e0] sm:$0xff]  }
 0x42d   :  { %13072 = vmatprep.subr.bf16.mxu0 %v14066_v23  ;;  %13092 = vmatprep.subr.bf16.mxu1 %v14067_v41 }
 0x42f   :  { %13073 = vmatpush3.bf16.msra.mxu0 %v14066_v23  ;;  %13093 = vmatpush3.bf16.msra.mxu1 %v14067_v41 }
 0x430   :  { %13074 = vmatprep.subr.bf16.mxu0 %v14068_v42  ;;  %13094 = vmatprep.subr.bf16.mxu1 %v14069_v43 }
 0x433   :  { %13075 = vmatpush3.bf16.msra.mxu0 %v14068_v42  ;;  %13095 = vmatpush3.bf16.msra.mxu1 %v14069_v43 }
 0x434   :  { %13076 = vmatprep.subr.bf16.mxu0 %v14070_v44  ;;  %13096 = vmatprep.subr.bf16.mxu1 %v14071_v46 }
 0x437   :  { %13077 = vmatpush3.bf16.msra.mxu0 %v14070_v44  ;;  %13097 = vmatpush3.bf16.msra.mxu1 %v14071_v46 }
 0x438   :  { %13078 = vmatprep.subr.bf16.mxu0 %v14072_v47  ;;  %13098 = vmatprep.subr.bf16.mxu1 %v14073_v4 }
 0x43b   :  { %13079 = vmatpush3.bf16.msra.mxu0 %v14072_v47  ;;  %13099 = vmatpush3.bf16.msra.mxu1 %v14073_v4  ;;  %v14143_v4 = vld [vmem:[%s16782_s8 + $0x8] ss:$12 sps:$4 sm:$0xff]  }
 0x43c   :  { %13080 = vmatprep.subr.bf16.mxu0 %v14074_v7  ;;  %13100 = vmatprep.subr.bf16.mxu1 %v14075_v49 }
 0x43f   :  { %13081 = vmatpush3.bf16.msra.mxu0 %v14074_v7  ;;  %13101 = vmatpush3.bf16.msra.mxu1 %v14075_v49 }
 0x440   :  { %13082 = vmatprep.subr.bf16.mxu0 %v14076_v33  ;;  %13102 = vmatprep.subr.bf16.mxu1 %v14077_v50 }
 0x443   :  { %13083 = vmatpush3.bf16.msra.mxu0 %v14076_v33  ;;  %13103 = vmatpush3.bf16.msra.mxu1 %v14077_v50 }
 0x444   :  { %13084 = vmatprep.subr.bf16.mxu0 %v14078_v51  ;;  %13104 = vmatprep.subr.bf16.mxu1 %v14079_v52 }
 0x447   :  { %13085 = vmatpush3.bf16.msra.mxu0 %v14078_v51  ;;  %13105 = vmatpush3.bf16.msra.mxu1 %v14079_v52 }
 0x448   :  { %13110 = vmatprep.subr.bf16.mxu0 %v14080_v53  ;;  %13130 = vmatprep.subr.bf16.mxu1 %v14081_v55 }
 0x44a   :  { %13087 = vmatmul.mubr.bf16.vlgmr.msra.gmra.mxu0 %v15994_v38  ;;  %13107 = vmatmul.mubr.bf16.vlgmr.msra.gmra.mxu1 %v15994_v38 }
 0x44b   :  { %13111 = vmatpush3.bf16.msra.mxu0 %v14080_v53  ;;  %13126 = vmatprep.mubr.bf16.mxu0 %v15990_v25 }
 0x44c   :  { %13131 = vmatpush3.bf16.msra.mxu1 %v14081_v55  ;;  %13146 = vmatprep.mubr.bf16.mxu1 %v15990_v25 }
 0x44d   :  { %13112 = vmatprep.subr.bf16.mxu0 %v14082_v57  ;;  %13132 = vmatprep.subr.bf16.mxu1 %v14083_v58 }
 0x44f   :  { %13113 = vmatpush3.bf16.msra.mxu0 %v14082_v57 }
 0x450   :  { %13133 = vmatpush3.bf16.msra.mxu1 %v14083_v58  ;;  %13114 = vmatprep.subr.bf16.mxu0 %v14084_v60 }
 0x451   :  { %13134 = vmatprep.subr.bf16.mxu1 %v14085_v62 }
 0x453   :  { %13115 = vmatpush3.bf16.msra.mxu0 %v14084_v60 }
 0x454   :  { %13135 = vmatpush3.bf16.msra.mxu1 %v14085_v62  ;;  %13116 = vmatprep.subr.bf16.mxu0 %v14086_v54 }
 0x455   :  { %13136 = vmatprep.subr.bf16.mxu1 %v14087_v56 }
 0x457   :  { %13117 = vmatpush3.bf16.msra.mxu0 %v14086_v54 }
 0x458   :  { %13137 = vmatpush3.bf16.msra.mxu1 %v14087_v56  ;;  %13118 = vmatprep.subr.bf16.mxu0 %v14088_v59 }
 0x459   :  { %13138 = vmatprep.subr.bf16.mxu1 %v14089_v61 }
 0x45b   :  { %13119 = vmatpush3.bf16.msra.mxu0 %v14088_v59 }
 0x45c   :  { %13139 = vmatpush3.bf16.msra.mxu1 %v14089_v61  ;;  %13120 = vmatprep.subr.bf16.mxu0 %v14090_v63 }
 0x45d   :  { %13140 = vmatprep.subr.bf16.mxu1 %v14091_v40 }
 0x45f   :  { %13121 = vmatpush3.bf16.msra.mxu0 %v14090_v63 }
 0x460   :  { %13141 = vmatpush3.bf16.msra.mxu1 %v14091_v40  ;;  %13122 = vmatprep.subr.bf16.mxu0 %v14092_v0 }
 0x461   :  { %13142 = vmatprep.subr.bf16.mxu1 %v14093_v2 }
 0x463   :  { %13123 = vmatpush3.bf16.msra.mxu0 %v14092_v0 }
 0x464   :  { %13143 = vmatpush3.bf16.msra.mxu1 %v14093_v2  ;;  %13124 = vmatprep.subr.bf16.mxu0 %v14094_v3 }
 0x465   :  { %13144 = vmatprep.subr.bf16.mxu1 %v14095_v5 }
 0x467   :  { %13125 = vmatpush3.bf16.msra.mxu0 %v14094_v3 }
 0x468   :  { %13145 = vmatpush3.bf16.msra.mxu1 %v14095_v5  ;;  %13150 = vmatprep.subr.bf16.mxu0 %v14096_v9 }
 0x469   :  { %13170 = vmatprep.subr.bf16.mxu1 %v14097_v6 }
 0x46a   :  { %13127 = vmatmul.mubr.bf16.vlgmr.msra.gmra.mxu0 %v15994_v38 }
 0x46b   :  { %13147 = vmatmul.mubr.bf16.vlgmr.msra.gmra.mxu1 %v15994_v38  ;;  %13151 = vmatpush3.bf16.msra.mxu0 %v14096_v9 }
 0x46c   :  { %13166 = vmatprep.mubr.bf16.mxu0 %v15990_v25  ;;  %13171 = vmatpush3.bf16.msra.mxu1 %v14097_v6 }
 0x46d   :  { %13186 = vmatprep.mubr.bf16.mxu1 %v15990_v25  ;;  %13152 = vmatprep.subr.bf16.mxu0 %v14098_v8 }
 0x46e   :  { %13172 = vmatprep.subr.bf16.mxu1 %v14099_v34 }
 0x46f   :  { %13153 = vmatpush3.bf16.msra.mxu0 %v14098_v8 }
 0x470   :  { %13173 = vmatpush3.bf16.msra.mxu1 %v14099_v34  ;;  %13154 = vmatprep.subr.bf16.mxu0 %v14100_v32 }
 0x471   :  { %13174 = vmatprep.subr.bf16.mxu1 %v14101_v35 }
 0x473   :  { %13155 = vmatpush3.bf16.msra.mxu0 %v14100_v32 }
 0x474   :  { %13175 = vmatpush3.bf16.msra.mxu1 %v14101_v35  ;;  %13156 = vmatprep.subr.bf16.mxu0 %v14102_v10 }
 0x475   :  { %13176 = vmatprep.subr.bf16.mxu1 %v14103_v36 }
 0x477   :  { %13157 = vmatpush3.bf16.msra.mxu0 %v14102_v10 }
 0x478   :  { %13177 = vmatpush3.bf16.msra.mxu1 %v14103_v36  ;;  %13158 = vmatprep.subr.bf16.mxu0 %v14104_v11 }
 0x479   :  { %13178 = vmatprep.subr.bf16.mxu1 %v14105_v12 }
 0x47b   :  { %13159 = vmatpush3.bf16.msra.mxu0 %v14104_v11 }
 0x47c   :  { %13179 = vmatpush3.bf16.msra.mxu1 %v14105_v12  ;;  %13160 = vmatprep.subr.bf16.mxu0 %v14106_v13 }
 0x47d   :  { %13180 = vmatprep.subr.bf16.mxu1 %v14107_v14 }
 0x47f   :  { %13161 = vmatpush3.bf16.msra.mxu0 %v14106_v13 }
 0x480   :  { %13181 = vmatpush3.bf16.msra.mxu1 %v14107_v14  ;;  %13162 = vmatprep.subr.bf16.mxu0 %v14108_v15 }
 0x481   :  { %13182 = vmatprep.subr.bf16.mxu1 %v14109_v16 }
 0x483   :  { %13163 = vmatpush3.bf16.msra.mxu0 %v14108_v15 }
 0x484   :  { %13183 = vmatpush3.bf16.msra.mxu1 %v14109_v16  ;;  %13164 = vmatprep.subr.bf16.mxu0 %v14110_v17 }
 0x485   :  { %13184 = vmatprep.subr.bf16.mxu1 %v14111_v18 }
 0x487   :  { %13165 = vmatpush3.bf16.msra.mxu0 %v14110_v17 }
 0x488   :  { %13185 = vmatpush3.bf16.msra.mxu1 %v14111_v18  ;;  %13190 = vmatprep.subr.bf16.mxu0 %v14112_v19 }
 0x48a   :  { %13167 = vmatmul.mubr.bf16.vlgmr.msra.gmra.mxu0 %v15994_v38 }
 0x48b   :  { %13187 = vmatmul.mubr.bf16.vlgmr.msra.gmra.mxu1 %v15994_v38  ;;  %13191 = vmatpush3.bf16.msra.mxu0 %v14112_v19 }
 0x48c   :  { %13206 = vmatprep.mubr.bf16.mxu0 %v15990_v25  ;;  %13192 = vmatprep.subr.bf16.mxu0 %v14113_v20  ;;  %v14117_v25 = vld [vmem:[%s16780_s3 + $0x210] sm:$0xff]  }
 0x48f   :  { %13193 = vmatpush3.bf16.msra.mxu0 %v14113_v20 }
 0x490   :  { %13194 = vmatprep.subr.bf16.mxu0 %v14114_v21 }
 0x493   :  { %13195 = vmatpush3.bf16.msra.mxu0 %v14114_v21 }
 0x494   :  { %13196 = vmatprep.subr.bf16.mxu0 %v14115_v22 }
 0x497   :  { %13197 = vmatpush3.bf16.msra.mxu0 %v14115_v22 }
 0x498   :  { %13198 = vmatprep.subr.bf16.mxu0 %v14116_v26 }
 0x49b   :  { %13199 = vmatpush3.bf16.msra.mxu0 %v14116_v26 }
 0x49c   :  { %13200 = vmatprep.subr.bf16.mxu0 %v14117_v25 }
 0x49f   :  { %13201 = vmatpush3.bf16.msra.mxu0 %v14117_v25 }
 0x4a0   :  { %13202 = vmatprep.subr.bf16.mxu0 %v14118_v27 }
 0x4a3   :  { %13203 = vmatpush3.bf16.msra.mxu0 %v14118_v27 }
 0x4a4   :  { %13204 = vmatprep.subr.bf16.mxu0 %v14119_v45 }
 0x4a7   :  { %13205 = vmatpush3.bf16.msra.mxu0 %v14119_v45 }
 0x4aa   :  { %13207 = vmatmul.mubr.bf16.vlgmr.msra.gmra.mxu0 %v15994_v38  ;;  %v14138_v38 = vld [vmem:[%s16782_s8 + $0x4] ss:$12 sps:$4 sm:$0xff]  }
 0x4ab   :  { %6303 = vmatprep.mubr.bf16.mxu1 %v14138_v38  ;;  %13214 = vmatprep.mubr.msk.bf16.mxu0 %vm6264_vm1, %v14143_v4  ;;  %v14136_v4 = vld [vmem:[%s16782_s8] ss:$12 sps:$4 sm:$0xff]  }
 0x4ea   :  { %v13048_v28 = vpop.f32.mrf.mxu0  ;;  %v13068_v29 = vpop.f32.mrf.mxu1 }
 0x4ec   :  { %v4951_v30 = vpop.f32.mrf.mxu0  ;;  %v5085_v31 = vpop.f32.mrf.mxu1 }
 0x4ee   :  { %v13049_v37 = vpop.f32.mrf.mxu0  ;;  %v13069_v23 = vpop.f32.mrf.mxu1 }
 0x4ef   :  { %v11733_v41 = vpack.c.bf16 %v13049_v37, %v13048_v28  ;;  %v11743_v42 = vpack.c.bf16 %v13069_v23, %v13068_v29 }
 0x4f0   :  { %v4954_v43 = vpop.f32.mrf.mxu0  ;;  %v5088_v44 = vpop.f32.mrf.mxu1 }
 0x4f1   :  { %12023 = vst [vmem:[#allocation2 + $0x8] sm:$0xff] %v11733_v41   ;;  %12025 = vst [vmem:[#allocation2 + $0x18] sm:$0xff] %v11743_v42   ;;  %v11728_v46 = vpack.c.bf16 %v4954_v43, %v4951_v30  ;;  %v11738_v47 = vpack.c.bf16 %v5088_v44, %v5085_v31 }
 0x4f3   :  { %11729 = vst [vmem:[#allocation2] sm:$0xff] %v11728_v46   ;;  %12024 = vst [vmem:[#allocation2 + $0x10] sm:$0xff] %v11738_v47   ;;  %v14147_v47 = vld [vmem:[%s16780_s3 + $0x78] sm:$0xff]  }
 0x4f8   :  { %v14129_v28 = vld [vmem:[#allocation2 + $0x18] sm:$0xff]   ;;  %v14133_v44 = vld [vmem:[#allocation2 + $0x8] sm:$0xff]  }
 0x4fa   :  { %v14131_v37 = vld [vmem:[#allocation2 + $0x10] sm:$0xff]   ;;  %v14135_v38 = vld [vmem:[#allocation2] sm:$0xff]  }
 0x50a   :  { %v13088_v7 = vpop.f32.mrf.mxu0  ;;  %v13108_v49 = vpop.f32.mrf.mxu1 }
 0x50c   :  { %v5219_v33 = vpop.f32.mrf.mxu0  ;;  %v5353_v50 = vpop.f32.mrf.mxu1 }
 0x50e   :  { %v13089_v51 = vpop.f32.mrf.mxu0  ;;  %v13109_v52 = vpop.f32.mrf.mxu1 }
 0x50f   :  { %v11753_v53 = vpack.c.bf16 %v13089_v51, %v13088_v7  ;;  %v11763_v55 = vpack.c.bf16 %v13109_v52, %v13108_v49  ;;  %v14141_v7 = vld [vmem:[%s16782_s8 + $0x1c] ss:$12 sps:$4 sm:$0xff]   ;;  %v14145_v52 = vld [vmem:[%s16782_s8 + $0x20] ss:$12 sps:$4 sm:$0xff]  }
 0x510   :  { %v5222_v57 = vpop.f32.mrf.mxu0  ;;  %v5356_v58 = vpop.f32.mrf.mxu1  ;;  %v14146_v51 = vld [vmem:[%s16780_s3 + $0x38] sm:$0xff]  }
 0x511   :  { %12027 = vst [vmem:[#allocation2 + $0x28] sm:$0xff] %v11753_v53   ;;  %12029 = vst [vmem:[#allocation2 + $0x38] sm:$0xff] %v11763_v55   ;;  %v11748_v60 = vpack.c.bf16 %v5222_v57, %v5219_v33  ;;  %v11758_v62 = vpack.c.bf16 %v5356_v58, %v5353_v50  ;;  %v14149_v33 = vld [vmem:[%s16780_s3 + $0x70] sm:$0xff]   ;;  %v14144_v53 = vld [vmem:[%s16782_s8 + $0x18] ss:$12 sps:$4 sm:$0xff]  }
 0x512   :  { %v14148_v55 = vld [vmem:[%s16780_s3 + $0x30] sm:$0xff]   ;;  %v14150_v57 = vld [vmem:[%s16780_s3 + $0x28] sm:$0xff]  }
 0x513   :  { %12026 = vst [vmem:[#allocation2 + $0x20] sm:$0xff] %v11748_v60   ;;  %12028 = vst [vmem:[#allocation2 + $0x30] sm:$0xff] %v11758_v62   ;;  %v14151_v58 = vld [vmem:[%s16780_s3 + $0x68] sm:$0xff]   ;;  %v14152_v60 = vld [vmem:[%s16780_s3 + $0x20] sm:$0xff]  }
 0x514   :  { %v14153_v62 = vld [vmem:[%s16780_s3 + $0x60] sm:$0xff]  }
 0x518   :  { %v14121_v18 = vld [vmem:[#allocation2 + $0x38] sm:$0xff]   ;;  %v14125_v22 = vld [vmem:[#allocation2 + $0x28] sm:$0xff]  }
 0x51a   :  { %v14123_v20 = vld [vmem:[#allocation2 + $0x30] sm:$0xff]   ;;  %v14127_v25 = vld [vmem:[#allocation2 + $0x20] sm:$0xff]  }
 0x52a   :  { %v13128_v54 = vpop.f32.mrf.mxu0 }
 0x52b   :  { %v13148_v56 = vpop.f32.mrf.mxu1 }
 0x52c   :  { %v5487_v59 = vpop.f32.mrf.mxu0 }
 0x52d   :  { %v5621_v61 = vpop.f32.mrf.mxu1 }
 0x52e   :  { %v13129_v63 = vpop.f32.mrf.mxu0 }
 0x52f   :  { %v11773_v40 = vpack.c.bf16 %v13129_v63, %v13128_v54  ;;  %v13149_v0 = vpop.f32.mrf.mxu1  ;;  %v14154_v54 = vld [vmem:[%s16780_s3 + $0x18] sm:$0xff]   ;;  %v14158_v63 = vld [vmem:[%s16780_s3 + $0x8] sm:$0xff]  }
 0x530   :  { %v11783_v2 = vpack.c.bf16 %v13149_v0, %v13148_v56  ;;  %v5490_v3 = vpop.f32.mrf.mxu0  ;;  %v14155_v56 = vld [vmem:[%s16780_s3 + $0x58] sm:$0xff]   ;;  %v14160_v0 = vld [vmem:[%s16780_s3] sm:$0xff]  }
 0x531   :  { %12031 = vst [vmem:[#allocation2 + $0x48] sm:$0xff] %v11773_v40   ;;  %v11768_v5 = vpack.c.bf16 %v5490_v3, %v5487_v59  ;;  %v5624_v9 = vpop.f32.mrf.mxu1  ;;  %v14156_v59 = vld [vmem:[%s16780_s3 + $0x10] sm:$0xff]   ;;  %v14159_v40 = vld [vmem:[%s16780_s3 + $0x48] sm:$0xff]   ;;  %v14162_v3 = vld [vmem:[%s16780_s3 + $0xb8] sm:$0xff]  }
 0x532   :  { %12033 = vst [vmem:[#allocation2 + $0x58] sm:$0xff] %v11783_v2   ;;  %v11778_v6 = vpack.c.bf16 %v5624_v9, %v5621_v61  ;;  %v14157_v61 = vld [vmem:[%s16780_s3 + $0x50] sm:$0xff]   ;;  %v14161_v2 = vld [vmem:[%s16780_s3 + $0x40] sm:$0xff]   ;;  %v6109_v9 = vpop.permute.xlu0 %6108 }
 0x533   :  { %12030 = vst [vmem:[#allocation2 + $0x40] sm:$0xff] %v11768_v5   ;;  %v14163_v5 = vld [vmem:[%s16780_s3 + $0xf8] sm:$0xff]  }
 0x534   :  { %12032 = vst [vmem:[#allocation2 + $0x50] sm:$0xff] %v11778_v6   ;;  %v6114_v6 = vpop.permute.xlu1 %6113 }
 0x538   :  { %v14132_v41 = vld [vmem:[#allocation2 + $0x48] sm:$0xff]  }
 0x539   :  { %v14128_v27 = vld [vmem:[#allocation2 + $0x58] sm:$0xff]  }
 0x53a   :  { %v14134_v46 = vld [vmem:[#allocation2 + $0x40] sm:$0xff]  }
 0x53b   :  { %v14130_v29 = vld [vmem:[#allocation2 + $0x50] sm:$0xff]  }
 0x54a   :  { %v13168_v8 = vpop.f32.mrf.mxu0 }
 0x54b   :  { %v13188_v34 = vpop.f32.mrf.mxu1 }
 0x54c   :  { %v5755_v32 = vpop.f32.mrf.mxu0 }
 0x54d   :  { %v5889_v35 = vpop.f32.mrf.mxu1 }
 0x54e   :  { %v13169_v10 = vpop.f32.mrf.mxu0 }
 0x54f   :  { %v11793_v36 = vpack.c.bf16 %v13169_v10, %v13168_v8  ;;  %v13189_v11 = vpop.f32.mrf.mxu1 }
 0x550   :  { %v11803_v12 = vpack.c.bf16 %v13189_v11, %v13188_v34  ;;  %v5758_v13 = vpop.f32.mrf.mxu0  ;;  %v6119_v34 = vpop.permute.xlu0 %6118 }
 0x551   :  { %12035 = vst [vmem:[#allocation2 + $0x68] sm:$0xff] %v11793_v36   ;;  %v11788_v14 = vpack.c.bf16 %v5758_v13, %v5755_v32  ;;  %v5892_v15 = vpop.f32.mrf.mxu1 }
 0x552   :  { %12037 = vst [vmem:[#allocation2 + $0x78] sm:$0xff] %v11803_v12   ;;  %v11798_v16 = vpack.c.bf16 %v5892_v15, %v5889_v35  ;;  %v6124_v35 = vpop.permute.xlu1 %6123 }
 0x553   :  { %12034 = vst [vmem:[#allocation2 + $0x60] sm:$0xff] %v11788_v14  }
 0x554   :  { %12036 = vst [vmem:[#allocation2 + $0x70] sm:$0xff] %v11798_v16   ;;  %v1451_v13 = vpop.permute.xlu0 %1450 }
 0x558   :  { %v14124_v21 = vld [vmem:[#allocation2 + $0x68] sm:$0xff]  }
 0x559   :  { %v14120_v17 = vld [vmem:[#allocation2 + $0x78] sm:$0xff]  }
 0x55a   :  { %12742 = vmatprep.subr.bf16.mxu1 %v14120_v17  ;;  %v14126_v26 = vld [vmem:[#allocation2 + $0x60] sm:$0xff]  }
 0x55b   :  { %v14122_v19 = vld [vmem:[#allocation2 + $0x70] sm:$0xff]   ;;  %12743 = vmatpush3.bf16.msra.mxu1 %v14121_v18  ;;  %v1456_v18 = vpop.permute.xlu1 %1455 }
 0x55c   :  { %12744 = vmatprep.subr.bf16.mxu1 %v14122_v19 }
 0x55f   :  { %12745 = vmatpush3.bf16.msra.mxu1 %v14123_v20 }
 0x560   :  { %12746 = vmatprep.subr.bf16.mxu1 %v14124_v21 }
 0x563   :  { %12747 = vmatpush3.bf16.msra.mxu1 %v14125_v22 }
 0x564   :  { %12748 = vmatprep.subr.bf16.mxu1 %v14126_v26  ;;  %v1520_v26 = vadd.f32 %v15765_v24, %v1451_v13  ;;  %v14192_v13 = vld [vmem:[%s16780_s3 + $0x100] sm:$0xff]  }
 0x567   :  { %12749 = vmatpush3.bf16.msra.mxu1 %v14127_v25 }
 0x568   :  { %12750 = vmatprep.subr.bf16.mxu1 %v14128_v27 }
 0x56a   :  { %v13208_v45 = vpop.f32.mrf.mxu0 }
 0x56b   :  { %12751 = vmatpush3.bf16.msra.mxu1 %v14129_v28 }
 0x56c   :  { %v6023_v30 = vpop.f32.mrf.mxu0  ;;  %12752 = vmatprep.subr.bf16.mxu1 %v14130_v29  ;;  %v1461_v29 = vpop.permute.xlu0 %1460 }
 0x56e   :  { %v13209_v31 = vpop.f32.mrf.mxu0 }
 0x56f   :  { %v11813_v23 = vpack.c.bf16 %v13209_v31, %v13208_v45  ;;  %12753 = vmatpush3.bf16.msra.mxu1 %v14131_v37 }
 0x570   :  { %v6026_v42 = vpop.f32.mrf.mxu0  ;;  %12754 = vmatprep.subr.bf16.mxu1 %v14132_v41 }
 0x571   :  { %12039 = vst [vmem:[#allocation2 + $0x88] sm:$0xff] %v11813_v23   ;;  %v11808_v43 = vpack.c.bf16 %v6026_v42, %v6023_v30  ;;  %v1523_v30 = vadd.f32 %v15781_v48, %v1456_v18  ;;  %v14197_v18 = vld [vmem:[%s16780_s3 + $0x1f0] sm:$0xff]  }
 0x573   :  { %12038 = vst [vmem:[#allocation2 + $0x80] sm:$0xff] %v11808_v43   ;;  %12755 = vmatpush3.bf16.msra.mxu1 %v14133_v44  ;;  %v1466_v43 = vpop.permute.xlu1 %1465 }
 0x574   :  { %12756 = vmatprep.subr.bf16.mxu1 %v14134_v46  ;;  %v1528_v46 = vadd.f32 %v15757_v39, %v1461_v29  ;;  %v14207_v29 = vld [vmem:[%s16780_s3 + $0x1c8] sm:$0xff]  }
 0x577   :  { %12757 = vmatpush3.bf16.msra.mxu1 %v14135_v38 }
 0x578   :  { %v14139_v49 = vld [vmem:[#allocation2 + $0x88] sm:$0xff]   ;;  %13238 = vmatprep.subr.bf16.mxu1 %v14147_v47 }
 0x579   :  { %13210 = vmatprep.subr.bf16.mxu0 %v14139_v49 }
 0x57a   :  { %v14140_v50 = vld [vmem:[#allocation2 + $0x80] sm:$0xff]   ;;  %6304 = vmatmul.mubr.bf16.vlgmr.msra.gmra.mxu1 %v14136_v4  ;;  %13211 = vmatpush3.bf16.msra.mxu0 %v14139_v49  ;;  %v1531_v4 = vadd.f32 %v15773_v1, %v1466_v43 }
 0x57b   :  { %13212 = vmatprep.subr.bf16.mxu0 %v14140_v50  ;;  %6311 = vmatprep.mubr.bf16.mxu1 %v14141_v7  ;;  %v14213_v43 = vld [vmem:[%s16780_s3 + $0x220] sm:$0xff]  }
 0x57c   :  { %13239 = vmatpush3.bf16.msra.mxu1 %v14147_v47 }
 0x57d   :  { %13240 = vmatprep.subr.bf16.mxu1 %v14149_v33 }
 0x57e   :  { %13213 = vmatpush3.bf16.msra.mxu0 %v14140_v50 }
 0x57f   :  { %13218 = vmatprep.subr.bf16.mxu0 %v14146_v51 }
 0x580   :  { %13241 = vmatpush3.bf16.msra.mxu1 %v14149_v33 }
 0x581   :  { %13215 = vmatmul.mubr.msk.bf16.vlgmr.msra.gmra.mxu0 %vm6264_vm1, %v14145_v52  ;;  %13242 = vmatprep.subr.bf16.mxu1 %v14151_v58  ;;  %v14165_v52 = vld [vmem:[%s16780_s3 + $0xf0] sm:$0xff]  }
 0x582   :  { %6312 = vmatmul.mubr.bf16.gmra.mxu1 %v14144_v53  ;;  %13219 = vmatpush3.bf16.msra.mxu0 %v14146_v51  ;;  %v14164_v51 = vld [vmem:[%s16780_s3 + $0xb0] sm:$0xff]   ;;  %v14166_v53 = vld [vmem:[%s16780_s3 + $0xa8] sm:$0xff]  }
 0x583   :  { %13220 = vmatprep.subr.bf16.mxu0 %v14148_v55 }
 0x584   :  { %13243 = vmatpush3.bf16.msra.mxu1 %v14151_v58  ;;  %v14169_v58 = vld [vmem:[%s16780_s3 + $0xe0] sm:$0xff]  }
 0x585   :  { %13244 = vmatprep.subr.bf16.mxu1 %v14153_v62 }
 0x586   :  { %13221 = vmatpush3.bf16.msra.mxu0 %v14148_v55  ;;  %v14167_v55 = vld [vmem:[%s16780_s3 + $0xe8] sm:$0xff]  }
 0x587   :  { %13222 = vmatprep.subr.bf16.mxu0 %v14150_v57 }
 0x588   :  { %13245 = vmatpush3.bf16.msra.mxu1 %v14153_v62  ;;  %v14171_v62 = vld [vmem:[%s16780_s3 + $0xd8] sm:$0xff]  }
 0x589   :  { %13246 = vmatprep.subr.bf16.mxu1 %v14155_v56 }
 0x58a   :  { %13223 = vmatpush3.bf16.msra.mxu0 %v14150_v57  ;;  %v14168_v57 = vld [vmem:[%s16780_s3 + $0xa0] sm:$0xff]  }
 0x58b   :  { %13224 = vmatprep.subr.bf16.mxu0 %v14152_v60 }
 0x58c   :  { %13247 = vmatpush3.bf16.msra.mxu1 %v14155_v56  ;;  %v14173_v56 = vld [vmem:[%s16780_s3 + $0xd0] sm:$0xff]  }
 0x58d   :  { %13248 = vmatprep.subr.bf16.mxu1 %v14157_v61 }
 0x58e   :  { %13225 = vmatpush3.bf16.msra.mxu0 %v14152_v60  ;;  %v14170_v60 = vld [vmem:[%s16780_s3 + $0x98] sm:$0xff]  }
 0x58f   :  { %13226 = vmatprep.subr.bf16.mxu0 %v14154_v54 }
 0x590   :  { %13249 = vmatpush3.bf16.msra.mxu1 %v14157_v61  ;;  %v14175_v61 = vld [vmem:[%s16780_s3 + $0xc8] sm:$0xff]  }
 0x591   :  { %13250 = vmatprep.subr.bf16.mxu1 %v14159_v40 }
 0x592   :  { %13227 = vmatpush3.bf16.msra.mxu0 %v14154_v54  ;;  %v14172_v54 = vld [vmem:[%s16780_s3 + $0x90] sm:$0xff]  }
 0x593   :  { %13228 = vmatprep.subr.bf16.mxu0 %v14156_v59 }
 0x594   :  { %13251 = vmatpush3.bf16.msra.mxu1 %v14159_v40  ;;  %v14177_v40 = vld [vmem:[%s16780_s3 + $0xc0] sm:$0xff]  }
 0x595   :  { %13252 = vmatprep.subr.bf16.mxu1 %v14161_v2 }
 0x596   :  { %13229 = vmatpush3.bf16.msra.mxu0 %v14156_v59  ;;  %v14174_v59 = vld [vmem:[%s16780_s3 + $0x88] sm:$0xff]  }
 0x597   :  { %13230 = vmatprep.subr.bf16.mxu0 %v14158_v63 }
 0x598   :  { %13253 = vmatpush3.bf16.msra.mxu1 %v14161_v2  ;;  %v14179_v2 = vld [vmem:[%s16780_s3 + $0x178] sm:$0xff]  }
 0x599   :  { %13278 = vmatprep.subr.bf16.mxu1 %v14163_v5 }
 0x59a   :  { %13231 = vmatpush3.bf16.msra.mxu0 %v14158_v63  ;;  %v14176_v63 = vld [vmem:[%s16780_s3 + $0x80] sm:$0xff]  }
 0x59b   :  { %13232 = vmatprep.subr.bf16.mxu0 %v14160_v0 }
 0x59e   :  { %13233 = vmatpush3.bf16.msra.mxu0 %v14160_v0  ;;  %v14178_v0 = vld [vmem:[%s16780_s3 + $0x138] sm:$0xff]  }
 0x59f   :  { %13258 = vmatprep.subr.bf16.mxu0 %v14162_v3 }
 0x63a   :  { %v12758_v8 = vpop.f32.mrf.mxu1 }
 0x63c   :  { %v12759_v32 = vpop.f32.mrf.mxu1 }
 0x63d   :  { %v12760_v10 = vadd.f32 %v12759_v32, %v12758_v8  ;;  %v14184_v8 = vld [vmem:[%s16780_s3 + $0x120] sm:$0xff]   ;;  %v14186_v32 = vld [vmem:[%s16780_s3 + $0x118] sm:$0xff]  }
 0x63e   :  { %v12761_v36 = vpop.f32.mrf.mxu1 }
 0x63f   :  { %v6306_v16 = vadd.f32 %v12760_v10, %v6109_v9  ;;  %v14182_v9 = vld [vmem:[%s16780_s3 + $0x128] sm:$0xff]   ;;  %v14188_v10 = vld [vmem:[%s16780_s3 + $0x110] sm:$0xff]  }
 0x640   :  { %v12762_v11 = vpop.f32.mrf.mxu1 }
 0x641   :  { %v13216_v12 = vpop.f32.mrf.mxu0  ;;  %v12763_v14 = vadd.f32 %v12762_v11, %v12761_v36  ;;  %v14189_v36 = vld [vmem:[%s16780_s3 + $0x150] sm:$0xff]   ;;  %v14190_v11 = vld [vmem:[%s16780_s3 + $0x108] sm:$0xff]  }
 0x642   :  { %v12764_v15 = vpop.f32.mrf.mxu1 }
 0x643   :  { %v6354_v17 = vpop.f32.mrf.mxu0  ;;  %v6309_v27 = vadd.f32 %v12763_v14, %v6114_v6  ;;  %v14183_v6 = vld [vmem:[%s16780_s3 + $0x168] sm:$0xff]   ;;  %v14193_v14 = vld [vmem:[%s16780_s3 + $0x140] sm:$0xff]  }
 0x644   :  { %v12765_v19 = vpop.f32.mrf.mxu1  ;;  %v6355_v20 = vadd.f32 %v6354_v17, %v6306_v16  ;;  %v14195_v16 = vld [vmem:[%s16780_s3 + $0x1f8] sm:$0xff]   ;;  %v14196_v17 = vld [vmem:[%s16780_s3 + $0x1b0] sm:$0xff]  }
 0x645   :  { %v12766_v21 = vadd.f32 %v12765_v19, %v12764_v15  ;;  %v13217_v22 = vpop.f32.mrf.mxu0  ;;  %v14194_v15 = vld [vmem:[%s16780_s3 + $0x1b8] sm:$0xff]   ;;  %v14198_v19 = vld [vmem:[%s16780_s3 + $0x1a8] sm:$0xff]  }
 0x646   :  { %v12767_v25 = vpop.f32.mrf.mxu1  ;;  %v16250_v31 = vadd.f32 %v6355_v20, %v1520_v26  ;;  %v14199_v20 = vld [vmem:[%s16780_s3 + $0x1e8] sm:$0xff]   ;;  %v14202_v26 = vld [vmem:[%s16780_s3 + $0x198] sm:$0xff]  }
 0x647   :  { %v6314_v45 = vadd.f32 %v12766_v21, %v6119_v34  ;;  %v6357_v28 = vpop.f32.mrf.mxu0  ;;  %v14185_v34 = vld [vmem:[%s16780_s3 + $0x160] sm:$0xff]  }
 0x648   :  { %v12768_v37 = vpop.f32.mrf.mxu1  ;;  %v6358_v23 = vadd.f32 %v6357_v28, %v6309_v27  ;;  %v6373_v24 = vmax.f32 %v16250_v31, 0.0  ;;  %v14200_v21 = vld [vmem:[%s16780_s3 + $0x1a0] sm:$0xff]   ;;  %v14204_v27 = vld [vmem:[%s16780_s3 + $0x190] sm:$0xff]   ;;  %v14206_v28 = vld [vmem:[%s16780_s3 + $0x188] sm:$0xff]  }
 0x649   :  { %v6363_v41 = vadd.f32 %v13216_v12, %v6314_v45  ;;  %v12769_v42 = vadd.f32 %v12768_v37, %v12767_v25  ;;  %v14191_v12 = vld [vmem:[%s16780_s3 + $0x148] sm:$0xff]   ;;  %v14203_v25 = vld [vmem:[%s16780_s3 + $0x1d8] sm:$0xff]   ;;  %v14205_v45 = vld [vmem:[%s16780_s3 + $0x1d0] sm:$0xff]  }
 0x64a   :  { %v16252_v44 = vadd.f32 %v6358_v23, %v1523_v30  ;;  %v14208_v30 = vld [vmem:[%s16780_s3 + $0x180] sm:$0xff]   ;;  %v14210_v23 = vld [vmem:[%s16780_s3 + $0x238] sm:$0xff]  }
 0x64b   :  { %v6317_v47 = vadd.f32 %v12769_v42, %v6124_v35  ;;  %v16258_v7 = vadd.f32 %v6363_v41, %v1528_v46  ;;  %v14187_v35 = vld [vmem:[%s16780_s3 + $0x158] sm:$0xff]   ;;  %v14209_v37 = vld [vmem:[%s16780_s3 + $0x1c0] sm:$0xff]   ;;  %v14211_v41 = vld [vmem:[%s16780_s3 + $0x230] sm:$0xff]  }
 0x64c   :  { %v6374_v38 = vmax.f32 %v16252_v44, 0.0  ;;  %v14212_v42 = vld [vmem:[%s16780_s3 + $0x228] sm:$0xff]   ;;  %v14214_v46 = vld [vmem:[%s16780_s3 + $0x218] sm:$0xff]  }
 0x64d   :  { %v6366_v48 = vadd.f32 %v13217_v22, %v6317_v47  ;;  %v6375_v39 = vmax.f32 %v16258_v7, 0.0  ;;  %v14201_v22 = vld [vmem:[%s16780_s3 + $0x1e0] sm:$0xff]   ;;  %v14215_v47 = vld [vmem:[%s16780_s3 + $0x210] sm:$0xff]  }
 0x64e   :  { %v16264_v49 = vpack.c.bf16 %v6374_v38, %v6373_v24 }
 0x64f   :  { %v16266_v33 = vadd.f32 %v6366_v48, %v1531_v4  ;;  %v14216_v4 = vld [vmem:[%s16780_s3 + $0x208] sm:$0xff]   ;;  %v14217_v48 = vld [vmem:[%s16780_s3 + $0x200] sm:$0xff]  }
 0x650   :  { %13234 = vmatprep.mubr.bf16.mxu0 %v16264_v49  ;;  %13254 = vmatprep.mubr.bf16.mxu1 %v16264_v49 }
 0x651   :  { %v6376_v50 = vmax.f32 %v16266_v33, 0.0 }
 0x653   :  { %v16276_v1 = vpack.c.bf16 %v6376_v50, %v6375_v39 }
 0x655   :  { %13235 = vmatmul.mubr.bf16.vlgmr.msra.gmra.mxu0 %v16276_v1  ;;  %13255 = vmatmul.mubr.bf16.vlgmr.msra.gmra.mxu1 %v16276_v1 }
 0x656   :  { %13259 = vmatpush3.bf16.msra.mxu0 %v14162_v3  ;;  %13279 = vmatpush3.bf16.msra.mxu1 %v14163_v5  ;;  %v14180_v3 = vld [vmem:[%s16780_s3 + $0x130] sm:$0xff]  }
 0x657   :  { %13274 = vmatprep.mubr.bf16.mxu0 %v16264_v49  ;;  %13294 = vmatprep.mubr.bf16.mxu1 %v16264_v49  ;;  %v14181_v5 = vld [vmem:[%s16780_s3 + $0x170] sm:$0xff]  }
 0x658   :  { %13260 = vmatprep.subr.bf16.mxu0 %v14164_v51  ;;  %13280 = vmatprep.subr.bf16.mxu1 %v14165_v52 }
 0x65a   :  { %13261 = vmatpush3.bf16.msra.mxu0 %v14164_v51  ;;  %13281 = vmatpush3.bf16.msra.mxu1 %v14165_v52 }
 0x65b   :  { %13262 = vmatprep.subr.bf16.mxu0 %v14166_v53  ;;  %13282 = vmatprep.subr.bf16.mxu1 %v14167_v55 }
 0x65e   :  { %13263 = vmatpush3.bf16.msra.mxu0 %v14166_v53  ;;  %13283 = vmatpush3.bf16.msra.mxu1 %v14167_v55 }
 0x65f   :  { %13264 = vmatprep.subr.bf16.mxu0 %v14168_v57  ;;  %13284 = vmatprep.subr.bf16.mxu1 %v14169_v58 }
 0x662   :  { %13265 = vmatpush3.bf16.msra.mxu0 %v14168_v57  ;;  %13285 = vmatpush3.bf16.msra.mxu1 %v14169_v58 }
 0x663   :  { %13266 = vmatprep.subr.bf16.mxu0 %v14170_v60  ;;  %13286 = vmatprep.subr.bf16.mxu1 %v14171_v62 }
 0x666   :  { %13267 = vmatpush3.bf16.msra.mxu0 %v14170_v60  ;;  %13287 = vmatpush3.bf16.msra.mxu1 %v14171_v62 }
 0x667   :  { %13268 = vmatprep.subr.bf16.mxu0 %v14172_v54  ;;  %13288 = vmatprep.subr.bf16.mxu1 %v14173_v56 }
 0x66a   :  { %13269 = vmatpush3.bf16.msra.mxu0 %v14172_v54  ;;  %13289 = vmatpush3.bf16.msra.mxu1 %v14173_v56 }
 0x66b   :  { %13270 = vmatprep.subr.bf16.mxu0 %v14174_v59  ;;  %13290 = vmatprep.subr.bf16.mxu1 %v14175_v61 }
 0x66e   :  { %13271 = vmatpush3.bf16.msra.mxu0 %v14174_v59  ;;  %13291 = vmatpush3.bf16.msra.mxu1 %v14175_v61 }
 0x66f   :  { %13272 = vmatprep.subr.bf16.mxu0 %v14176_v63  ;;  %13292 = vmatprep.subr.bf16.mxu1 %v14177_v40 }
 0x672   :  { %13273 = vmatpush3.bf16.msra.mxu0 %v14176_v63  ;;  %13293 = vmatpush3.bf16.msra.mxu1 %v14177_v40  ;;  %v14236_v63 = vld [vmem:[%s16783_s10 + $0x4] ss:$12 sps:$4 sm:$0xff]   ;;  %v14241_v40 = vld [vmem:[%s16783_s10 + $0x8] ss:$12 sps:$4 sm:$0xff]  }
 0x673   :  { %13298 = vmatprep.subr.bf16.mxu0 %v14178_v0  ;;  %13318 = vmatprep.subr.bf16.mxu1 %v14179_v2 }
 0x675   :  { %13275 = vmatmul.mubr.bf16.vlgmr.msra.gmra.mxu0 %v16276_v1  ;;  %13295 = vmatmul.mubr.bf16.vlgmr.msra.gmra.mxu1 %v16276_v1 }
 0x676   :  { %13299 = vmatpush3.bf16.msra.mxu0 %v14178_v0  ;;  %13314 = vmatprep.mubr.bf16.mxu0 %v16264_v49 }
 0x677   :  { %13319 = vmatpush3.bf16.msra.mxu1 %v14179_v2  ;;  %13334 = vmatprep.mubr.bf16.mxu1 %v16264_v49 }
 0x678   :  { %13300 = vmatprep.subr.bf16.mxu0 %v14180_v3  ;;  %13320 = vmatprep.subr.bf16.mxu1 %v14181_v5 }
 0x67a   :  { %13301 = vmatpush3.bf16.msra.mxu0 %v14180_v3 }
 0x67b   :  { %13321 = vmatpush3.bf16.msra.mxu1 %v14181_v5  ;;  %13302 = vmatprep.subr.bf16.mxu0 %v14182_v9 }
 0x67c   :  { %13322 = vmatprep.subr.bf16.mxu1 %v14183_v6 }
 0x67e   :  { %13303 = vmatpush3.bf16.msra.mxu0 %v14182_v9 }
 0x67f   :  { %13323 = vmatpush3.bf16.msra.mxu1 %v14183_v6  ;;  %13304 = vmatprep.subr.bf16.mxu0 %v14184_v8 }
 0x680   :  { %13324 = vmatprep.subr.bf16.mxu1 %v14185_v34 }
 0x682   :  { %13305 = vmatpush3.bf16.msra.mxu0 %v14184_v8 }
 0x683   :  { %13325 = vmatpush3.bf16.msra.mxu1 %v14185_v34  ;;  %13306 = vmatprep.subr.bf16.mxu0 %v14186_v32 }
 0x684   :  { %13326 = vmatprep.subr.bf16.mxu1 %v14187_v35 }
 0x686   :  { %13307 = vmatpush3.bf16.msra.mxu0 %v14186_v32 }
 0x687   :  { %13327 = vmatpush3.bf16.msra.mxu1 %v14187_v35  ;;  %13308 = vmatprep.subr.bf16.mxu0 %v14188_v10 }
 0x688   :  { %13328 = vmatprep.subr.bf16.mxu1 %v14189_v36 }
 0x68a   :  { %13309 = vmatpush3.bf16.msra.mxu0 %v14188_v10 }
 0x68b   :  { %13329 = vmatpush3.bf16.msra.mxu1 %v14189_v36  ;;  %13310 = vmatprep.subr.bf16.mxu0 %v14190_v11 }
 0x68c   :  { %13330 = vmatprep.subr.bf16.mxu1 %v14191_v12 }
 0x68e   :  { %13311 = vmatpush3.bf16.msra.mxu0 %v14190_v11 }
 0x68f   :  { %13331 = vmatpush3.bf16.msra.mxu1 %v14191_v12  ;;  %13312 = vmatprep.subr.bf16.mxu0 %v14192_v13 }
 0x690   :  { %13332 = vmatprep.subr.bf16.mxu1 %v14193_v14 }
 0x692   :  { %13313 = vmatpush3.bf16.msra.mxu0 %v14192_v13 }
 0x693   :  { %13333 = vmatpush3.bf16.msra.mxu1 %v14193_v14  ;;  %13338 = vmatprep.subr.bf16.mxu0 %v14194_v15 }
 0x694   :  { %13358 = vmatprep.subr.bf16.mxu1 %v14195_v16 }
 0x695   :  { %13315 = vmatmul.mubr.bf16.vlgmr.msra.gmra.mxu0 %v16276_v1 }
 0x696   :  { %13335 = vmatmul.mubr.bf16.vlgmr.msra.gmra.mxu1 %v16276_v1  ;;  %13339 = vmatpush3.bf16.msra.mxu0 %v14194_v15 }
 0x697   :  { %13354 = vmatprep.mubr.bf16.mxu0 %v16264_v49  ;;  %13359 = vmatpush3.bf16.msra.mxu1 %v14195_v16 }
 0x698   :  { %13374 = vmatprep.mubr.bf16.mxu1 %v16264_v49  ;;  %13340 = vmatprep.subr.bf16.mxu0 %v14196_v17 }
 0x699   :  { %13360 = vmatprep.subr.bf16.mxu1 %v14197_v18 }
 0x69a   :  { %13341 = vmatpush3.bf16.msra.mxu0 %v14196_v17 }
 0x69b   :  { %13361 = vmatpush3.bf16.msra.mxu1 %v14197_v18  ;;  %13342 = vmatprep.subr.bf16.mxu0 %v14198_v19 }
 0x69c   :  { %13362 = vmatprep.subr.bf16.mxu1 %v14199_v20 }
 0x69e   :  { %13343 = vmatpush3.bf16.msra.mxu0 %v14198_v19 }
 0x69f   :  { %13363 = vmatpush3.bf16.msra.mxu1 %v14199_v20  ;;  %13344 = vmatprep.subr.bf16.mxu0 %v14200_v21 }
 0x6a0   :  { %13364 = vmatprep.subr.bf16.mxu1 %v14201_v22 }
 0x6a2   :  { %13345 = vmatpush3.bf16.msra.mxu0 %v14200_v21 }
 0x6a3   :  { %13365 = vmatpush3.bf16.msra.mxu1 %v14201_v22  ;;  %13346 = vmatprep.subr.bf16.mxu0 %v14202_v26 }
 0x6a4   :  { %13366 = vmatprep.subr.bf16.mxu1 %v14203_v25 }
 0x6a6   :  { %13347 = vmatpush3.bf16.msra.mxu0 %v14202_v26 }
 0x6a7   :  { %13367 = vmatpush3.bf16.msra.mxu1 %v14203_v25  ;;  %13348 = vmatprep.subr.bf16.mxu0 %v14204_v27 }
 0x6a8   :  { %13368 = vmatprep.subr.bf16.mxu1 %v14205_v45 }
 0x6aa   :  { %13349 = vmatpush3.bf16.msra.mxu0 %v14204_v27 }
 0x6ab   :  { %13369 = vmatpush3.bf16.msra.mxu1 %v14205_v45  ;;  %13350 = vmatprep.subr.bf16.mxu0 %v14206_v28 }
 0x6ac   :  { %13370 = vmatprep.subr.bf16.mxu1 %v14207_v29 }
 0x6ae   :  { %13351 = vmatpush3.bf16.msra.mxu0 %v14206_v28 }
 0x6af   :  { %13371 = vmatpush3.bf16.msra.mxu1 %v14207_v29  ;;  %13352 = vmatprep.subr.bf16.mxu0 %v14208_v30 }
 0x6b0   :  { %13372 = vmatprep.subr.bf16.mxu1 %v14209_v37 }
 0x6b2   :  { %13353 = vmatpush3.bf16.msra.mxu0 %v14208_v30 }
 0x6b3   :  { %13373 = vmatpush3.bf16.msra.mxu1 %v14209_v37  ;;  %13378 = vmatprep.subr.bf16.mxu0 %v14210_v23 }
 0x6b5   :  { %13355 = vmatmul.mubr.bf16.vlgmr.msra.gmra.mxu0 %v16276_v1 }
 0x6b6   :  { %13375 = vmatmul.mubr.bf16.vlgmr.msra.gmra.mxu1 %v16276_v1  ;;  %13379 = vmatpush3.bf16.msra.mxu0 %v14210_v23 }
 0x6b7   :  { %13394 = vmatprep.mubr.bf16.mxu0 %v16264_v49  ;;  %13380 = vmatprep.subr.bf16.mxu0 %v14211_v41 }
 0x6b8   :  { %7820 = vmatprep.mubr.bf16.mxu1 %v14236_v63 }
 0x6ba   :  { %13381 = vmatpush3.bf16.msra.mxu0 %v14211_v41 }
 0x6bb   :  { %13382 = vmatprep.subr.bf16.mxu0 %v14212_v42 }
 0x6be   :  { %13383 = vmatpush3.bf16.msra.mxu0 %v14212_v42 }
 0x6bf   :  { %13384 = vmatprep.subr.bf16.mxu0 %v14213_v43 }
 0x6c2   :  { %13385 = vmatpush3.bf16.msra.mxu0 %v14213_v43 }
 0x6c3   :  { %13386 = vmatprep.subr.bf16.mxu0 %v14214_v46 }
 0x6c6   :  { %13387 = vmatpush3.bf16.msra.mxu0 %v14214_v46 }
 0x6c7   :  { %13388 = vmatprep.subr.bf16.mxu0 %v14215_v47 }
 0x6ca   :  { %13389 = vmatpush3.bf16.msra.mxu0 %v14215_v47 }
 0x6cb   :  { %13390 = vmatprep.subr.bf16.mxu0 %v14216_v4 }
 0x6ce   :  { %13391 = vmatpush3.bf16.msra.mxu0 %v14216_v4 }
 0x6cf   :  { %13392 = vmatprep.subr.bf16.mxu0 %v14217_v48 }
 0x6d2   :  { %13393 = vmatpush3.bf16.msra.mxu0 %v14217_v48 }
 0x6d5   :  { %13395 = vmatmul.mubr.bf16.vlgmr.msra.gmra.mxu0 %v16276_v1 }
 0x6d6   :  { %13402 = vmatprep.mubr.msk.bf16.mxu0 %vm6264_vm1, %v14241_v40 }
 0x715   :  { %v13236_v51 = vpop.f32.mrf.mxu0  ;;  %v13256_v52 = vpop.f32.mrf.mxu1 }
 0x717   :  { %v6477_v53 = vpop.f32.mrf.mxu0  ;;  %v6610_v55 = vpop.f32.mrf.mxu1 }
 0x719   :  { %v13237_v57 = vpop.f32.mrf.mxu0  ;;  %v13257_v58 = vpop.f32.mrf.mxu1 }
 0x71a   :  { %v11823_v60 = vpack.c.bf16 %v13237_v57, %v13236_v51  ;;  %v11833_v62 = vpack.c.bf16 %v13257_v58, %v13256_v52 }
 0x71b   :  { %v6480_v54 = vpop.f32.mrf.mxu0  ;;  %v6613_v56 = vpop.f32.mrf.mxu1 }
 0x71c   :  { %12040 = vst [vmem:[#allocation2 + $0x8] sm:$0xff] %v11823_v60   ;;  %12042 = vst [vmem:[#allocation2 + $0x18] sm:$0xff] %v11833_v62   ;;  %v11818_v59 = vpack.c.bf16 %v6480_v54, %v6477_v53  ;;  %v11828_v61 = vpack.c.bf16 %v6613_v56, %v6610_v55 }
 0x71e   :  { %11819 = vst [vmem:[#allocation2] sm:$0xff] %v11818_v59   ;;  %12041 = vst [vmem:[#allocation2 + $0x10] sm:$0xff] %v11828_v61  }
 0x723   :  { %v14227_v60 = vld [vmem:[#allocation2 + $0x18] sm:$0xff]  }
 0x725   :  { %v14229_v59 = vld [vmem:[#allocation2 + $0x10] sm:$0xff]  }
 0x735   :  { %v13276_v0 = vpop.f32.mrf.mxu0  ;;  %v13296_v2 = vpop.f32.mrf.mxu1 }
 0x737   :  { %v6743_v3 = vpop.f32.mrf.mxu0  ;;  %v6876_v5 = vpop.f32.mrf.mxu1 }
 0x739   :  { %v13277_v9 = vpop.f32.mrf.mxu0  ;;  %v13297_v6 = vpop.f32.mrf.mxu1 }
 0x73a   :  { %v11843_v8 = vpack.c.bf16 %v13277_v9, %v13276_v0  ;;  %v11853_v34 = vpack.c.bf16 %v13297_v6, %v13296_v2  ;;  %v14231_v2 = vld [vmem:[#allocation2 + $0x8] sm:$0xff]   ;;  %v14233_v9 = vld [vmem:[#allocation2] sm:$0xff]  }
 0x73b   :  { %v6746_v32 = vpop.f32.mrf.mxu0  ;;  %v6879_v35 = vpop.f32.mrf.mxu1  ;;  %v14234_v6 = vld [vmem:[%s16783_s10] ss:$12 sps:$4 sm:$0xff]  }
 0x73c   :  { %12044 = vst [vmem:[#allocation2 + $0x28] sm:$0xff] %v11843_v8   ;;  %12046 = vst [vmem:[#allocation2 + $0x38] sm:$0xff] %v11853_v34   ;;  %v11838_v10 = vpack.c.bf16 %v6746_v32, %v6743_v3  ;;  %v11848_v36 = vpack.c.bf16 %v6879_v35, %v6876_v5  ;;  %v14245_v5 = vld [vmem:[%s16780_s3 + $0x78] sm:$0xff]   ;;  %v14247_v32 = vld [vmem:[%s16780_s3 + $0x70] sm:$0xff]  }
 0x73d   :  { %v14239_v8 = vld [vmem:[%s16783_s10 + $0x1c] ss:$12 sps:$4 sm:$0xff]  }
 0x73e   :  { %12043 = vst [vmem:[#allocation2 + $0x20] sm:$0xff] %v11838_v10   ;;  %12045 = vst [vmem:[#allocation2 + $0x30] sm:$0xff] %v11848_v36   ;;  %v14244_v10 = vld [vmem:[%s16780_s3 + $0x38] sm:$0xff]   ;;  %v14243_v36 = vld [vmem:[%s16783_s10 + $0x20] ss:$12 sps:$4 sm:$0xff]  }
 0x743   :  { %v14219_v47 = vld [vmem:[#allocation2 + $0x38] sm:$0xff]   ;;  %v14223_v52 = vld [vmem:[#allocation2 + $0x28] sm:$0xff]  }
 0x745   :  { %v14221_v48 = vld [vmem:[#allocation2 + $0x30] sm:$0xff]   ;;  %v14225_v55 = vld [vmem:[#allocation2 + $0x20] sm:$0xff]  }
 0x755   :  { %v13316_v11 = vpop.f32.mrf.mxu0 }
 0x756   :  { %v13336_v12 = vpop.f32.mrf.mxu1 }
 0x757   :  { %v7009_v13 = vpop.f32.mrf.mxu0 }
 0x758   :  { %v7142_v14 = vpop.f32.mrf.mxu1 }
 0x759   :  { %v13317_v15 = vpop.f32.mrf.mxu0 }
 0x75a   :  { %v11863_v16 = vpack.c.bf16 %v13317_v15, %v13316_v11  ;;  %v13337_v17 = vpop.f32.mrf.mxu1  ;;  %v14242_v11 = vld [vmem:[%s16783_s10 + $0x18] ss:$12 sps:$4 sm:$0xff]  }
 0x75b   :  { %v11873_v18 = vpack.c.bf16 %v13337_v17, %v13336_v12  ;;  %v7012_v19 = vpop.f32.mrf.mxu0  ;;  %v14246_v12 = vld [vmem:[%s16780_s3 + $0x30] sm:$0xff]   ;;  %v14250_v15 = vld [vmem:[%s16780_s3 + $0x20] sm:$0xff]   ;;  %v14252_v17 = vld [vmem:[%s16780_s3 + $0x18] sm:$0xff]  }
 0x75c   :  { %12048 = vst [vmem:[#allocation2 + $0x48] sm:$0xff] %v11863_v16   ;;  %v11858_v20 = vpack.c.bf16 %v7012_v19, %v7009_v13  ;;  %v7145_v21 = vpop.f32.mrf.mxu1  ;;  %v14248_v13 = vld [vmem:[%s16780_s3 + $0x28] sm:$0xff]   ;;  %v14251_v16 = vld [vmem:[%s16780_s3 + $0x60] sm:$0xff]   ;;  %v14254_v19 = vld [vmem:[%s16780_s3 + $0x10] sm:$0xff]  }
 0x75d   :  { %12050 = vst [vmem:[#allocation2 + $0x58] sm:$0xff] %v11873_v18   ;;  %v11868_v22 = vpack.c.bf16 %v7145_v21, %v7142_v14  ;;  %v14249_v14 = vld [vmem:[%s16780_s3 + $0x68] sm:$0xff]   ;;  %v14253_v18 = vld [vmem:[%s16780_s3 + $0x58] sm:$0xff]  }
 0x75e   :  { %12047 = vst [vmem:[#allocation2 + $0x40] sm:$0xff] %v11858_v20   ;;  %v14255_v20 = vld [vmem:[%s16780_s3 + $0x50] sm:$0xff]   ;;  %v14256_v21 = vld [vmem:[%s16780_s3 + $0x8] sm:$0xff]  }
 0x75f   :  { %12049 = vst [vmem:[#allocation2 + $0x50] sm:$0xff] %v11868_v22   ;;  %v14257_v22 = vld [vmem:[%s16780_s3 + $0x48] sm:$0xff]  }
 0x763   :  { %v14230_v63 = vld [vmem:[#allocation2 + $0x48] sm:$0xff]  }
 0x764   :  { %v14226_v57 = vld [vmem:[#allocation2 + $0x58] sm:$0xff]  }
 0x765   :  { %v14232_v3 = vld [vmem:[#allocation2 + $0x40] sm:$0xff]  }
 0x766   :  { %v14228_v62 = vld [vmem:[#allocation2 + $0x50] sm:$0xff]  }
 0x775   :  { %v13356_v26 = vpop.f32.mrf.mxu0 }
 0x776   :  { %v13376_v25 = vpop.f32.mrf.mxu1 }
 0x777   :  { %v7275_v27 = vpop.f32.mrf.mxu0 }
 0x778   :  { %v7408_v45 = vpop.f32.mrf.mxu1 }
 0x779   :  { %v13357_v28 = vpop.f32.mrf.mxu0 }
 0x77a   :  { %v11883_v29 = vpack.c.bf16 %v13357_v28, %v13356_v26  ;;  %v13377_v30 = vpop.f32.mrf.mxu1  ;;  %v14258_v26 = vld [vmem:[%s16780_s3] sm:$0xff]  }
 0x77b   :  { %v11893_v37 = vpack.c.bf16 %v13377_v30, %v13376_v25  ;;  %v7278_v23 = vpop.f32.mrf.mxu0  ;;  %v14259_v25 = vld [vmem:[%s16780_s3 + $0x40] sm:$0xff]  }
 0x77c   :  { %12052 = vst [vmem:[#allocation2 + $0x68] sm:$0xff] %v11883_v29   ;;  %v11878_v41 = vpack.c.bf16 %v7278_v23, %v7275_v27  ;;  %v7411_v42 = vpop.f32.mrf.mxu1  ;;  %v14260_v27 = vld [vmem:[%s16780_s3 + $0xb8] sm:$0xff]  }
 0x77d   :  { %12054 = vst [vmem:[#allocation2 + $0x78] sm:$0xff] %v11893_v37   ;;  %v11888_v43 = vpack.c.bf16 %v7411_v42, %v7408_v45  ;;  %v14261_v45 = vld [vmem:[%s16780_s3 + $0xf8] sm:$0xff]   ;;  %v7627_v37 = vpop.permute.xlu0 %7626 }
 0x77e   :  { %12051 = vst [vmem:[#allocation2 + $0x60] sm:$0xff] %v11878_v41  }
 0x77f   :  { %12053 = vst [vmem:[#allocation2 + $0x70] sm:$0xff] %v11888_v43  }
 0x783   :  { %v14222_v51 = vld [vmem:[#allocation2 + $0x68] sm:$0xff]  }
 0x784   :  { %v14218_v46 = vld [vmem:[#allocation2 + $0x78] sm:$0xff]  }
 0x785   :  { %12864 = vmatprep.subr.bf16.mxu1 %v14218_v46  ;;  %v14224_v53 = vld [vmem:[#allocation2 + $0x60] sm:$0xff]  }
 0x786   :  { %v14220_v4 = vld [vmem:[#allocation2 + $0x70] sm:$0xff]   ;;  %12865 = vmatpush3.bf16.msra.mxu1 %v14219_v47 }
 0x787   :  { %12866 = vmatprep.subr.bf16.mxu1 %v14220_v4  ;;  %v7632_v4 = vpop.permute.xlu1 %7631 }
 0x78a   :  { %12867 = vmatpush3.bf16.msra.mxu1 %v14221_v48 }
 0x78b   :  { %12868 = vmatprep.subr.bf16.mxu1 %v14222_v51 }
 0x78e   :  { %12869 = vmatpush3.bf16.msra.mxu1 %v14223_v52 }
 0x78f   :  { %12870 = vmatprep.subr.bf16.mxu1 %v14224_v53 }
 0x792   :  { %12871 = vmatpush3.bf16.msra.mxu1 %v14225_v55  ;;  %v7637_v55 = vpop.permute.xlu0 %7636 }
 0x793   :  { %12872 = vmatprep.subr.bf16.mxu1 %v14226_v57 }
 0x795   :  { %v13396_v58 = vpop.f32.mrf.mxu0 }
 0x796   :  { %12873 = vmatpush3.bf16.msra.mxu1 %v14227_v60 }
 0x797   :  { %v7541_v54 = vpop.f32.mrf.mxu0  ;;  %12874 = vmatprep.subr.bf16.mxu1 %v14228_v62 }
 0x799   :  { %v13397_v56 = vpop.f32.mrf.mxu0 }
 0x79a   :  { %v11903_v61 = vpack.c.bf16 %v13397_v56, %v13396_v58  ;;  %12875 = vmatpush3.bf16.msra.mxu1 %v14229_v59 }
 0x79b   :  { %v7544_v40 = vpop.f32.mrf.mxu0  ;;  %12876 = vmatprep.subr.bf16.mxu1 %v14230_v63  ;;  %v7642_v63 = vpop.permute.xlu1 %7641 }
 0x79c   :  { %12056 = vst [vmem:[#allocation2 + $0x88] sm:$0xff] %v11903_v61   ;;  %v11898_v0 = vpack.c.bf16 %v7544_v40, %v7541_v54 }
 0x79e   :  { %12055 = vst [vmem:[#allocation2 + $0x80] sm:$0xff] %v11898_v0   ;;  %12877 = vmatpush3.bf16.msra.mxu1 %v14231_v2 }
 0x79f   :  { %12878 = vmatprep.subr.bf16.mxu1 %v14232_v3 }
 0x7a2   :  { %12879 = vmatpush3.bf16.msra.mxu1 %v14233_v9 }
 0x7a3   :  { %v14237_v34 = vld [vmem:[#allocation2 + $0x88] sm:$0xff]   ;;  %13426 = vmatprep.subr.bf16.mxu1 %v14245_v5 }
 0x7a4   :  { %13398 = vmatprep.subr.bf16.mxu0 %v14237_v34 }
 0x7a5   :  { %v14238_v35 = vld [vmem:[#allocation2 + $0x80] sm:$0xff]   ;;  %7821 = vmatmul.mubr.bf16.vlgmr.msra.gmra.mxu1 %v14234_v6  ;;  %13399 = vmatpush3.bf16.msra.mxu0 %v14237_v34 }
 0x7a6   :  { %13400 = vmatprep.subr.bf16.mxu0 %v14238_v35  ;;  %7828 = vmatprep.mubr.bf16.mxu1 %v14239_v8 }
 0x7a7   :  { %13427 = vmatpush3.bf16.msra.mxu1 %v14245_v5 }
 0x7a8   :  { %13428 = vmatprep.subr.bf16.mxu1 %v14247_v32 }
 0x7a9   :  { %13401 = vmatpush3.bf16.msra.mxu0 %v14238_v35  ;;  %v14263_v35 = vld [vmem:[%s16780_s3 + $0xf0] sm:$0xff]  }
 0x7aa   :  { %13406 = vmatprep.subr.bf16.mxu0 %v14244_v10 }
 0x7ab   :  { %13429 = vmatpush3.bf16.msra.mxu1 %v14247_v32  ;;  %v14262_v32 = vld [vmem:[%s16780_s3 + $0xb0] sm:$0xff]  }
 0x7ac   :  { %13403 = vmatmul.mubr.msk.bf16.vlgmr.msra.gmra.mxu0 %vm6264_vm1, %v14243_v36  ;;  %13430 = vmatprep.subr.bf16.mxu1 %v14249_v14  ;;  %v14265_v36 = vld [vmem:[%s16780_s3 + $0xe8] sm:$0xff]  }
 0x7ad   :  { %7829 = vmatmul.mubr.bf16.gmra.mxu1 %v14242_v11  ;;  %13407 = vmatpush3.bf16.msra.mxu0 %v14244_v10  ;;  %v14264_v10 = vld [vmem:[%s16780_s3 + $0xa8] sm:$0xff]   ;;  %v14266_v11 = vld [vmem:[%s16780_s3 + $0xa0] sm:$0xff]  }
 0x7ae   :  { %13408 = vmatprep.subr.bf16.mxu0 %v14246_v12 }
 0x7af   :  { %13431 = vmatpush3.bf16.msra.mxu1 %v14249_v14  ;;  %v14269_v14 = vld [vmem:[%s16780_s3 + $0xd8] sm:$0xff]  }
 0x7b0   :  { %13432 = vmatprep.subr.bf16.mxu1 %v14251_v16 }
 0x7b1   :  { %13409 = vmatpush3.bf16.msra.mxu0 %v14246_v12  ;;  %v14267_v12 = vld [vmem:[%s16780_s3 + $0xe0] sm:$0xff]  }
 0x7b2   :  { %13410 = vmatprep.subr.bf16.mxu0 %v14248_v13 }
 0x7b3   :  { %13433 = vmatpush3.bf16.msra.mxu1 %v14251_v16  ;;  %v14271_v16 = vld [vmem:[%s16780_s3 + $0xd0] sm:$0xff]  }
 0x7b4   :  { %13434 = vmatprep.subr.bf16.mxu1 %v14253_v18 }
 0x7b5   :  { %13411 = vmatpush3.bf16.msra.mxu0 %v14248_v13  ;;  %v14268_v13 = vld [vmem:[%s16780_s3 + $0x98] sm:$0xff]  }
 0x7b6   :  { %13412 = vmatprep.subr.bf16.mxu0 %v14250_v15 }
 0x7b7   :  { %13435 = vmatpush3.bf16.msra.mxu1 %v14253_v18  ;;  %v14273_v18 = vld [vmem:[%s16780_s3 + $0xc8] sm:$0xff]  }
 0x7b8   :  { %13436 = vmatprep.subr.bf16.mxu1 %v14255_v20 }
 0x7b9   :  { %13413 = vmatpush3.bf16.msra.mxu0 %v14250_v15  ;;  %v14270_v15 = vld [vmem:[%s16780_s3 + $0x90] sm:$0xff]  }
 0x7ba   :  { %13414 = vmatprep.subr.bf16.mxu0 %v14252_v17 }
 0x7bb   :  { %13437 = vmatpush3.bf16.msra.mxu1 %v14255_v20  ;;  %v14275_v20 = vld [vmem:[%s16780_s3 + $0xc0] sm:$0xff]  }
 0x7bc   :  { %13438 = vmatprep.subr.bf16.mxu1 %v14257_v22 }
 0x7bd   :  { %13415 = vmatpush3.bf16.msra.mxu0 %v14252_v17  ;;  %v14272_v17 = vld [vmem:[%s16780_s3 + $0x88] sm:$0xff]  }
 0x7be   :  { %13416 = vmatprep.subr.bf16.mxu0 %v14254_v19 }
 0x7bf   :  { %13439 = vmatpush3.bf16.msra.mxu1 %v14257_v22  ;;  %v14277_v22 = vld [vmem:[%s16780_s3 + $0x178] sm:$0xff]  }
 0x7c0   :  { %13440 = vmatprep.subr.bf16.mxu1 %v14259_v25 }
 0x7c1   :  { %13417 = vmatpush3.bf16.msra.mxu0 %v14254_v19  ;;  %v14274_v19 = vld [vmem:[%s16780_s3 + $0x80] sm:$0xff]  }
 0x7c2   :  { %13418 = vmatprep.subr.bf16.mxu0 %v14256_v21 }
 0x7c3   :  { %13441 = vmatpush3.bf16.msra.mxu1 %v14259_v25  ;;  %v14279_v25 = vld [vmem:[%s16780_s3 + $0x170] sm:$0xff]  }
 0x7c4   :  { %13466 = vmatprep.subr.bf16.mxu1 %v14261_v45 }
 0x7c5   :  { %13419 = vmatpush3.bf16.msra.mxu0 %v14256_v21  ;;  %v14276_v21 = vld [vmem:[%s16780_s3 + $0x138] sm:$0xff]  }
 0x7c6   :  { %13420 = vmatprep.subr.bf16.mxu0 %v14258_v26 }
 0x7c9   :  { %13421 = vmatpush3.bf16.msra.mxu0 %v14258_v26  ;;  %v14278_v26 = vld [vmem:[%s16780_s3 + $0x130] sm:$0xff]  }
 0x7ca   :  { %13446 = vmatprep.subr.bf16.mxu0 %v14260_v27 }
 0x865   :  { %v12880_v28 = vpop.f32.mrf.mxu1 }
 0x867   :  { %v12881_v29 = vpop.f32.mrf.mxu1 }
 0x868   :  { %v12882_v23 = vadd.f32 %v12881_v29, %v12880_v28  ;;  %v14282_v28 = vld [vmem:[%s16780_s3 + $0x120] sm:$0xff]  }
 0x869   :  { %v12883_v30 = vpop.f32.mrf.mxu1  ;;  %v14283_v29 = vld [vmem:[%s16780_s3 + $0x160] sm:$0xff]  }
 0x86a   :  { %v7823_v51 = vadd.f32 %v12882_v23, %v7627_v37  ;;  %v14285_v37 = vld [vmem:[%s16780_s3 + $0x158] sm:$0xff]   ;;  %v14286_v23 = vld [vmem:[%s16780_s3 + $0x110] sm:$0xff]  }
 0x86b   :  { %v12884_v41 = vpop.f32.mrf.mxu1 }
 0x86c   :  { %v13404_v42 = vpop.f32.mrf.mxu0  ;;  %v12885_v43 = vadd.f32 %v12884_v41, %v12883_v30  ;;  %v14284_v30 = vld [vmem:[%s16780_s3 + $0x118] sm:$0xff]   ;;  %v14287_v41 = vld [vmem:[%s16780_s3 + $0x150] sm:$0xff]  }
 0x86d   :  { %v12886_v46 = vpop.f32.mrf.mxu1 }
 0x86e   :  { %v7871_v47 = vpop.f32.mrf.mxu0  ;;  %v7826_v60 = vadd.f32 %v12885_v43, %v7632_v4  ;;  %v14289_v43 = vld [vmem:[%s16780_s3 + $0x148] sm:$0xff]   ;;  %v14292_v4 = vld [vmem:[%s16780_s3 + $0x1b8] sm:$0xff]  }
 0x86f   :  { %v12887_v48 = vpop.f32.mrf.mxu1  ;;  %v7872_v57 = vadd.f32 %v7871_v47, %v7823_v51  ;;  %v14291_v47 = vld [vmem:[%s16780_s3 + $0x140] sm:$0xff]   ;;  %v14294_v51 = vld [vmem:[%s16780_s3 + $0x1b0] sm:$0xff]  }
 0x870   :  { %v12888_v52 = vadd.f32 %v12887_v48, %v12886_v46  ;;  %v13405_v53 = vpop.f32.mrf.mxu0  ;;  %v14290_v46 = vld [vmem:[%s16780_s3 + $0x100] sm:$0xff]   ;;  %v14293_v48 = vld [vmem:[%s16780_s3 + $0x1f8] sm:$0xff]  }
 0x871   :  { %v12889_v58 = vpop.f32.mrf.mxu1  ;;  %v7886_v40 = vmax.f32 %v7872_v57, 0.0  ;;  %v14298_v57 = vld [vmem:[%s16780_s3 + $0x1a0] sm:$0xff]  }
 0x872   :  { %v7831_v62 = vadd.f32 %v12888_v52, %v7637_v55  ;;  %v7874_v54 = vpop.f32.mrf.mxu0  ;;  %v14295_v52 = vld [vmem:[%s16780_s3 + $0x1f0] sm:$0xff]   ;;  %v14297_v55 = vld [vmem:[%s16780_s3 + $0x1e8] sm:$0xff]  }
 0x873   :  { %v12890_v56 = vpop.f32.mrf.mxu1  ;;  %v7875_v59 = vadd.f32 %v7874_v54, %v7826_v60  ;;  %v14300_v60 = vld [vmem:[%s16780_s3 + $0x198] sm:$0xff]   ;;  %v14302_v54 = vld [vmem:[%s16780_s3 + $0x190] sm:$0xff]  }
 0x874   :  { %v12891_v61 = vadd.f32 %v12890_v56, %v12889_v58  ;;  %v7880_v2 = vadd.f32 %v13404_v42, %v7831_v62  ;;  %v14288_v42 = vld [vmem:[%s16780_s3 + $0x108] sm:$0xff]   ;;  %v14299_v58 = vld [vmem:[%s16780_s3 + $0x1e0] sm:$0xff]   ;;  %v14301_v62 = vld [vmem:[%s16780_s3 + $0x1d8] sm:$0xff]  }
 0x875   :  { %v7887_v0 = vmax.f32 %v7875_v59, 0.0  ;;  %v14303_v56 = vld [vmem:[%s16780_s3 + $0x1d0] sm:$0xff]   ;;  %v14304_v59 = vld [vmem:[%s16780_s3 + $0x188] sm:$0xff]  }
 0x876   :  { %v7834_v3 = vadd.f32 %v12891_v61, %v7642_v63  ;;  %v7888_v6 = vmax.f32 %v7880_v2, 0.0  ;;  %v14305_v61 = vld [vmem:[%s16780_s3 + $0x1c8] sm:$0xff]   ;;  %v14306_v63 = vld [vmem:[%s16780_s3 + $0x180] sm:$0xff]   ;;  %v14309_v2 = vld [vmem:[%s16780_s3 + $0x230] sm:$0xff]  }
 0x877   :  { %v16530_v5 = vpack.c.bf16 %v7887_v0, %v7886_v40  ;;  %v14307_v40 = vld [vmem:[%s16780_s3 + $0x1c0] sm:$0xff]   ;;  %v14308_v0 = vld [vmem:[%s16780_s3 + $0x238] sm:$0xff]  }
 0x878   :  { %v7883_v9 = vadd.f32 %v13405_v53, %v7834_v3  ;;  %v14296_v53 = vld [vmem:[%s16780_s3 + $0x1a8] sm:$0xff]  }
 0x879   :  { %13422 = vmatprep.mubr.bf16.mxu0 %v16530_v5  ;;  %13442 = vmatprep.mubr.bf16.mxu1 %v16530_v5  ;;  %v14310_v3 = vld [vmem:[%s16780_s3 + $0x228] sm:$0xff]  }
 0x87a   :  { %v7889_v8 = vmax.f32 %v7883_v9, 0.0  ;;  %v14311_v9 = vld [vmem:[%s16780_s3 + $0x220] sm:$0xff]  }
 0x87c   :  { %v16534_v34 = vpack.c.bf16 %v7889_v8, %v7888_v6  ;;  %v14312_v6 = vld [vmem:[%s16780_s3 + $0x218] sm:$0xff]   ;;  %v14314_v8 = vld [vmem:[%s16780_s3 + $0x208] sm:$0xff]  }
 0x87e   :  { %13423 = vmatmul.mubr.bf16.vlgmr.msra.gmra.mxu0 %v16534_v34  ;;  %13443 = vmatmul.mubr.bf16.vlgmr.msra.gmra.mxu1 %v16534_v34 }
 0x87f   :  { %13447 = vmatpush3.bf16.msra.mxu0 %v14260_v27  ;;  %13467 = vmatpush3.bf16.msra.mxu1 %v14261_v45  ;;  %v14280_v27 = vld [vmem:[%s16780_s3 + $0x128] sm:$0xff]  }
 0x880   :  { %13462 = vmatprep.mubr.bf16.mxu0 %v16530_v5  ;;  %13482 = vmatprep.mubr.bf16.mxu1 %v16530_v5  ;;  %v14281_v45 = vld [vmem:[%s16780_s3 + $0x168] sm:$0xff]  }
 0x881   :  { %13448 = vmatprep.subr.bf16.mxu0 %v14262_v32  ;;  %13468 = vmatprep.subr.bf16.mxu1 %v14263_v35 }
 0x883   :  { %13449 = vmatpush3.bf16.msra.mxu0 %v14262_v32  ;;  %13469 = vmatpush3.bf16.msra.mxu1 %v14263_v35  ;;  %v14315_v32 = vld [vmem:[%s16780_s3 + $0x200] sm:$0xff]  }
 0x884   :  { %13450 = vmatprep.subr.bf16.mxu0 %v14264_v10  ;;  %13470 = vmatprep.subr.bf16.mxu1 %v14265_v36 }
 0x887   :  { %13451 = vmatpush3.bf16.msra.mxu0 %v14264_v10  ;;  %13471 = vmatpush3.bf16.msra.mxu1 %v14265_v36 }
 0x888   :  { %13452 = vmatprep.subr.bf16.mxu0 %v14266_v11  ;;  %13472 = vmatprep.subr.bf16.mxu1 %v14267_v12 }
 0x88b   :  { %13453 = vmatpush3.bf16.msra.mxu0 %v14266_v11  ;;  %13473 = vmatpush3.bf16.msra.mxu1 %v14267_v12 }
 0x88c   :  { %13454 = vmatprep.subr.bf16.mxu0 %v14268_v13  ;;  %13474 = vmatprep.subr.bf16.mxu1 %v14269_v14 }
 0x88f   :  { %13455 = vmatpush3.bf16.msra.mxu0 %v14268_v13  ;;  %13475 = vmatpush3.bf16.msra.mxu1 %v14269_v14 }
 0x890   :  { %13456 = vmatprep.subr.bf16.mxu0 %v14270_v15  ;;  %13476 = vmatprep.subr.bf16.mxu1 %v14271_v16 }
 0x893   :  { %13457 = vmatpush3.bf16.msra.mxu0 %v14270_v15  ;;  %13477 = vmatpush3.bf16.msra.mxu1 %v14271_v16 }
 0x894   :  { %13458 = vmatprep.subr.bf16.mxu0 %v14272_v17  ;;  %13478 = vmatprep.subr.bf16.mxu1 %v14273_v18 }
 0x897   :  { %13459 = vmatpush3.bf16.msra.mxu0 %v14272_v17  ;;  %13479 = vmatpush3.bf16.msra.mxu1 %v14273_v18 }
 0x898   :  { %13460 = vmatprep.subr.bf16.mxu0 %v14274_v19  ;;  %13480 = vmatprep.subr.bf16.mxu1 %v14275_v20 }
 0x89b   :  { %13461 = vmatpush3.bf16.msra.mxu0 %v14274_v19  ;;  %13481 = vmatpush3.bf16.msra.mxu1 %v14275_v20 }
 0x89c   :  { %13486 = vmatprep.subr.bf16.mxu0 %v14276_v21  ;;  %13506 = vmatprep.subr.bf16.mxu1 %v14277_v22 }
 0x89e   :  { %13463 = vmatmul.mubr.bf16.vlgmr.msra.gmra.mxu0 %v16534_v34  ;;  %13483 = vmatmul.mubr.bf16.vlgmr.msra.gmra.mxu1 %v16534_v34 }
 0x89f   :  { %13487 = vmatpush3.bf16.msra.mxu0 %v14276_v21  ;;  %13502 = vmatprep.mubr.bf16.mxu0 %v16530_v5  ;;  %v14334_v21 = vld [vmem:[%s16784_s12 + $0x4] ss:$12 sps:$4 sm:$0xff]  }
 0x8a0   :  { %13507 = vmatpush3.bf16.msra.mxu1 %v14277_v22  ;;  %13522 = vmatprep.mubr.bf16.mxu1 %v16530_v5  ;;  %v14341_v22 = vld [vmem:[%s16784_s12 + $0x8] ss:$12 sps:$4 sm:$0xff]  }
 0x8a1   :  { %13488 = vmatprep.subr.bf16.mxu0 %v14278_v26  ;;  %13508 = vmatprep.subr.bf16.mxu1 %v14279_v25 }
 0x8a3   :  { %13489 = vmatpush3.bf16.msra.mxu0 %v14278_v26 }
 0x8a4   :  { %13509 = vmatpush3.bf16.msra.mxu1 %v14279_v25  ;;  %13490 = vmatprep.subr.bf16.mxu0 %v14280_v27 }
 0x8a5   :  { %13510 = vmatprep.subr.bf16.mxu1 %v14281_v45 }
 0x8a7   :  { %13491 = vmatpush3.bf16.msra.mxu0 %v14280_v27 }
 0x8a8   :  { %13511 = vmatpush3.bf16.msra.mxu1 %v14281_v45  ;;  %13492 = vmatprep.subr.bf16.mxu0 %v14282_v28 }
 0x8a9   :  { %13512 = vmatprep.subr.bf16.mxu1 %v14283_v29 }
 0x8ab   :  { %13493 = vmatpush3.bf16.msra.mxu0 %v14282_v28 }
 0x8ac   :  { %13513 = vmatpush3.bf16.msra.mxu1 %v14283_v29  ;;  %13494 = vmatprep.subr.bf16.mxu0 %v14284_v30 }
 0x8ad   :  { %13514 = vmatprep.subr.bf16.mxu1 %v14285_v37 }
 0x8af   :  { %13495 = vmatpush3.bf16.msra.mxu0 %v14284_v30 }
 0x8b0   :  { %13515 = vmatpush3.bf16.msra.mxu1 %v14285_v37  ;;  %13496 = vmatprep.subr.bf16.mxu0 %v14286_v23 }
 0x8b1   :  { %13516 = vmatprep.subr.bf16.mxu1 %v14287_v41 }
 0x8b3   :  { %13497 = vmatpush3.bf16.msra.mxu0 %v14286_v23 }
 0x8b4   :  { %13517 = vmatpush3.bf16.msra.mxu1 %v14287_v41  ;;  %13498 = vmatprep.subr.bf16.mxu0 %v14288_v42 }
 0x8b5   :  { %13518 = vmatprep.subr.bf16.mxu1 %v14289_v43 }
 0x8b7   :  { %13499 = vmatpush3.bf16.msra.mxu0 %v14288_v42 }
 0x8b8   :  { %13519 = vmatpush3.bf16.msra.mxu1 %v14289_v43  ;;  %13500 = vmatprep.subr.bf16.mxu0 %v14290_v46 }
 0x8b9   :  { %13520 = vmatprep.subr.bf16.mxu1 %v14291_v47 }
 0x8bb   :  { %13501 = vmatpush3.bf16.msra.mxu0 %v14290_v46 }
 0x8bc   :  { %13521 = vmatpush3.bf16.msra.mxu1 %v14291_v47  ;;  %13526 = vmatprep.subr.bf16.mxu0 %v14292_v4 }
 0x8bd   :  { %13546 = vmatprep.subr.bf16.mxu1 %v14293_v48 }
 0x8be   :  { %13503 = vmatmul.mubr.bf16.vlgmr.msra.gmra.mxu0 %v16534_v34 }
 0x8bf   :  { %13523 = vmatmul.mubr.bf16.vlgmr.msra.gmra.mxu1 %v16534_v34  ;;  %13527 = vmatpush3.bf16.msra.mxu0 %v14292_v4 }
 0x8c0   :  { %13542 = vmatprep.mubr.bf16.mxu0 %v16530_v5  ;;  %13547 = vmatpush3.bf16.msra.mxu1 %v14293_v48 }
 0x8c1   :  { %13562 = vmatprep.mubr.bf16.mxu1 %v16530_v5  ;;  %13528 = vmatprep.subr.bf16.mxu0 %v14294_v51 }
 0x8c2   :  { %13548 = vmatprep.subr.bf16.mxu1 %v14295_v52 }
 0x8c3   :  { %13529 = vmatpush3.bf16.msra.mxu0 %v14294_v51 }
 0x8c4   :  { %13549 = vmatpush3.bf16.msra.mxu1 %v14295_v52  ;;  %13530 = vmatprep.subr.bf16.mxu0 %v14296_v53 }
 0x8c5   :  { %13550 = vmatprep.subr.bf16.mxu1 %v14297_v55 }
 0x8c7   :  { %13531 = vmatpush3.bf16.msra.mxu0 %v14296_v53 }
 0x8c8   :  { %13551 = vmatpush3.bf16.msra.mxu1 %v14297_v55  ;;  %13532 = vmatprep.subr.bf16.mxu0 %v14298_v57 }
 0x8c9   :  { %13552 = vmatprep.subr.bf16.mxu1 %v14299_v58 }
 0x8cb   :  { %13533 = vmatpush3.bf16.msra.mxu0 %v14298_v57 }
 0x8cc   :  { %13553 = vmatpush3.bf16.msra.mxu1 %v14299_v58  ;;  %13534 = vmatprep.subr.bf16.mxu0 %v14300_v60 }
 0x8cd   :  { %13554 = vmatprep.subr.bf16.mxu1 %v14301_v62 }
 0x8cf   :  { %13535 = vmatpush3.bf16.msra.mxu0 %v14300_v60 }
 0x8d0   :  { %13555 = vmatpush3.bf16.msra.mxu1 %v14301_v62  ;;  %13536 = vmatprep.subr.bf16.mxu0 %v14302_v54 }
 0x8d1   :  { %13556 = vmatprep.subr.bf16.mxu1 %v14303_v56 }
 0x8d3   :  { %13537 = vmatpush3.bf16.msra.mxu0 %v14302_v54 }
 0x8d4   :  { %13557 = vmatpush3.bf16.msra.mxu1 %v14303_v56  ;;  %13538 = vmatprep.subr.bf16.mxu0 %v14304_v59 }
 0x8d5   :  { %13558 = vmatprep.subr.bf16.mxu1 %v14305_v61 }
 0x8d7   :  { %13539 = vmatpush3.bf16.msra.mxu0 %v14304_v59 }
 0x8d8   :  { %13559 = vmatpush3.bf16.msra.mxu1 %v14305_v61  ;;  %13540 = vmatprep.subr.bf16.mxu0 %v14306_v63 }
 0x8d9   :  { %13560 = vmatprep.subr.bf16.mxu1 %v14307_v40 }
 0x8db   :  { %13541 = vmatpush3.bf16.msra.mxu0 %v14306_v63 }
 0x8dc   :  { %13561 = vmatpush3.bf16.msra.mxu1 %v14307_v40  ;;  %13566 = vmatprep.subr.bf16.mxu0 %v14308_v0 }
 0x8de   :  { %13543 = vmatmul.mubr.bf16.vlgmr.msra.gmra.mxu0 %v16534_v34 }
 0x8df   :  { %13563 = vmatmul.mubr.bf16.vlgmr.msra.gmra.mxu1 %v16534_v34  ;;  %13567 = vmatpush3.bf16.msra.mxu0 %v14308_v0 }
 0x8e0   :  { %13582 = vmatprep.mubr.bf16.mxu0 %v16530_v5  ;;  %13568 = vmatprep.subr.bf16.mxu0 %v14309_v2  ;;  %v14313_v5 = vld [vmem:[%s16780_s3 + $0x210] sm:$0xff]  }
 0x8e1   :  { %9333 = vmatprep.mubr.bf16.mxu1 %v14334_v21 }
 0x8e3   :  { %13569 = vmatpush3.bf16.msra.mxu0 %v14309_v2 }
 0x8e4   :  { %13570 = vmatprep.subr.bf16.mxu0 %v14310_v3 }
 0x8e7   :  { %13571 = vmatpush3.bf16.msra.mxu0 %v14310_v3 }
 0x8e8   :  { %13572 = vmatprep.subr.bf16.mxu0 %v14311_v9 }
 0x8eb   :  { %13573 = vmatpush3.bf16.msra.mxu0 %v14311_v9 }
 0x8ec   :  { %13574 = vmatprep.subr.bf16.mxu0 %v14312_v6 }
 0x8ef   :  { %13575 = vmatpush3.bf16.msra.mxu0 %v14312_v6 }
 0x8f0   :  { %13576 = vmatprep.subr.bf16.mxu0 %v14313_v5 }
 0x8f3   :  { %13577 = vmatpush3.bf16.msra.mxu0 %v14313_v5 }
 0x8f4   :  { %13578 = vmatprep.subr.bf16.mxu0 %v14314_v8 }
 0x8f7   :  { %13579 = vmatpush3.bf16.msra.mxu0 %v14314_v8 }
 0x8f8   :  { %13580 = vmatprep.subr.bf16.mxu0 %v14315_v32 }
 0x8fb   :  { %13581 = vmatpush3.bf16.msra.mxu0 %v14315_v32 }
 0x8fe   :  { %13583 = vmatmul.mubr.bf16.vlgmr.msra.gmra.mxu0 %v16534_v34 }
 0x8ff   :  { %13590 = vmatprep.mubr.msk.bf16.mxu0 %vm6264_vm1, %v14341_v22 }
 0x93e   :  { %v13424_v35 = vpop.f32.mrf.mxu0  ;;  %v13444_v10 = vpop.f32.mrf.mxu1 }
 0x940   :  { %v7990_v36 = vpop.f32.mrf.mxu0  ;;  %v8123_v11 = vpop.f32.mrf.mxu1 }
 0x942   :  { %v13425_v12 = vpop.f32.mrf.mxu0  ;;  %v13445_v13 = vpop.f32.mrf.mxu1 }
 0x943   :  { %v11913_v14 = vpack.c.bf16 %v13425_v12, %v13424_v35  ;;  %v11923_v15 = vpack.c.bf16 %v13445_v13, %v13444_v10 }
 0x944   :  { %v7993_v16 = vpop.f32.mrf.mxu0  ;;  %v8126_v17 = vpop.f32.mrf.mxu1 }
 0x945   :  { %12057 = vst [vmem:[#allocation2 + $0x8] sm:$0xff] %v11913_v14   ;;  %12059 = vst [vmem:[#allocation2 + $0x18] sm:$0xff] %v11923_v15   ;;  %v11908_v18 = vpack.c.bf16 %v7993_v16, %v7990_v36  ;;  %v11918_v19 = vpack.c.bf16 %v8126_v17, %v8123_v11 }
 0x947   :  { %11909 = vst [vmem:[#allocation2] sm:$0xff] %v11908_v18   ;;  %12058 = vst [vmem:[#allocation2 + $0x10] sm:$0xff] %v11918_v19  }
 0x94c   :  { %v16714_v20 = vld [vmem:[#allocation2 + $0x18] sm:$0xff]   ;;  %v14329_v22 = vld [vmem:[#allocation2 + $0x8] sm:$0xff]  }
 0x94d   :  { %12076 = vst [vmem:[#allocation2 + $0x18] sm:$0xff] %v16276_v1  }
 0x94e   :  { %v16717_v34 = vld [vmem:[#allocation2 + $0x10] sm:$0xff]  }
 0x94f   :  { %12075 = vst [vmem:[#allocation2 + $0x10] sm:$0xff] %v16264_v49  }
 0x95e   :  { %v13464_v26 = vpop.f32.mrf.mxu0  ;;  %v13484_v25 = vpop.f32.mrf.mxu1 }
 0x960   :  { %v8256_v27 = vpop.f32.mrf.mxu0  ;;  %v8389_v45 = vpop.f32.mrf.mxu1 }
 0x962   :  { %v13465_v1 = vpop.f32.mrf.mxu0  ;;  %v13485_v28 = vpop.f32.mrf.mxu1 }
 0x963   :  { %v11933_v29 = vpack.c.bf16 %v13465_v1, %v13464_v26  ;;  %v11943_v30 = vpack.c.bf16 %v13485_v28, %v13484_v25  ;;  %v14331_v25 = vld [vmem:[#allocation2] sm:$0xff]   ;;  %v14337_v1 = vld [vmem:[#allocation2 + $0x18] sm:$0xff]  }
 0x964   :  { %v8259_v49 = vpop.f32.mrf.mxu0  ;;  %v8392_v37 = vpop.f32.mrf.mxu1  ;;  %v14342_v28 = vld [vmem:[%s16784_s12 + $0x20] ss:$12 sps:$4 sm:$0xff]  }
 0x965   :  { %12061 = vst [vmem:[#allocation2 + $0x28] sm:$0xff] %v11933_v29   ;;  %12063 = vst [vmem:[#allocation2 + $0x38] sm:$0xff] %v11943_v30   ;;  %v11928_v23 = vpack.c.bf16 %v8259_v49, %v8256_v27  ;;  %v11938_v41 = vpack.c.bf16 %v8392_v37, %v8389_v45  ;;  %v14340_v27 = vld [vmem:[%s16784_s12 + $0x1c] ss:$12 sps:$4 sm:$0xff]   ;;  %v14338_v29 = vld [vmem:[%s16784_s12 + $0x18] ss:$12 sps:$4 sm:$0xff]  }
 0x966   :  { %v14343_v30 = vld [vmem:[#allocation2 + $0x10] sm:$0xff]   ;;  %v14346_v49 = vld [vmem:[%s16785_s14] sm:$0xff]  }
 0x967   :  { %12060 = vst [vmem:[#allocation2 + $0x20] sm:$0xff] %v11928_v23   ;;  %12062 = vst [vmem:[#allocation2 + $0x30] sm:$0xff] %v11938_v41   ;;  %v9150_v23 = vpop.permute.xlu0 %9149 }
 0x96c   :  { %v14317_v5 = vld [vmem:[#allocation2 + $0x38] sm:$0xff]   ;;  %v14321_v10 = vld [vmem:[#allocation2 + $0x28] sm:$0xff]  }
 0x96e   :  { %v14319_v32 = vld [vmem:[#allocation2 + $0x30] sm:$0xff]   ;;  %v14323_v11 = vld [vmem:[#allocation2 + $0x20] sm:$0xff]  }
 0x97e   :  { %v13504_v42 = vpop.f32.mrf.mxu0 }
 0x97f   :  { %v13524_v43 = vpop.f32.mrf.mxu1 }
 0x980   :  { %v8522_v46 = vpop.f32.mrf.mxu0 }
 0x981   :  { %v8655_v47 = vpop.f32.mrf.mxu1 }
 0x982   :  { %v13505_v4 = vpop.f32.mrf.mxu0 }
 0x983   :  { %v11953_v48 = vpack.c.bf16 %v13505_v4, %v13504_v42  ;;  %v13525_v51 = vpop.f32.mrf.mxu1  ;;  %v9140_v4 = vpop.permute.xlu0 %9139 }
 0x984   :  { %v11963_v52 = vpack.c.bf16 %v13525_v51, %v13524_v43  ;;  %v8525_v53 = vpop.f32.mrf.mxu0 }
 0x985   :  { %12065 = vst [vmem:[#allocation2 + $0x48] sm:$0xff] %v11953_v48   ;;  %v11948_v55 = vpack.c.bf16 %v8525_v53, %v8522_v46  ;;  %v8658_v57 = vpop.f32.mrf.mxu1  ;;  %v9155_v46 = vpop.permute.xlu1 %9154 }
 0x986   :  { %12067 = vst [vmem:[#allocation2 + $0x58] sm:$0xff] %v11963_v52   ;;  %v11958_v58 = vpack.c.bf16 %v8658_v57, %v8655_v47 }
 0x987   :  { %12064 = vst [vmem:[#allocation2 + $0x40] sm:$0xff] %v11948_v55   ;;  %v9464_v7 = vpop.permute.xlu0 %9463 }
 0x988   :  { %12066 = vst [vmem:[#allocation2 + $0x50] sm:$0xff] %v11958_v58  }
 0x98c   :  { %v14328_v18 = vld [vmem:[#allocation2 + $0x48] sm:$0xff]  }
 0x98d   :  { %v14324_v12 = vld [vmem:[#allocation2 + $0x58] sm:$0xff]  }
 0x98e   :  { %v14330_v26 = vld [vmem:[#allocation2 + $0x40] sm:$0xff]  }
 0x98f   :  { %v14326_v14 = vld [vmem:[#allocation2 + $0x50] sm:$0xff]  }
 0x99e   :  { %v13544_v60 = vpop.f32.mrf.mxu0 }
 0x99f   :  { %v13564_v62 = vpop.f32.mrf.mxu1 }
 0x9a0   :  { %v8788_v54 = vpop.f32.mrf.mxu0 }
 0x9a1   :  { %v8921_v56 = vpop.f32.mrf.mxu1 }
 0x9a2   :  { %v13545_v59 = vpop.f32.mrf.mxu0 }
 0x9a3   :  { %v11973_v61 = vpack.c.bf16 %v13545_v59, %v13544_v60  ;;  %v13565_v63 = vpop.f32.mrf.mxu1  ;;  %v9145_v60 = vpop.permute.xlu1 %9144 }
 0x9a4   :  { %v11983_v40 = vpack.c.bf16 %v13565_v63, %v13564_v62  ;;  %v8791_v0 = vpop.f32.mrf.mxu0 }
 0x9a5   :  { %12069 = vst [vmem:[#allocation2 + $0x68] sm:$0xff] %v11973_v61   ;;  %v11968_v2 = vpack.c.bf16 %v8791_v0, %v8788_v54  ;;  %v8924_v3 = vpop.f32.mrf.mxu1 }
 0x9a6   :  { %12071 = vst [vmem:[#allocation2 + $0x78] sm:$0xff] %v11983_v40   ;;  %v11978_v9 = vpack.c.bf16 %v8924_v3, %v8921_v56 }
 0x9a7   :  { %12068 = vst [vmem:[#allocation2 + $0x60] sm:$0xff] %v11968_v2   ;;  %v9469_v33 = vpop.permute.xlu1 %9468 }
 0x9a8   :  { %12070 = vst [vmem:[#allocation2 + $0x70] sm:$0xff] %v11978_v9  }
 0x9ac   :  { %v14320_v35 = vld [vmem:[#allocation2 + $0x68] sm:$0xff]  }
 0x9ad   :  { %v14316_v6 = vld [vmem:[#allocation2 + $0x78] sm:$0xff]  }
 0x9ae   :  { %12986 = vmatprep.subr.bf16.mxu1 %v14316_v6  ;;  %v14322_v36 = vld [vmem:[#allocation2 + $0x60] sm:$0xff]  }
 0x9af   :  { %v14318_v8 = vld [vmem:[#allocation2 + $0x70] sm:$0xff]   ;;  %12987 = vmatpush3.bf16.msra.mxu1 %v14317_v5 }
 0x9b0   :  { %12988 = vmatprep.subr.bf16.mxu1 %v14318_v8 }
 0x9b3   :  { %12989 = vmatpush3.bf16.msra.mxu1 %v14319_v32 }
 0x9b4   :  { %12990 = vmatprep.subr.bf16.mxu1 %v14320_v35 }
 0x9b7   :  { %12991 = vmatpush3.bf16.msra.mxu1 %v14321_v10 }
 0x9b8   :  { %12992 = vmatprep.subr.bf16.mxu1 %v14322_v36 }
 0x9bb   :  { %12993 = vmatpush3.bf16.msra.mxu1 %v14323_v11 }
 0x9bc   :  { %12994 = vmatprep.subr.bf16.mxu1 %v14324_v12 }
 0x9be   :  { %v13584_v13 = vpop.f32.mrf.mxu0 }
 0x9bf   :  { %12995 = vmatpush3.bf16.msra.mxu1 %v16714_v20  ;;  %v14332_v20 = vld [vmem:[%s16784_s12] ss:$12 sps:$4 sm:$0xff]  }
 0x9c0   :  { %v9054_v15 = vpop.f32.mrf.mxu0  ;;  %12996 = vmatprep.subr.bf16.mxu1 %v14326_v14 }
 0x9c2   :  { %v13585_v16 = vpop.f32.mrf.mxu0 }
 0x9c3   :  { %v11993_v17 = vpack.c.bf16 %v13585_v16, %v13584_v13  ;;  %12997 = vmatpush3.bf16.msra.mxu1 %v16717_v34 }
 0x9c4   :  { %v9057_v19 = vpop.f32.mrf.mxu0  ;;  %12998 = vmatprep.subr.bf16.mxu1 %v14328_v18  ;;  %v9479_v18 = vpop.permute.xlu1 %9478 }
 0x9c5   :  { %12073 = vst [vmem:[#allocation2 + $0x88] sm:$0xff] %v11993_v17   ;;  %v11988_v21 = vpack.c.bf16 %v9057_v19, %v9054_v15 }
 0x9c7   :  { %12072 = vst [vmem:[#allocation2 + $0x80] sm:$0xff] %v11988_v21   ;;  %12999 = vmatpush3.bf16.msra.mxu1 %v14329_v22 }
 0x9c8   :  { %13000 = vmatprep.subr.bf16.mxu1 %v14330_v26 }
 0x9cb   :  { %13001 = vmatpush3.bf16.msra.mxu1 %v14331_v25 }
 0x9cc   :  { %v14335_v45 = vld [vmem:[#allocation2 + $0x88] sm:$0xff]  }
 0x9cd   :  { %13586 = vmatprep.subr.bf16.mxu0 %v14335_v45 }
 0x9ce   :  { %v14336_v34 = vld [vmem:[#allocation2 + $0x80] sm:$0xff]   ;;  %9334 = vmatmul.mubr.bf16.vlgmr.msra.gmra.mxu1 %v14332_v20  ;;  %13587 = vmatpush3.bf16.msra.mxu0 %v14335_v45 }
 0x9cf   :  { %13588 = vmatprep.subr.bf16.mxu0 %v14336_v34  ;;  %9341 = vmatprep.mubr.bf16.mxu1 %v14340_v27 }
 0x9d2   :  { %13589 = vmatpush3.bf16.msra.mxu0 %v14336_v34 }
 0x9d3   :  { %13594 = vmatprep.subr.bf16.mxu0 %v14337_v1 }
 0x9d5   :  { %13591 = vmatmul.mubr.msk.bf16.vlgmr.msra.gmra.mxu0 %vm6264_vm1, %v14342_v28 }
 0x9d6   :  { %9342 = vmatmul.mubr.bf16.gmra.mxu1 %v14338_v29  ;;  %13595 = vmatpush3.bf16.msra.mxu0 %v14337_v1 }
 0x9d7   :  { %13596 = vmatprep.subr.bf16.mxu0 %v14343_v30  ;;  %13602 = vmatprep.mubr.msk.bf16.mxu0 %vm9515_vm2, %v14346_v49 }
 0x9da   :  { %13597 = vmatpush3.bf16.msra.mxu0 %v14343_v30 }
 0xa8e   :  { %v13002_v37 = vpop.f32.mrf.mxu1 }
 0xa90   :  { %v13003_v41 = vpop.f32.mrf.mxu1 }
 0xa91   :  { %v13004_v42 = vadd.f32 %v13003_v41, %v13002_v37 }
 0xa92   :  { %v13005_v43 = vpop.f32.mrf.mxu1 }
 0xa93   :  { %v9336_v53 = vadd.f32 %v13004_v42, %v9140_v4 }
 0xa94   :  { %v13006_v47 = vpop.f32.mrf.mxu1 }
 0xa95   :  { %v13592_v48 = vpop.f32.mrf.mxu0  ;;  %v13007_v51 = vadd.f32 %v13006_v47, %v13005_v43 }
 0xa96   :  { %v13008_v52 = vpop.f32.mrf.mxu1 }
 0xa97   :  { %v9384_v55 = vpop.f32.mrf.mxu0  ;;  %v9339_v59 = vadd.f32 %v13007_v51, %v9145_v60 }
 0xa98   :  { %v13009_v57 = vpop.f32.mrf.mxu1  ;;  %v9385_v58 = vadd.f32 %v9384_v55, %v9336_v53 }
 0xa99   :  { %v13010_v62 = vadd.f32 %v13009_v57, %v13008_v52  ;;  %v13593_v54 = vpop.f32.mrf.mxu0 }
 0xa9a   :  { %v13011_v56 = vpop.f32.mrf.mxu1  ;;  %v9399_v40 = vadd.f32 %v9385_v58, %v6373_v24 }
 0xa9b   :  { %v9344_v61 = vadd.f32 %v13010_v62, %v9150_v23  ;;  %v9387_v63 = vpop.f32.mrf.mxu0 }
 0xa9c   :  { %v13012_v0 = vpop.f32.mrf.mxu1  ;;  %v9388_v2 = vadd.f32 %v9387_v63, %v9339_v59  ;;  %v9403_v8 = vmax.f32 %v9399_v40, 0.0 }
 0xa9d   :  { %v9393_v3 = vadd.f32 %v13592_v48, %v9344_v61  ;;  %v13013_v9 = vadd.f32 %v13012_v0, %v13011_v56 }
 0xa9e   :  { %v9400_v6 = vadd.f32 %v9388_v2, %v6374_v38  ;;  %v14347_v38 = vld [vmem:[%s16785_s14 + $0x8] sm:$0xff]  }
 0xa9f   :  { %v9347_v5 = vadd.f32 %v13013_v9, %v9155_v46  ;;  %v9401_v35 = vadd.f32 %v9393_v3, %v6375_v39  ;;  %v9474_v39 = vpop.permute.xlu0 %9473 }
 0xaa0   :  { %v9404_v32 = vmax.f32 %v9400_v6, 0.0 }
 0xaa1   :  { %v9396_v10 = vadd.f32 %v13593_v54, %v9347_v5  ;;  %v9405_v31 = vmax.f32 %v9401_v35, 0.0 }
 0xaa2   :  { %v11998_v36 = vpack.c.bf16 %v9404_v32, %v9403_v8 }
 0xaa3   :  { %v9402_v11 = vadd.f32 %v9396_v10, %v6376_v50 }
 0xaa4   :  { %11999 = vst [vmem:[#allocation2] sm:$0xff] %v11998_v36  }
 0xaa5   :  { %v9406_v24 = vmax.f32 %v9402_v11, 0.0 }
 0xaa7   :  { %v12003_v12 = vpack.c.bf16 %v9406_v24, %v9405_v31 }
 0xaa9   :  { %12074 = vst [vmem:[#allocation2 + $0x8] sm:$0xff] %v12003_v12  }
 0xaab   :  { %v14345_v44 = vld [vmem:[#allocation2] sm:$0xff]  }
 0xab0   :  { %v14344_v13 = vld [vmem:[#allocation2 + $0x8] sm:$0xff]  }
 0xab1   :  { %13598 = vmatprep.subr.bf16.mxu0 %v14344_v13 }
 0xab2   :  { %13599 = vmatpush3.bf16.msra.mxu0 %v14344_v13 }
 0xab3   :  { %13600 = vmatprep.subr.bf16.mxu0 %v14345_v44 }
 0xab6   :  { %13601 = vmatpush3.bf16.msra.mxu0 %v14345_v44 }
 0xab9   :  { %13603 = vmatmul.mubr.msk.bf16.vlgmr.msra.gmra.mxu0 %vm9515_vm2, %v14347_v38 }
 0xb79   :  { %v13604_v50 = vpop.f32.mrf.mxu0 }
 0xb7a   :  { %v9565_v14 = vadd.f32 %v13604_v50, %v9474_v39 }
 0xb7b   :  { %v9556_v15 = vpop.f32.mrf.mxu0 }
 0xb7c   :  { %v9573_v16 = vmax.f32 %v9565_v14, 0.0  ;;  %v9557_v17 = vadd.f32 %v9556_v15, %v9464_v7 }
 0xb7d   :  { %v13605_v19 = vpop.f32.mrf.mxu0 }
 0xb7e   :  { %9577 = vst [vmem:[%s16786_s16 + $0x10] sm:$0xff] %v9573_v16  ;;  %v9571_v21 = vmax.f32 %v9557_v17, 0.0  ;;  %v9568_v22 = vadd.f32 %v13605_v19, %v9479_v18 }
 0xb7f   :  { %v9559_v26 = vpop.f32.mrf.mxu0 }
 0xb80   :  { %9575 = vst [vmem:[%s16786_s16] sm:$0xff] %v9571_v21  ;;  %v9574_v25 = vmax.f32 %v9568_v22, 0.0  ;;  %v9560_v20 = vadd.f32 %v9559_v26, %v9469_v33 }
 0xb82   :  { %9578 = vst [vmem:[%s16786_s16 + $0x18] sm:$0xff] %v9574_v25  ;;  %v9572_v27 = vmax.f32 %v9560_v20, 0.0 }
 0xb84   :  { %9576 = vst [vmem:[%s16786_s16 + $0x8] sm:$0xff] %v9572_v27 }

</bundles_post_ra>
